<compile_context>
chip_gen: v6e
topology: v6e:2x2x1
jax: 0.10.0
libtpu: 0.0.40
codegen_flags: <defaults>
</compile_context>

<pallas_src>
import jax
import jax.numpy as jnp
import numpy as np
from jax.experimental import pallas as pl
from jax.experimental.pallas import tpu as pltpu

# ---- small, module-consistent shapes -------------------------------------
B = 8            # batch (fills the 8-sublane vreg height)
STATE_DIM = 16
ACTION_DIM = 8
T_DIM = 16       # sinusoidal time-embedding width
HIDDEN = 64      # MLP hidden width
N_TIMESTEPS = 10
MAX_ACTION = 1.0
N_COEF = 5       # per-step scalars packed into SMEM


# --------------------------- activation helpers ---------------------------
def _mish_ref(v):
    # exact Mish with a stable softplus (pure-JAX reference / host precompute)
    sp = jnp.maximum(v, 0.0) + jnp.log1p(jnp.exp(-jnp.abs(v)))
    return v * jnp.tanh(sp)


def _mish_kernel(v):
    # Mish(v) = v * tanh(softplus(v)) = v - 2v / ((1 + e^v)^2 + 1)
    # -> 2 EUP pushes (exp + approx reciprocal) instead of exp + log + tanh.
    # Large +v: (1+e^v)^2 -> inf, rcp -> 0, result -> v. Large -v: -> 0.
    u = 1.0 + jnp.exp(v)
    return v - 2.0 * v * pl.reciprocal(u * u + 1.0, approx=True)


# ----------------------------- reference model ----------------------------
def _mlp_noise_ref(x, temb_sin, state, params):
    """eps = model(x, t, s): time_mlp(SinPosEmb(t)) -> Linear(cat([x,t,s])) -> ..."""
    (wt1, bt1, wt2, bt2, w1x, w1t, w1s, b1, w2, b2, w3, b3, wf, bf) = params
    h_t = _mish_ref(temb_sin @ wt1 + bt1)          # (1, 2*T_DIM)
    temb = h_t @ wt2 + bt2                         # (1, T_DIM)
    h = _mish_ref(x @ w1x + temb @ w1t + state @ w1s + b1)
    h = _mish_ref(h @ w2 + b2)
    h = _mish_ref(h @ w3 + b3)
    return h @ wf + bf                             # (B, ACTION_DIM)


# --------------------------- Pallas kernel --------------------------------
def diffusion_sample_kernel(coef_ref, tbias_ref, noise_ref, x0_ref, state_ref,
                            w1x_ref, w1s_ref, w2_ref, b2_ref, w3_ref, b3_ref,
                            wf_ref, bf_ref, out_ref):
    T = noise_ref.shape[0]

    x = x0_ref[...]                                          # (B, A) carried action

    # Loop-invariant prologue: state @ W1_state computed once (single MXU dot).
    sbias = jnp.dot(state_ref[...], w1s_ref[...],
                    preferred_element_type=jnp.float32)      # (B, HIDDEN)

    # Hoist all weight loads out of the unrolled loop.
    w1x = w1x_ref[...]                                       # (A, HIDDEN)
    w2 = w2_ref[...]; b2 = b2_ref[...]
    w3 = w3_ref[...]; b3 = b3_ref[...]
    wf = wf_ref[...]; bf = bf_ref[...]

    # Statically unrolled reverse-diffusion loop; step i handles t = T-1-i.
    for step in range(T):
        # First hidden layer: x @ W1_x evaluated on the VPU (K = 8 broadcast
        # FMAs over a (B, HIDDEN) tile); time/state contributions pre-folded.
        h = sbias + tbias_ref[step:step + 1, :]              # (B, HIDDEN)
        for k in range(ACTION_DIM):
            h = h + x[:, k:k + 1] * w1x[k:k + 1, :]
        h = _mish_kernel(h)
        h = _mish_kernel(jnp.dot(h, w2, preferred_element_type=jnp.float32) + b2)
        h = _mish_kernel(jnp.dot(h, w3, preferred_element_type=jnp.float32) + b3)
        eps = jnp.dot(h, wf, preferred_element_type=jnp.float32) + bf   # (B, A)

        # Per-timestep scalars from flat SMEM (splat onto vectors).
        base = step * N_COEF
        c_recip = coef_ref[base + 0]      # sqrt(1/alpha_cumprod[t])
        c_recipm1 = coef_ref[base + 1]    # sqrt(1/alpha_cumprod[t] - 1)
        pm1 = coef_ref[base + 2]          # posterior_mean_coef1[t]
        pm2 = coef_ref[base + 3]          # posterior_mean_coef2[t]
        sigma = coef_ref[base + 4]        # exp(0.5*post_log_var[t]); 0 at t == 0

        # predict_start_from_noise (+ clip_denoised), q_posterior mean,
        # p_sample noise injection.
        x_recon = jnp.clip(c_recip * x - c_recipm1 * eps, -MAX_ACTION, MAX_ACTION)
        x = pm1 * x_recon + pm2 * x + sigma * noise_ref[step]

    # final action.clamp_(-max_action, max_action)
    out_ref[...] = jnp.clip(x, -MAX_ACTION, MAX_ACTION)


@jax.jit
def diffusion_sample(state, x0, noise_seq, buffers, params):
    (wt1, bt1, wt2, bt2, w1x, w1t, w1s, b1, w2, b2, w3, b3, wf, bf) = params
    T = N_TIMESTEPS

    # ---- host-side hoist of all x-independent, per-timestep compute ----
    # time-embedding MLP for every timestep, folded with "@ W1_t + b1" into a
    # per-step first-layer bias table (T, HIDDEN).
    h_t = _mish_ref(buffers["temb_sin"] @ wt1 + bt1)          # (T, 2*T_DIM)
    temb = h_t @ wt2 + bt2                                    # (T, T_DIM)
    tbias = temb @ w1t + b1                                   # (T, HIDDEN)

    sigma = jnp.exp(0.5 * buffers["post_log_var"])
    sigma = sigma.at[0].set(0.0)                              # no noise at t == 0
    coef = jnp.stack([buffers["sqrt_recip"], buffers["sqrt_recipm1"],
                      buffers["pm_c1"], buffers["pm_c2"], sigma], axis=-1)

    # step i <-> t = T-1-i (reverse-diffusion order); flatten coef for SMEM.
    coef = coef[::-1].reshape(-1).astype(jnp.float32)         # (T*5,)
    tbias = tbias[::-1].astype(jnp.float32)                   # (T, HIDDEN)

    vmem = pl.BlockSpec(memory_space=pltpu.MemorySpace.VMEM)
    smem = pl.BlockSpec(memory_space=pltpu.MemorySpace.SMEM)

    # Single invocation, no grid: everything (<64 KB) stays resident in
    # VMEM/SMEM and the timestep loop runs inside the kernel.
    # TODO(synk): for large batches, add a leading "parallel" batch-block grid
    # axis so the second TensorCore (v7x megacore) takes half the batch.
    return pl.pallas_call(
        diffusion_sample_kernel,
        out_shape=jax.ShapeDtypeStruct((B, ACTION_DIM), jnp.float32),
        in_specs=[smem, vmem, vmem, vmem, vmem,
                  vmem, vmem, vmem, vmem, vmem, vmem, vmem, vmem],
        out_specs=vmem,
    )(coef, tbias, noise_seq, x0, state,
      w1x, w1s, w2, b2, w3, b3, wf, bf)


# ----------------------- parameters / diffusion tables --------------------
def make_params(key):
    ks = jax.random.split(key, 6)

    def lin(k, fan_in, fan_out):
        kw, kb = jax.random.split(k)
        bound = 1.0 / np.sqrt(fan_in)
        w = jax.random.uniform(kw, (fan_in, fan_out), jnp.float32, -bound, bound)
        b = jax.random.uniform(kb, (1, fan_out), jnp.float32, -bound, bound)
        return w, b

    wt1, bt1 = lin(ks[0], T_DIM, 2 * T_DIM)
    wt2, bt2 = lin(ks[1], 2 * T_DIM, T_DIM)
    in_dim = ACTION_DIM + T_DIM + STATE_DIM
    w1, b1 = lin(ks[2], in_dim, HIDDEN)
    # split the first layer so cat([x, temb, state]) @ W1 == x@W1x + temb@W1t + s@W1s
    w1x = w1[:ACTION_DIM]
    w1t = w1[ACTION_DIM:ACTION_DIM + T_DIM]
    w1s = w1[ACTION_DIM + T_DIM:]
    w2, b2 = lin(ks[3], HIDDEN, HIDDEN)
    w3, b3 = lin(ks[4], HIDDEN, HIDDEN)
    wf, bf = lin(ks[5], HIDDEN, ACTION_DIM)
    return (wt1, bt1, wt2, bt2, w1x, w1t, w1s, b1, w2, b2, w3, b3, wf, bf)


def diffusion_buffers(T):
    # linear beta schedule + all registered buffers used on the forward path
    betas = np.linspace(1e-4, 2e-2, T, dtype=np.float64)
    alphas = 1.0 - betas
    ac = np.cumprod(alphas)
    ac_prev = np.concatenate([np.ones(1), ac[:-1]])
    post_var = betas * (1.0 - ac_prev) / (1.0 - ac)

    half = T_DIM // 2
    freqs = np.exp(-np.log(10000.0) * np.arange(half) / (half - 1))
    tt = np.arange(T)[:, None] * freqs[None, :]
    temb_sin = np.concatenate([np.sin(tt), np.cos(tt)], axis=-1)

    return {
        "sqrt_recip": jnp.asarray(np.sqrt(1.0 / ac), jnp.float32),
        "sqrt_recipm1": jnp.asarray(np.sqrt(1.0 / ac - 1.0), jnp.float32),
        "pm_c1": jnp.asarray(betas * np.sqrt(ac_prev) / (1.0 - ac), jnp.float32),
        "pm_c2": jnp.asarray((1.0 - ac_prev) * np.sqrt(alphas) / (1.0 - ac),
                             jnp.float32),
        "post_log_var": jnp.asarray(np.log(np.clip(post_var, 1e-20, None)),
                                    jnp.float32),
        "temb_sin": jnp.asarray(temb_sin, jnp.float32),
    }


# ----------------------------- reference ----------------------------------
def reference_sample(state, x0, noise_seq, buffers, params):
    x = x0
    T = N_TIMESTEPS
    for step, t in enumerate(reversed(range(T))):
        eps = _mlp_noise_ref(x, buffers["temb_sin"][t:t + 1], state, params)
        x_recon = jnp.clip(buffers["sqrt_recip"][t] * x
                           - buffers["sqrt_recipm1"][t] * eps,
                           -MAX_ACTION, MAX_ACTION)
        mean = buffers["pm_c1"][t] * x_recon + buffers["pm_c2"][t] * x
        nonzero = 0.0 if t == 0 else 1.0
        x = mean + nonzero * jnp.exp(0.5 * buffers["post_log_var"][t]) * noise_seq[step]
    return jnp.clip(x, -MAX_ACTION, MAX_ACTION)


if __name__ == "__main__":
    key = jax.random.PRNGKey(0)
    k_state, k_x0, k_noise, k_params = jax.random.split(key, 4)

    state = jax.random.normal(k_state, (B, STATE_DIM), jnp.float32)
    x_init = jax.random.normal(k_x0, (B, ACTION_DIM), jnp.float32)
    # TODO(synk): torch.randn_like inside p_sample is replaced by deterministic,
    # precomputed per-step Gaussian noise (indexed by reverse-diffusion step).
    noise_seq = jax.random.normal(k_noise, (N_TIMESTEPS, B, ACTION_DIM), jnp.float32)

    params = make_params(k_params)
    buffers = diffusion_buffers(N_TIMESTEPS)

    out = diffusion_sample(state, x_init, noise_seq, buffers, params)
    out = jax.block_until_ready(out)

    ref = reference_sample(state, x_init, noise_seq, buffers, params)
    np.testing.assert_allclose(np.asarray(out), np.asarray(ref),
                               rtol=5e-2, atol=5e-2)
    print("KERNEL_OK")
</pallas_src>

<mosaic_0001>
module attributes {stable_mosaic.version = 11 : i64} {
  func.func @diffusion_sample_kernel(%arg0: memref<50xf32, #tpu.memory_space<smem>>, %arg1: memref<10x64xf32, #tpu.memory_space<vmem>>, %arg2: memref<10x8x8xf32, #tpu.memory_space<vmem>>, %arg3: memref<8x8xf32, #tpu.memory_space<vmem>>, %arg4: memref<8x16xf32, #tpu.memory_space<vmem>>, %arg5: memref<8x64xf32, #tpu.memory_space<vmem>>, %arg6: memref<16x64xf32, #tpu.memory_space<vmem>>, %arg7: memref<64x64xf32, #tpu.memory_space<vmem>>, %arg8: memref<1x64xf32, #tpu.memory_space<vmem>>, %arg9: memref<64x64xf32, #tpu.memory_space<vmem>>, %arg10: memref<1x64xf32, #tpu.memory_space<vmem>>, %arg11: memref<64x8xf32, #tpu.memory_space<vmem>>, %arg12: memref<1x8xf32, #tpu.memory_space<vmem>>, %arg13: memref<8x8xf32, #tpu.memory_space<vmem>>) attributes {dimension_semantics = [], scalar_prefetch = 0 : i64, scratch_operands = 0 : i64, tpu.core_type = #tpu.core_type<tc>} {
    %c0 = arith.constant 0 : index
    %c0_0 = arith.constant 0 : index
    %0 = vector.load %arg3[%c0, %c0_0] : memref<8x8xf32, #tpu.memory_space<vmem>>, vector<8x8xf32>
    %c0_1 = arith.constant 0 : index
    %c0_2 = arith.constant 0 : index
    %1 = vector.load %arg4[%c0_1, %c0_2] : memref<8x16xf32, #tpu.memory_space<vmem>>, vector<8x16xf32>
    %c0_3 = arith.constant 0 : index
    %c0_4 = arith.constant 0 : index
    %2 = vector.load %arg6[%c0_3, %c0_4] : memref<16x64xf32, #tpu.memory_space<vmem>>, vector<16x64xf32>
    %cst = arith.constant dense<0.000000e+00> : vector<8x64xf32>
    %3 = tpu.matmul %1, %2, %cst {dimension_numbers = #tpu.dot_dimension_numbers<[1], [0], [0], [1], [0, 0, 1, 1], [], []>} : vector<8x16xf32>, vector<16x64xf32>, vector<8x64xf32> -> vector<8x64xf32>
    %c0_5 = arith.constant 0 : index
    %c0_6 = arith.constant 0 : index
    %4 = vector.load %arg5[%c0_5, %c0_6] : memref<8x64xf32, #tpu.memory_space<vmem>>, vector<8x64xf32>
    %c0_7 = arith.constant 0 : index
    %c0_8 = arith.constant 0 : index
    %5 = vector.load %arg7[%c0_7, %c0_8] : memref<64x64xf32, #tpu.memory_space<vmem>>, vector<64x64xf32>
    %c0_9 = arith.constant 0 : index
    %c0_10 = arith.constant 0 : index
    %6 = vector.load %arg8[%c0_9, %c0_10] : memref<1x64xf32, #tpu.memory_space<vmem>>, vector<1x64xf32>
    %c0_11 = arith.constant 0 : index
    %c0_12 = arith.constant 0 : index
    %7 = vector.load %arg9[%c0_11, %c0_12] : memref<64x64xf32, #tpu.memory_space<vmem>>, vector<64x64xf32>
    %c0_13 = arith.constant 0 : index
    %c0_14 = arith.constant 0 : index
    %8 = vector.load %arg10[%c0_13, %c0_14] : memref<1x64xf32, #tpu.memory_space<vmem>>, vector<1x64xf32>
    %c0_15 = arith.constant 0 : index
    %c0_16 = arith.constant 0 : index
    %9 = vector.load %arg11[%c0_15, %c0_16] : memref<64x8xf32, #tpu.memory_space<vmem>>, vector<64x8xf32>
    %c0_17 = arith.constant 0 : index
    %c0_18 = arith.constant 0 : index
    %10 = vector.load %arg12[%c0_17, %c0_18] : memref<1x8xf32, #tpu.memory_space<vmem>>, vector<1x8xf32>
    %c0_19 = arith.constant 0 : index
    %c0_20 = arith.constant 0 : index
    %11 = vector.load %arg1[%c0_19, %c0_20] : memref<10x64xf32, #tpu.memory_space<vmem>>, vector<1x64xf32>
    %12 = vector.broadcast %11 : vector<1x64xf32> to vector<8x64xf32>
    %13 = arith.addf %3, %12 : vector<8x64xf32>
    %14 = vector.extract_strided_slice %0 {offsets = [0, 0], sizes = [8, 1], strides = [1, 1]} : vector<8x8xf32> to vector<8x1xf32>
    %15 = vector.extract_strided_slice %4 {offsets = [0, 0], sizes = [1, 64], strides = [1, 1]} : vector<8x64xf32> to vector<1x64xf32>
    %16 = vector.broadcast %14 : vector<8x1xf32> to vector<8x64xf32>
    %17 = vector.broadcast %15 : vector<1x64xf32> to vector<8x64xf32>
    %18 = arith.mulf %16, %17 : vector<8x64xf32>
    %19 = arith.addf %13, %18 : vector<8x64xf32>
    %20 = vector.extract_strided_slice %0 {offsets = [0, 1], sizes = [8, 1], strides = [1, 1]} : vector<8x8xf32> to vector<8x1xf32>
    %21 = vector.extract_strided_slice %4 {offsets = [1, 0], sizes = [1, 64], strides = [1, 1]} : vector<8x64xf32> to vector<1x64xf32>
    %22 = vector.broadcast %20 : vector<8x1xf32> to vector<8x64xf32>
    %23 = vector.broadcast %21 : vector<1x64xf32> to vector<8x64xf32>
    %24 = arith.mulf %22, %23 : vector<8x64xf32>
    %25 = arith.addf %19, %24 : vector<8x64xf32>
    %26 = vector.extract_strided_slice %0 {offsets = [0, 2], sizes = [8, 1], strides = [1, 1]} : vector<8x8xf32> to vector<8x1xf32>
    %27 = vector.extract_strided_slice %4 {offsets = [2, 0], sizes = [1, 64], strides = [1, 1]} : vector<8x64xf32> to vector<1x64xf32>
    %28 = vector.broadcast %26 : vector<8x1xf32> to vector<8x64xf32>
    %29 = vector.broadcast %27 : vector<1x64xf32> to vector<8x64xf32>
    %30 = arith.mulf %28, %29 : vector<8x64xf32>
    %31 = arith.addf %25, %30 : vector<8x64xf32>
    %32 = vector.extract_strided_slice %0 {offsets = [0, 3], sizes = [8, 1], strides = [1, 1]} : vector<8x8xf32> to vector<8x1xf32>
    %33 = vector.extract_strided_slice %4 {offsets = [3, 0], sizes = [1, 64], strides = [1, 1]} : vector<8x64xf32> to vector<1x64xf32>
    %34 = vector.broadcast %32 : vector<8x1xf32> to vector<8x64xf32>
    %35 = vector.broadcast %33 : vector<1x64xf32> to vector<8x64xf32>
    %36 = arith.mulf %34, %35 : vector<8x64xf32>
    %37 = arith.addf %31, %36 : vector<8x64xf32>
    %38 = vector.extract_strided_slice %0 {offsets = [0, 4], sizes = [8, 1], strides = [1, 1]} : vector<8x8xf32> to vector<8x1xf32>
    %39 = vector.extract_strided_slice %4 {offsets = [4, 0], sizes = [1, 64], strides = [1, 1]} : vector<8x64xf32> to vector<1x64xf32>
    %40 = vector.broadcast %38 : vector<8x1xf32> to vector<8x64xf32>
    %41 = vector.broadcast %39 : vector<1x64xf32> to vector<8x64xf32>
    %42 = arith.mulf %40, %41 : vector<8x64xf32>
    %43 = arith.addf %37, %42 : vector<8x64xf32>
    %44 = vector.extract_strided_slice %0 {offsets = [0, 5], sizes = [8, 1], strides = [1, 1]} : vector<8x8xf32> to vector<8x1xf32>
    %45 = vector.extract_strided_slice %4 {offsets = [5, 0], sizes = [1, 64], strides = [1, 1]} : vector<8x64xf32> to vector<1x64xf32>
    %46 = vector.broadcast %44 : vector<8x1xf32> to vector<8x64xf32>
    %47 = vector.broadcast %45 : vector<1x64xf32> to vector<8x64xf32>
    %48 = arith.mulf %46, %47 : vector<8x64xf32>
    %49 = arith.addf %43, %48 : vector<8x64xf32>
    %50 = vector.extract_strided_slice %0 {offsets = [0, 6], sizes = [8, 1], strides = [1, 1]} : vector<8x8xf32> to vector<8x1xf32>
    %51 = vector.extract_strided_slice %4 {offsets = [6, 0], sizes = [1, 64], strides = [1, 1]} : vector<8x64xf32> to vector<1x64xf32>
    %52 = vector.broadcast %50 : vector<8x1xf32> to vector<8x64xf32>
    %53 = vector.broadcast %51 : vector<1x64xf32> to vector<8x64xf32>
    %54 = arith.mulf %52, %53 : vector<8x64xf32>
    %55 = arith.addf %49, %54 : vector<8x64xf32>
    %56 = vector.extract_strided_slice %0 {offsets = [0, 7], sizes = [8, 1], strides = [1, 1]} : vector<8x8xf32> to vector<8x1xf32>
    %57 = vector.extract_strided_slice %4 {offsets = [7, 0], sizes = [1, 64], strides = [1, 1]} : vector<8x64xf32> to vector<1x64xf32>
    %58 = vector.broadcast %56 : vector<8x1xf32> to vector<8x64xf32>
    %59 = vector.broadcast %57 : vector<1x64xf32> to vector<8x64xf32>
    %60 = arith.mulf %58, %59 : vector<8x64xf32>
    %61 = arith.addf %55, %60 : vector<8x64xf32>
    %62 = math.exp %61 : vector<8x64xf32>
    %cst_21 = arith.constant 1.000000e+00 : f32
    %63 = vector.broadcast %cst_21 : f32 to vector<8x64xf32>
    %64 = arith.addf %63, %62 : vector<8x64xf32>
    %cst_22 = arith.constant 2.000000e+00 : f32
    %65 = vector.broadcast %cst_22 : f32 to vector<8x64xf32>
    %66 = arith.mulf %65, %61 : vector<8x64xf32>
    %67 = arith.mulf %64, %64 : vector<8x64xf32>
    %cst_23 = arith.constant 1.000000e+00 : f32
    %68 = vector.broadcast %cst_23 : f32 to vector<8x64xf32>
    %69 = arith.addf %67, %68 : vector<8x64xf32>
    %70 = tpu.reciprocal %69 {approx = true} : vector<8x64xf32> -> vector<8x64xf32>
    %71 = arith.mulf %66, %70 : vector<8x64xf32>
    %72 = arith.subf %61, %71 : vector<8x64xf32>
    %cst_24 = arith.constant dense<0.000000e+00> : vector<8x64xf32>
    %73 = tpu.matmul %72, %5, %cst_24 {dimension_numbers = #tpu.dot_dimension_numbers<[1], [0], [0], [1], [0, 0, 1, 1], [], []>} : vector<8x64xf32>, vector<64x64xf32>, vector<8x64xf32> -> vector<8x64xf32>
    %74 = vector.broadcast %6 : vector<1x64xf32> to vector<8x64xf32>
    %75 = arith.addf %73, %74 : vector<8x64xf32>
    %76 = math.exp %75 : vector<8x64xf32>
    %cst_25 = arith.constant 1.000000e+00 : f32
    %77 = vector.broadcast %cst_25 : f32 to vector<8x64xf32>
    %78 = arith.addf %77, %76 : vector<8x64xf32>
    %cst_26 = arith.constant 2.000000e+00 : f32
    %79 = vector.broadcast %cst_26 : f32 to vector<8x64xf32>
    %80 = arith.mulf %79, %75 : vector<8x64xf32>
    %81 = arith.mulf %78, %78 : vector<8x64xf32>
    %cst_27 = arith.constant 1.000000e+00 : f32
    %82 = vector.broadcast %cst_27 : f32 to vector<8x64xf32>
    %83 = arith.addf %81, %82 : vector<8x64xf32>
    %84 = tpu.reciprocal %83 {approx = true} : vector<8x64xf32> -> vector<8x64xf32>
    %85 = arith.mulf %80, %84 : vector<8x64xf32>
    %86 = arith.subf %75, %85 : vector<8x64xf32>
    %cst_28 = arith.constant dense<0.000000e+00> : vector<8x64xf32>
    %87 = tpu.matmul %86, %7, %cst_28 {dimension_numbers = #tpu.dot_dimension_numbers<[1], [0], [0], [1], [0, 0, 1, 1], [], []>} : vector<8x64xf32>, vector<64x64xf32>, vector<8x64xf32> -> vector<8x64xf32>
    %88 = vector.broadcast %8 : vector<1x64xf32> to vector<8x64xf32>
    %89 = arith.addf %87, %88 : vector<8x64xf32>
    %90 = math.exp %89 : vector<8x64xf32>
    %cst_29 = arith.constant 1.000000e+00 : f32
    %91 = vector.broadcast %cst_29 : f32 to vector<8x64xf32>
    %92 = arith.addf %91, %90 : vector<8x64xf32>
    %cst_30 = arith.constant 2.000000e+00 : f32
    %93 = vector.broadcast %cst_30 : f32 to vector<8x64xf32>
    %94 = arith.mulf %93, %89 : vector<8x64xf32>
    %95 = arith.mulf %92, %92 : vector<8x64xf32>
    %cst_31 = arith.constant 1.000000e+00 : f32
    %96 = vector.broadcast %cst_31 : f32 to vector<8x64xf32>
    %97 = arith.addf %95, %96 : vector<8x64xf32>
    %98 = tpu.reciprocal %97 {approx = true} : vector<8x64xf32> -> vector<8x64xf32>
    %99 = arith.mulf %94, %98 : vector<8x64xf32>
    %100 = arith.subf %89, %99 : vector<8x64xf32>
    %cst_32 = arith.constant dense<0.000000e+00> : vector<8x8xf32>
    %101 = tpu.matmul %100, %9, %cst_32 {dimension_numbers = #tpu.dot_dimension_numbers<[1], [0], [0], [1], [0, 0, 1, 1], [], []>} : vector<8x64xf32>, vector<64x8xf32>, vector<8x8xf32> -> vector<8x8xf32>
    %102 = vector.broadcast %10 : vector<1x8xf32> to vector<8x8xf32>
    %103 = arith.addf %101, %102 : vector<8x8xf32>
    %c0_33 = arith.constant 0 : index
    %104 = memref.load %arg0[%c0_33] : memref<50xf32, #tpu.memory_space<smem>>
    %c1 = arith.constant 1 : index
    %105 = memref.load %arg0[%c1] : memref<50xf32, #tpu.memory_space<smem>>
    %c2 = arith.constant 2 : index
    %106 = memref.load %arg0[%c2] : memref<50xf32, #tpu.memory_space<smem>>
    %c3 = arith.constant 3 : index
    %107 = memref.load %arg0[%c3] : memref<50xf32, #tpu.memory_space<smem>>
    %c4 = arith.constant 4 : index
    %108 = memref.load %arg0[%c4] : memref<50xf32, #tpu.memory_space<smem>>
    %109 = vector.broadcast %104 : f32 to vector<8x8xf32>
    %110 = arith.mulf %109, %0 : vector<8x8xf32>
    %111 = vector.broadcast %105 : f32 to vector<8x8xf32>
    %112 = arith.mulf %111, %103 : vector<8x8xf32>
    %113 = arith.subf %110, %112 : vector<8x8xf32>
    %cst_34 = arith.constant -1.000000e+00 : f32
    %cst_35 = arith.constant 1.000000e+00 : f32
    %114 = vector.broadcast %cst_34 : f32 to vector<8x8xf32>
    %115 = arith.maximumf %114, %113 : vector<8x8xf32>
    %116 = vector.broadcast %cst_35 : f32 to vector<8x8xf32>
    %117 = arith.minimumf %116, %115 : vector<8x8xf32>
    %118 = vector.broadcast %106 : f32 to vector<8x8xf32>
    %119 = arith.mulf %118, %117 : vector<8x8xf32>
    %120 = vector.broadcast %107 : f32 to vector<8x8xf32>
    %121 = arith.mulf %120, %0 : vector<8x8xf32>
    %122 = arith.addf %119, %121 : vector<8x8xf32>
    %c0_36 = arith.constant 0 : index
    %c0_37 = arith.constant 0 : index
    %c0_38 = arith.constant 0 : index
    %123 = vector.load %arg2[%c0_36, %c0_37, %c0_38] : memref<10x8x8xf32, #tpu.memory_space<vmem>>, vector<1x8x8xf32>
    %124 = vector.shape_cast %123 : vector<1x8x8xf32> to vector<8x8xf32>
    %125 = vector.broadcast %108 : f32 to vector<8x8xf32>
    %126 = arith.mulf %125, %124 : vector<8x8xf32>
    %127 = arith.addf %122, %126 : vector<8x8xf32>
    %c1_39 = arith.constant 1 : index
    %c0_40 = arith.constant 0 : index
    %128 = vector.load %arg1[%c1_39, %c0_40] : memref<10x64xf32, #tpu.memory_space<vmem>>, vector<1x64xf32>
    %129 = vector.broadcast %128 : vector<1x64xf32> to vector<8x64xf32>
    %130 = arith.addf %3, %129 : vector<8x64xf32>
    %131 = vector.extract_strided_slice %127 {offsets = [0, 0], sizes = [8, 1], strides = [1, 1]} : vector<8x8xf32> to vector<8x1xf32>
    %132 = vector.extract_strided_slice %4 {offsets = [0, 0], sizes = [1, 64], strides = [1, 1]} : vector<8x64xf32> to vector<1x64xf32>
    %133 = vector.broadcast %131 : vector<8x1xf32> to vector<8x64xf32>
    %134 = vector.broadcast %132 : vector<1x64xf32> to vector<8x64xf32>
    %135 = arith.mulf %133, %134 : vector<8x64xf32>
    %136 = arith.addf %130, %135 : vector<8x64xf32>
    %137 = vector.extract_strided_slice %127 {offsets = [0, 1], sizes = [8, 1], strides = [1, 1]} : vector<8x8xf32> to vector<8x1xf32>
    %138 = vector.extract_strided_slice %4 {offsets = [1, 0], sizes = [1, 64], strides = [1, 1]} : vector<8x64xf32> to vector<1x64xf32>
    %139 = vector.broadcast %137 : vector<8x1xf32> to vector<8x64xf32>
    %140 = vector.broadcast %138 : vector<1x64xf32> to vector<8x64xf32>
    %141 = arith.mulf %139, %140 : vector<8x64xf32>
    %142 = arith.addf %136, %141 : vector<8x64xf32>
    %143 = vector.extract_strided_slice %127 {offsets = [0, 2], sizes = [8, 1], strides = [1, 1]} : vector<8x8xf32> to vector<8x1xf32>
    %144 = vector.extract_strided_slice %4 {offsets = [2, 0], sizes = [1, 64], strides = [1, 1]} : vector<8x64xf32> to vector<1x64xf32>
    %145 = vector.broadcast %143 : vector<8x1xf32> to vector<8x64xf32>
    %146 = vector.broadcast %144 : vector<1x64xf32> to vector<8x64xf32>
    %147 = arith.mulf %145, %146 : vector<8x64xf32>
    %148 = arith.addf %142, %147 : vector<8x64xf32>
    %149 = vector.extract_strided_slice %127 {offsets = [0, 3], sizes = [8, 1], strides = [1, 1]} : vector<8x8xf32> to vector<8x1xf32>
    %150 = vector.extract_strided_slice %4 {offsets = [3, 0], sizes = [1, 64], strides = [1, 1]} : vector<8x64xf32> to vector<1x64xf32>
    %151 = vector.broadcast %149 : vector<8x1xf32> to vector<8x64xf32>
    %152 = vector.broadcast %150 : vector<1x64xf32> to vector<8x64xf32>
    %153 = arith.mulf %151, %152 : vector<8x64xf32>
    %154 = arith.addf %148, %153 : vector<8x64xf32>
    %155 = vector.extract_strided_slice %127 {offsets = [0, 4], sizes = [8, 1], strides = [1, 1]} : vector<8x8xf32> to vector<8x1xf32>
    %156 = vector.extract_strided_slice %4 {offsets = [4, 0], sizes = [1, 64], strides = [1, 1]} : vector<8x64xf32> to vector<1x64xf32>
    %157 = vector.broadcast %155 : vector<8x1xf32> to vector<8x64xf32>
    %158 = vector.broadcast %156 : vector<1x64xf32> to vector<8x64xf32>
    %159 = arith.mulf %157, %158 : vector<8x64xf32>
    %160 = arith.addf %154, %159 : vector<8x64xf32>
    %161 = vector.extract_strided_slice %127 {offsets = [0, 5], sizes = [8, 1], strides = [1, 1]} : vector<8x8xf32> to vector<8x1xf32>
    %162 = vector.extract_strided_slice %4 {offsets = [5, 0], sizes = [1, 64], strides = [1, 1]} : vector<8x64xf32> to vector<1x64xf32>
    %163 = vector.broadcast %161 : vector<8x1xf32> to vector<8x64xf32>
    %164 = vector.broadcast %162 : vector<1x64xf32> to vector<8x64xf32>
    %165 = arith.mulf %163, %164 : vector<8x64xf32>
    %166 = arith.addf %160, %165 : vector<8x64xf32>
    %167 = vector.extract_strided_slice %127 {offsets = [0, 6], sizes = [8, 1], strides = [1, 1]} : vector<8x8xf32> to vector<8x1xf32>
    %168 = vector.extract_strided_slice %4 {offsets = [6, 0], sizes = [1, 64], strides = [1, 1]} : vector<8x64xf32> to vector<1x64xf32>
    %169 = vector.broadcast %167 : vector<8x1xf32> to vector<8x64xf32>
    %170 = vector.broadcast %168 : vector<1x64xf32> to vector<8x64xf32>
    %171 = arith.mulf %169, %170 : vector<8x64xf32>
    %172 = arith.addf %166, %171 : vector<8x64xf32>
    %173 = vector.extract_strided_slice %127 {offsets = [0, 7], sizes = [8, 1], strides = [1, 1]} : vector<8x8xf32> to vector<8x1xf32>
    %174 = vector.extract_strided_slice %4 {offsets = [7, 0], sizes = [1, 64], strides = [1, 1]} : vector<8x64xf32> to vector<1x64xf32>
    %175 = vector.broadcast %173 : vector<8x1xf32> to vector<8x64xf32>
    %176 = vector.broadcast %174 : vector<1x64xf32> to vector<8x64xf32>
    %177 = arith.mulf %175, %176 : vector<8x64xf32>
    %178 = arith.addf %172, %177 : vector<8x64xf32>
    %179 = math.exp %178 : vector<8x64xf32>
    %cst_41 = arith.constant 1.000000e+00 : f32
    %180 = vector.broadcast %cst_41 : f32 to vector<8x64xf32>
    %181 = arith.addf %180, %179 : vector<8x64xf32>
    %cst_42 = arith.constant 2.000000e+00 : f32
    %182 = vector.broadcast %cst_42 : f32 to vector<8x64xf32>
    %183 = arith.mulf %182, %178 : vector<8x64xf32>
    %184 = arith.mulf %181, %181 : vector<8x64xf32>
    %cst_43 = arith.constant 1.000000e+00 : f32
    %185 = vector.broadcast %cst_43 : f32 to vector<8x64xf32>
    %186 = arith.addf %184, %185 : vector<8x64xf32>
    %187 = tpu.reciprocal %186 {approx = true} : vector<8x64xf32> -> vector<8x64xf32>
    %188 = arith.mulf %183, %187 : vector<8x64xf32>
    %189 = arith.subf %178, %188 : vector<8x64xf32>
    %cst_44 = arith.constant dense<0.000000e+00> : vector<8x64xf32>
    %190 = tpu.matmul %189, %5, %cst_44 {dimension_numbers = #tpu.dot_dimension_numbers<[1], [0], [0], [1], [0, 0, 1, 1], [], []>} : vector<8x64xf32>, vector<64x64xf32>, vector<8x64xf32> -> vector<8x64xf32>
    %191 = vector.broadcast %6 : vector<1x64xf32> to vector<8x64xf32>
    %192 = arith.addf %190, %191 : vector<8x64xf32>
    %193 = math.exp %192 : vector<8x64xf32>
    %cst_45 = arith.constant 1.000000e+00 : f32
    %194 = vector.broadcast %cst_45 : f32 to vector<8x64xf32>
    %195 = arith.addf %194, %193 : vector<8x64xf32>
    %cst_46 = arith.constant 2.000000e+00 : f32
    %196 = vector.broadcast %cst_46 : f32 to vector<8x64xf32>
    %197 = arith.mulf %196, %192 : vector<8x64xf32>
    %198 = arith.mulf %195, %195 : vector<8x64xf32>
    %cst_47 = arith.constant 1.000000e+00 : f32
    %199 = vector.broadcast %cst_47 : f32 to vector<8x64xf32>
    %200 = arith.addf %198, %199 : vector<8x64xf32>
    %201 = tpu.reciprocal %200 {approx = true} : vector<8x64xf32> -> vector<8x64xf32>
    %202 = arith.mulf %197, %201 : vector<8x64xf32>
    %203 = arith.subf %192, %202 : vector<8x64xf32>
    %cst_48 = arith.constant dense<0.000000e+00> : vector<8x64xf32>
    %204 = tpu.matmul %203, %7, %cst_48 {dimension_numbers = #tpu.dot_dimension_numbers<[1], [0], [0], [1], [0, 0, 1, 1], [], []>} : vector<8x64xf32>, vector<64x64xf32>, vector<8x64xf32> -> vector<8x64xf32>
    %205 = vector.broadcast %8 : vector<1x64xf32> to vector<8x64xf32>
    %206 = arith.addf %204, %205 : vector<8x64xf32>
    %207 = math.exp %206 : vector<8x64xf32>
    %cst_49 = arith.constant 1.000000e+00 : f32
    %208 = vector.broadcast %cst_49 : f32 to vector<8x64xf32>
    %209 = arith.addf %208, %207 : vector<8x64xf32>
    %cst_50 = arith.constant 2.000000e+00 : f32
    %210 = vector.broadcast %cst_50 : f32 to vector<8x64xf32>
    %211 = arith.mulf %210, %206 : vector<8x64xf32>
    %212 = arith.mulf %209, %209 : vector<8x64xf32>
    %cst_51 = arith.constant 1.000000e+00 : f32
    %213 = vector.broadcast %cst_51 : f32 to vector<8x64xf32>
    %214 = arith.addf %212, %213 : vector<8x64xf32>
    %215 = tpu.reciprocal %214 {approx = true} : vector<8x64xf32> -> vector<8x64xf32>
    %216 = arith.mulf %211, %215 : vector<8x64xf32>
    %217 = arith.subf %206, %216 : vector<8x64xf32>
    %cst_52 = arith.constant dense<0.000000e+00> : vector<8x8xf32>
    %218 = tpu.matmul %217, %9, %cst_52 {dimension_numbers = #tpu.dot_dimension_numbers<[1], [0], [0], [1], [0, 0, 1, 1], [], []>} : vector<8x64xf32>, vector<64x8xf32>, vector<8x8xf32> -> vector<8x8xf32>
    %219 = vector.broadcast %10 : vector<1x8xf32> to vector<8x8xf32>
    %220 = arith.addf %218, %219 : vector<8x8xf32>
    %c5 = arith.constant 5 : index
    %221 = memref.load %arg0[%c5] : memref<50xf32, #tpu.memory_space<smem>>
    %c6 = arith.constant 6 : index
    %222 = memref.load %arg0[%c6] : memref<50xf32, #tpu.memory_space<smem>>
    %c7 = arith.constant 7 : index
    %223 = memref.load %arg0[%c7] : memref<50xf32, #tpu.memory_space<smem>>
    %c8 = arith.constant 8 : index
    %224 = memref.load %arg0[%c8] : memref<50xf32, #tpu.memory_space<smem>>
    %c9 = arith.constant 9 : index
    %225 = memref.load %arg0[%c9] : memref<50xf32, #tpu.memory_space<smem>>
    %226 = vector.broadcast %221 : f32 to vector<8x8xf32>
    %227 = arith.mulf %226, %127 : vector<8x8xf32>
    %228 = vector.broadcast %222 : f32 to vector<8x8xf32>
    %229 = arith.mulf %228, %220 : vector<8x8xf32>
    %230 = arith.subf %227, %229 : vector<8x8xf32>
    %cst_53 = arith.constant -1.000000e+00 : f32
    %cst_54 = arith.constant 1.000000e+00 : f32
    %231 = vector.broadcast %cst_53 : f32 to vector<8x8xf32>
    %232 = arith.maximumf %231, %230 : vector<8x8xf32>
    %233 = vector.broadcast %cst_54 : f32 to vector<8x8xf32>
    %234 = arith.minimumf %233, %232 : vector<8x8xf32>
    %235 = vector.broadcast %223 : f32 to vector<8x8xf32>
    %236 = arith.mulf %235, %234 : vector<8x8xf32>
    %237 = vector.broadcast %224 : f32 to vector<8x8xf32>
    %238 = arith.mulf %237, %127 : vector<8x8xf32>
    %239 = arith.addf %236, %238 : vector<8x8xf32>
    %c1_55 = arith.constant 1 : index
    %c0_56 = arith.constant 0 : index
    %c0_57 = arith.constant 0 : index
    %240 = vector.load %arg2[%c1_55, %c0_56, %c0_57] : memref<10x8x8xf32, #tpu.memory_space<vmem>>, vector<1x8x8xf32>
    %241 = vector.shape_cast %240 : vector<1x8x8xf32> to vector<8x8xf32>
    %242 = vector.broadcast %225 : f32 to vector<8x8xf32>
    %243 = arith.mulf %242, %241 : vector<8x8xf32>
    %244 = arith.addf %239, %243 : vector<8x8xf32>
    %c2_58 = arith.constant 2 : index
    %c0_59 = arith.constant 0 : index
    %245 = vector.load %arg1[%c2_58, %c0_59] : memref<10x64xf32, #tpu.memory_space<vmem>>, vector<1x64xf32>
    %246 = vector.broadcast %245 : vector<1x64xf32> to vector<8x64xf32>
    %247 = arith.addf %3, %246 : vector<8x64xf32>
    %248 = vector.extract_strided_slice %244 {offsets = [0, 0], sizes = [8, 1], strides = [1, 1]} : vector<8x8xf32> to vector<8x1xf32>
    %249 = vector.extract_strided_slice %4 {offsets = [0, 0], sizes = [1, 64], strides = [1, 1]} : vector<8x64xf32> to vector<1x64xf32>
    %250 = vector.broadcast %248 : vector<8x1xf32> to vector<8x64xf32>
    %251 = vector.broadcast %249 : vector<1x64xf32> to vector<8x64xf32>
    %252 = arith.mulf %250, %251 : vector<8x64xf32>
    %253 = arith.addf %247, %252 : vector<8x64xf32>
    %254 = vector.extract_strided_slice %244 {offsets = [0, 1], sizes = [8, 1], strides = [1, 1]} : vector<8x8xf32> to vector<8x1xf32>
    %255 = vector.extract_strided_slice %4 {offsets = [1, 0], sizes = [1, 64], strides = [1, 1]} : vector<8x64xf32> to vector<1x64xf32>
    %256 = vector.broadcast %254 : vector<8x1xf32> to vector<8x64xf32>
    %257 = vector.broadcast %255 : vector<1x64xf32> to vector<8x64xf32>
    %258 = arith.mulf %256, %257 : vector<8x64xf32>
    %259 = arith.addf %253, %258 : vector<8x64xf32>
    %260 = vector.extract_strided_slice %244 {offsets = [0, 2], sizes = [8, 1], strides = [1, 1]} : vector<8x8xf32> to vector<8x1xf32>
    %261 = vector.extract_strided_slice %4 {offsets = [2, 0], sizes = [1, 64], strides = [1, 1]} : vector<8x64xf32> to vector<1x64xf32>
    %262 = vector.broadcast %260 : vector<8x1xf32> to vector<8x64xf32>
    %263 = vector.broadcast %261 : vector<1x64xf32> to vector<8x64xf32>
    %264 = arith.mulf %262, %263 : vector<8x64xf32>
    %265 = arith.addf %259, %264 : vector<8x64xf32>
    %266 = vector.extract_strided_slice %244 {offsets = [0, 3], sizes = [8, 1], strides = [1, 1]} : vector<8x8xf32> to vector<8x1xf32>
    %267 = vector.extract_strided_slice %4 {offsets = [3, 0], sizes = [1, 64], strides = [1, 1]} : vector<8x64xf32> to vector<1x64xf32>
    %268 = vector.broadcast %266 : vector<8x1xf32> to vector<8x64xf32>
    %269 = vector.broadcast %267 : vector<1x64xf32> to vector<8x64xf32>
    %270 = arith.mulf %268, %269 : vector<8x64xf32>
    %271 = arith.addf %265, %270 : vector<8x64xf32>
    %272 = vector.extract_strided_slice %244 {offsets = [0, 4], sizes = [8, 1], strides = [1, 1]} : vector<8x8xf32> to vector<8x1xf32>
    %273 = vector.extract_strided_slice %4 {offsets = [4, 0], sizes = [1, 64], strides = [1, 1]} : vector<8x64xf32> to vector<1x64xf32>
    %274 = vector.broadcast %272 : vector<8x1xf32> to vector<8x64xf32>
    %275 = vector.broadcast %273 : vector<1x64xf32> to vector<8x64xf32>
    %276 = arith.mulf %274, %275 : vector<8x64xf32>
    %277 = arith.addf %271, %276 : vector<8x64xf32>
    %278 = vector.extract_strided_slice %244 {offsets = [0, 5], sizes = [8, 1], strides = [1, 1]} : vector<8x8xf32> to vector<8x1xf32>
    %279 = vector.extract_strided_slice %4 {offsets = [5, 0], sizes = [1, 64], strides = [1, 1]} : vector<8x64xf32> to vector<1x64xf32>
    %280 = vector.broadcast %278 : vector<8x1xf32> to vector<8x64xf32>
    %281 = vector.broadcast %279 : vector<1x64xf32> to vector<8x64xf32>
    %282 = arith.mulf %280, %281 : vector<8x64xf32>
    %283 = arith.addf %277, %282 : vector<8x64xf32>
    %284 = vector.extract_strided_slice %244 {offsets = [0, 6], sizes = [8, 1], strides = [1, 1]} : vector<8x8xf32> to vector<8x1xf32>
    %285 = vector.extract_strided_slice %4 {offsets = [6, 0], sizes = [1, 64], strides = [1, 1]} : vector<8x64xf32> to vector<1x64xf32>
    %286 = vector.broadcast %284 : vector<8x1xf32> to vector<8x64xf32>
    %287 = vector.broadcast %285 : vector<1x64xf32> to vector<8x64xf32>
    %288 = arith.mulf %286, %287 : vector<8x64xf32>
    %289 = arith.addf %283, %288 : vector<8x64xf32>
    %290 = vector.extract_strided_slice %244 {offsets = [0, 7], sizes = [8, 1], strides = [1, 1]} : vector<8x8xf32> to vector<8x1xf32>
    %291 = vector.extract_strided_slice %4 {offsets = [7, 0], sizes = [1, 64], strides = [1, 1]} : vector<8x64xf32> to vector<1x64xf32>
    %292 = vector.broadcast %290 : vector<8x1xf32> to vector<8x64xf32>
    %293 = vector.broadcast %291 : vector<1x64xf32> to vector<8x64xf32>
    %294 = arith.mulf %292, %293 : vector<8x64xf32>
    %295 = arith.addf %289, %294 : vector<8x64xf32>
    %296 = math.exp %295 : vector<8x64xf32>
    %cst_60 = arith.constant 1.000000e+00 : f32
    %297 = vector.broadcast %cst_60 : f32 to vector<8x64xf32>
    %298 = arith.addf %297, %296 : vector<8x64xf32>
    %cst_61 = arith.constant 2.000000e+00 : f32
    %299 = vector.broadcast %cst_61 : f32 to vector<8x64xf32>
    %300 = arith.mulf %299, %295 : vector<8x64xf32>
    %301 = arith.mulf %298, %298 : vector<8x64xf32>
    %cst_62 = arith.constant 1.000000e+00 : f32
    %302 = vector.broadcast %cst_62 : f32 to vector<8x64xf32>
    %303 = arith.addf %301, %302 : vector<8x64xf32>
    %304 = tpu.reciprocal %303 {approx = true} : vector<8x64xf32> -> vector<8x64xf32>
    %305 = arith.mulf %300, %304 : vector<8x64xf32>
    %306 = arith.subf %295, %305 : vector<8x64xf32>
    %cst_63 = arith.constant dense<0.000000e+00> : vector<8x64xf32>
    %307 = tpu.matmul %306, %5, %cst_63 {dimension_numbers = #tpu.dot_dimension_numbers<[1], [0], [0], [1], [0, 0, 1, 1], [], []>} : vector<8x64xf32>, vector<64x64xf32>, vector<8x64xf32> -> vector<8x64xf32>
    %308 = vector.broadcast %6 : vector<1x64xf32> to vector<8x64xf32>
    %309 = arith.addf %307, %308 : vector<8x64xf32>
    %310 = math.exp %309 : vector<8x64xf32>
    %cst_64 = arith.constant 1.000000e+00 : f32
    %311 = vector.broadcast %cst_64 : f32 to vector<8x64xf32>
    %312 = arith.addf %311, %310 : vector<8x64xf32>
    %cst_65 = arith.constant 2.000000e+00 : f32
    %313 = vector.broadcast %cst_65 : f32 to vector<8x64xf32>
    %314 = arith.mulf %313, %309 : vector<8x64xf32>
    %315 = arith.mulf %312, %312 : vector<8x64xf32>
    %cst_66 = arith.constant 1.000000e+00 : f32
    %316 = vector.broadcast %cst_66 : f32 to vector<8x64xf32>
    %317 = arith.addf %315, %316 : vector<8x64xf32>
    %318 = tpu.reciprocal %317 {approx = true} : vector<8x64xf32> -> vector<8x64xf32>
    %319 = arith.mulf %314, %318 : vector<8x64xf32>
    %320 = arith.subf %309, %319 : vector<8x64xf32>
    %cst_67 = arith.constant dense<0.000000e+00> : vector<8x64xf32>
    %321 = tpu.matmul %320, %7, %cst_67 {dimension_numbers = #tpu.dot_dimension_numbers<[1], [0], [0], [1], [0, 0, 1, 1], [], []>} : vector<8x64xf32>, vector<64x64xf32>, vector<8x64xf32> -> vector<8x64xf32>
    %322 = vector.broadcast %8 : vector<1x64xf32> to vector<8x64xf32>
    %323 = arith.addf %321, %322 : vector<8x64xf32>
    %324 = math.exp %323 : vector<8x64xf32>
    %cst_68 = arith.constant 1.000000e+00 : f32
    %325 = vector.broadcast %cst_68 : f32 to vector<8x64xf32>
    %326 = arith.addf %325, %324 : vector<8x64xf32>
    %cst_69 = arith.constant 2.000000e+00 : f32
    %327 = vector.broadcast %cst_69 : f32 to vector<8x64xf32>
    %328 = arith.mulf %327, %323 : vector<8x64xf32>
    %329 = arith.mulf %326, %326 : vector<8x64xf32>
    %cst_70 = arith.constant 1.000000e+00 : f32
    %330 = vector.broadcast %cst_70 : f32 to vector<8x64xf32>
    %331 = arith.addf %329, %330 : vector<8x64xf32>
    %332 = tpu.reciprocal %331 {approx = true} : vector<8x64xf32> -> vector<8x64xf32>
    %333 = arith.mulf %328, %332 : vector<8x64xf32>
    %334 = arith.subf %323, %333 : vector<8x64xf32>
    %cst_71 = arith.constant dense<0.000000e+00> : vector<8x8xf32>
    %335 = tpu.matmul %334, %9, %cst_71 {dimension_numbers = #tpu.dot_dimension_numbers<[1], [0], [0], [1], [0, 0, 1, 1], [], []>} : vector<8x64xf32>, vector<64x8xf32>, vector<8x8xf32> -> vector<8x8xf32>
    %336 = vector.broadcast %10 : vector<1x8xf32> to vector<8x8xf32>
    %337 = arith.addf %335, %336 : vector<8x8xf32>
    %c10 = arith.constant 10 : index
    %338 = memref.load %arg0[%c10] : memref<50xf32, #tpu.memory_space<smem>>
    %c11 = arith.constant 11 : index
    %339 = memref.load %arg0[%c11] : memref<50xf32, #tpu.memory_space<smem>>
    %c12 = arith.constant 12 : index
    %340 = memref.load %arg0[%c12] : memref<50xf32, #tpu.memory_space<smem>>
    %c13 = arith.constant 13 : index
    %341 = memref.load %arg0[%c13] : memref<50xf32, #tpu.memory_space<smem>>
    %c14 = arith.constant 14 : index
    %342 = memref.load %arg0[%c14] : memref<50xf32, #tpu.memory_space<smem>>
    %343 = vector.broadcast %338 : f32 to vector<8x8xf32>
    %344 = arith.mulf %343, %244 : vector<8x8xf32>
    %345 = vector.broadcast %339 : f32 to vector<8x8xf32>
    %346 = arith.mulf %345, %337 : vector<8x8xf32>
    %347 = arith.subf %344, %346 : vector<8x8xf32>
    %cst_72 = arith.constant -1.000000e+00 : f32
    %cst_73 = arith.constant 1.000000e+00 : f32
    %348 = vector.broadcast %cst_72 : f32 to vector<8x8xf32>
    %349 = arith.maximumf %348, %347 : vector<8x8xf32>
    %350 = vector.broadcast %cst_73 : f32 to vector<8x8xf32>
    %351 = arith.minimumf %350, %349 : vector<8x8xf32>
    %352 = vector.broadcast %340 : f32 to vector<8x8xf32>
    %353 = arith.mulf %352, %351 : vector<8x8xf32>
    %354 = vector.broadcast %341 : f32 to vector<8x8xf32>
    %355 = arith.mulf %354, %244 : vector<8x8xf32>
    %356 = arith.addf %353, %355 : vector<8x8xf32>
    %c2_74 = arith.constant 2 : index
    %c0_75 = arith.constant 0 : index
    %c0_76 = arith.constant 0 : index
    %357 = vector.load %arg2[%c2_74, %c0_75, %c0_76] : memref<10x8x8xf32, #tpu.memory_space<vmem>>, vector<1x8x8xf32>
    %358 = vector.shape_cast %357 : vector<1x8x8xf32> to vector<8x8xf32>
    %359 = vector.broadcast %342 : f32 to vector<8x8xf32>
    %360 = arith.mulf %359, %358 : vector<8x8xf32>
    %361 = arith.addf %356, %360 : vector<8x8xf32>
    %c3_77 = arith.constant 3 : index
    %c0_78 = arith.constant 0 : index
    %362 = vector.load %arg1[%c3_77, %c0_78] : memref<10x64xf32, #tpu.memory_space<vmem>>, vector<1x64xf32>
    %363 = vector.broadcast %362 : vector<1x64xf32> to vector<8x64xf32>
    %364 = arith.addf %3, %363 : vector<8x64xf32>
    %365 = vector.extract_strided_slice %361 {offsets = [0, 0], sizes = [8, 1], strides = [1, 1]} : vector<8x8xf32> to vector<8x1xf32>
    %366 = vector.extract_strided_slice %4 {offsets = [0, 0], sizes = [1, 64], strides = [1, 1]} : vector<8x64xf32> to vector<1x64xf32>
    %367 = vector.broadcast %365 : vector<8x1xf32> to vector<8x64xf32>
    %368 = vector.broadcast %366 : vector<1x64xf32> to vector<8x64xf32>
    %369 = arith.mulf %367, %368 : vector<8x64xf32>
    %370 = arith.addf %364, %369 : vector<8x64xf32>
    %371 = vector.extract_strided_slice %361 {offsets = [0, 1], sizes = [8, 1], strides = [1, 1]} : vector<8x8xf32> to vector<8x1xf32>
    %372 = vector.extract_strided_slice %4 {offsets = [1, 0], sizes = [1, 64], strides = [1, 1]} : vector<8x64xf32> to vector<1x64xf32>
    %373 = vector.broadcast %371 : vector<8x1xf32> to vector<8x64xf32>
    %374 = vector.broadcast %372 : vector<1x64xf32> to vector<8x64xf32>
    %375 = arith.mulf %373, %374 : vector<8x64xf32>
    %376 = arith.addf %370, %375 : vector<8x64xf32>
    %377 = vector.extract_strided_slice %361 {offsets = [0, 2], sizes = [8, 1], strides = [1, 1]} : vector<8x8xf32> to vector<8x1xf32>
    %378 = vector.extract_strided_slice %4 {offsets = [2, 0], sizes = [1, 64], strides = [1, 1]} : vector<8x64xf32> to vector<1x64xf32>
    %379 = vector.broadcast %377 : vector<8x1xf32> to vector<8x64xf32>
    %380 = vector.broadcast %378 : vector<1x64xf32> to vector<8x64xf32>
    %381 = arith.mulf %379, %380 : vector<8x64xf32>
    %382 = arith.addf %376, %381 : vector<8x64xf32>
    %383 = vector.extract_strided_slice %361 {offsets = [0, 3], sizes = [8, 1], strides = [1, 1]} : vector<8x8xf32> to vector<8x1xf32>
    %384 = vector.extract_strided_slice %4 {offsets = [3, 0], sizes = [1, 64], strides = [1, 1]} : vector<8x64xf32> to vector<1x64xf32>
    %385 = vector.broadcast %383 : vector<8x1xf32> to vector<8x64xf32>
    %386 = vector.broadcast %384 : vector<1x64xf32> to vector<8x64xf32>
    %387 = arith.mulf %385, %386 : vector<8x64xf32>
    %388 = arith.addf %382, %387 : vector<8x64xf32>
    %389 = vector.extract_strided_slice %361 {offsets = [0, 4], sizes = [8, 1], strides = [1, 1]} : vector<8x8xf32> to vector<8x1xf32>
    %390 = vector.extract_strided_slice %4 {offsets = [4, 0], sizes = [1, 64], strides = [1, 1]} : vector<8x64xf32> to vector<1x64xf32>
    %391 = vector.broadcast %389 : vector<8x1xf32> to vector<8x64xf32>
    %392 = vector.broadcast %390 : vector<1x64xf32> to vector<8x64xf32>
    %393 = arith.mulf %391, %392 : vector<8x64xf32>
    %394 = arith.addf %388, %393 : vector<8x64xf32>
    %395 = vector.extract_strided_slice %361 {offsets = [0, 5], sizes = [8, 1], strides = [1, 1]} : vector<8x8xf32> to vector<8x1xf32>
    %396 = vector.extract_strided_slice %4 {offsets = [5, 0], sizes = [1, 64], strides = [1, 1]} : vector<8x64xf32> to vector<1x64xf32>
    %397 = vector.broadcast %395 : vector<8x1xf32> to vector<8x64xf32>
    %398 = vector.broadcast %396 : vector<1x64xf32> to vector<8x64xf32>
    %399 = arith.mulf %397, %398 : vector<8x64xf32>
    %400 = arith.addf %394, %399 : vector<8x64xf32>
    %401 = vector.extract_strided_slice %361 {offsets = [0, 6], sizes = [8, 1], strides = [1, 1]} : vector<8x8xf32> to vector<8x1xf32>
    %402 = vector.extract_strided_slice %4 {offsets = [6, 0], sizes = [1, 64], strides = [1, 1]} : vector<8x64xf32> to vector<1x64xf32>
    %403 = vector.broadcast %401 : vector<8x1xf32> to vector<8x64xf32>
    %404 = vector.broadcast %402 : vector<1x64xf32> to vector<8x64xf32>
    %405 = arith.mulf %403, %404 : vector<8x64xf32>
    %406 = arith.addf %400, %405 : vector<8x64xf32>
    %407 = vector.extract_strided_slice %361 {offsets = [0, 7], sizes = [8, 1], strides = [1, 1]} : vector<8x8xf32> to vector<8x1xf32>
    %408 = vector.extract_strided_slice %4 {offsets = [7, 0], sizes = [1, 64], strides = [1, 1]} : vector<8x64xf32> to vector<1x64xf32>
    %409 = vector.broadcast %407 : vector<8x1xf32> to vector<8x64xf32>
    %410 = vector.broadcast %408 : vector<1x64xf32> to vector<8x64xf32>
    %411 = arith.mulf %409, %410 : vector<8x64xf32>
    %412 = arith.addf %406, %411 : vector<8x64xf32>
    %413 = math.exp %412 : vector<8x64xf32>
    %cst_79 = arith.constant 1.000000e+00 : f32
    %414 = vector.broadcast %cst_79 : f32 to vector<8x64xf32>
    %415 = arith.addf %414, %413 : vector<8x64xf32>
    %cst_80 = arith.constant 2.000000e+00 : f32
    %416 = vector.broadcast %cst_80 : f32 to vector<8x64xf32>
    %417 = arith.mulf %416, %412 : vector<8x64xf32>
    %418 = arith.mulf %415, %415 : vector<8x64xf32>
    %cst_81 = arith.constant 1.000000e+00 : f32
    %419 = vector.broadcast %cst_81 : f32 to vector<8x64xf32>
    %420 = arith.addf %418, %419 : vector<8x64xf32>
    %421 = tpu.reciprocal %420 {approx = true} : vector<8x64xf32> -> vector<8x64xf32>
    %422 = arith.mulf %417, %421 : vector<8x64xf32>
    %423 = arith.subf %412, %422 : vector<8x64xf32>
    %cst_82 = arith.constant dense<0.000000e+00> : vector<8x64xf32>
    %424 = tpu.matmul %423, %5, %cst_82 {dimension_numbers = #tpu.dot_dimension_numbers<[1], [0], [0], [1], [0, 0, 1, 1], [], []>} : vector<8x64xf32>, vector<64x64xf32>, vector<8x64xf32> -> vector<8x64xf32>
    %425 = vector.broadcast %6 : vector<1x64xf32> to vector<8x64xf32>
    %426 = arith.addf %424, %425 : vector<8x64xf32>
    %427 = math.exp %426 : vector<8x64xf32>
    %cst_83 = arith.constant 1.000000e+00 : f32
    %428 = vector.broadcast %cst_83 : f32 to vector<8x64xf32>
    %429 = arith.addf %428, %427 : vector<8x64xf32>
    %cst_84 = arith.constant 2.000000e+00 : f32
    %430 = vector.broadcast %cst_84 : f32 to vector<8x64xf32>
    %431 = arith.mulf %430, %426 : vector<8x64xf32>
    %432 = arith.mulf %429, %429 : vector<8x64xf32>
    %cst_85 = arith.constant 1.000000e+00 : f32
    %433 = vector.broadcast %cst_85 : f32 to vector<8x64xf32>
    %434 = arith.addf %432, %433 : vector<8x64xf32>
    %435 = tpu.reciprocal %434 {approx = true} : vector<8x64xf32> -> vector<8x64xf32>
    %436 = arith.mulf %431, %435 : vector<8x64xf32>
    %437 = arith.subf %426, %436 : vector<8x64xf32>
    %cst_86 = arith.constant dense<0.000000e+00> : vector<8x64xf32>
    %438 = tpu.matmul %437, %7, %cst_86 {dimension_numbers = #tpu.dot_dimension_numbers<[1], [0], [0], [1], [0, 0, 1, 1], [], []>} : vector<8x64xf32>, vector<64x64xf32>, vector<8x64xf32> -> vector<8x64xf32>
    %439 = vector.broadcast %8 : vector<1x64xf32> to vector<8x64xf32>
    %440 = arith.addf %438, %439 : vector<8x64xf32>
    %441 = math.exp %440 : vector<8x64xf32>
    %cst_87 = arith.constant 1.000000e+00 : f32
    %442 = vector.broadcast %cst_87 : f32 to vector<8x64xf32>
    %443 = arith.addf %442, %441 : vector<8x64xf32>
    %cst_88 = arith.constant 2.000000e+00 : f32
    %444 = vector.broadcast %cst_88 : f32 to vector<8x64xf32>
    %445 = arith.mulf %444, %440 : vector<8x64xf32>
    %446 = arith.mulf %443, %443 : vector<8x64xf32>
    %cst_89 = arith.constant 1.000000e+00 : f32
    %447 = vector.broadcast %cst_89 : f32 to vector<8x64xf32>
    %448 = arith.addf %446, %447 : vector<8x64xf32>
    %449 = tpu.reciprocal %448 {approx = true} : vector<8x64xf32> -> vector<8x64xf32>
    %450 = arith.mulf %445, %449 : vector<8x64xf32>
    %451 = arith.subf %440, %450 : vector<8x64xf32>
    %cst_90 = arith.constant dense<0.000000e+00> : vector<8x8xf32>
    %452 = tpu.matmul %451, %9, %cst_90 {dimension_numbers = #tpu.dot_dimension_numbers<[1], [0], [0], [1], [0, 0, 1, 1], [], []>} : vector<8x64xf32>, vector<64x8xf32>, vector<8x8xf32> -> vector<8x8xf32>
    %453 = vector.broadcast %10 : vector<1x8xf32> to vector<8x8xf32>
    %454 = arith.addf %452, %453 : vector<8x8xf32>
    %c15 = arith.constant 15 : index
    %455 = memref.load %arg0[%c15] : memref<50xf32, #tpu.memory_space<smem>>
    %c16 = arith.constant 16 : index
    %456 = memref.load %arg0[%c16] : memref<50xf32, #tpu.memory_space<smem>>
    %c17 = arith.constant 17 : index
    %457 = memref.load %arg0[%c17] : memref<50xf32, #tpu.memory_space<smem>>
    %c18 = arith.constant 18 : index
    %458 = memref.load %arg0[%c18] : memref<50xf32, #tpu.memory_space<smem>>
    %c19 = arith.constant 19 : index
    %459 = memref.load %arg0[%c19] : memref<50xf32, #tpu.memory_space<smem>>
    %460 = vector.broadcast %455 : f32 to vector<8x8xf32>
    %461 = arith.mulf %460, %361 : vector<8x8xf32>
    %462 = vector.broadcast %456 : f32 to vector<8x8xf32>
    %463 = arith.mulf %462, %454 : vector<8x8xf32>
    %464 = arith.subf %461, %463 : vector<8x8xf32>
    %cst_91 = arith.constant -1.000000e+00 : f32
    %cst_92 = arith.constant 1.000000e+00 : f32
    %465 = vector.broadcast %cst_91 : f32 to vector<8x8xf32>
    %466 = arith.maximumf %465, %464 : vector<8x8xf32>
    %467 = vector.broadcast %cst_92 : f32 to vector<8x8xf32>
    %468 = arith.minimumf %467, %466 : vector<8x8xf32>
    %469 = vector.broadcast %457 : f32 to vector<8x8xf32>
    %470 = arith.mulf %469, %468 : vector<8x8xf32>
    %471 = vector.broadcast %458 : f32 to vector<8x8xf32>
    %472 = arith.mulf %471, %361 : vector<8x8xf32>
    %473 = arith.addf %470, %472 : vector<8x8xf32>
    %c3_93 = arith.constant 3 : index
    %c0_94 = arith.constant 0 : index
    %c0_95 = arith.constant 0 : index
    %474 = vector.load %arg2[%c3_93, %c0_94, %c0_95] : memref<10x8x8xf32, #tpu.memory_space<vmem>>, vector<1x8x8xf32>
    %475 = vector.shape_cast %474 : vector<1x8x8xf32> to vector<8x8xf32>
    %476 = vector.broadcast %459 : f32 to vector<8x8xf32>
    %477 = arith.mulf %476, %475 : vector<8x8xf32>
    %478 = arith.addf %473, %477 : vector<8x8xf32>
    %c4_96 = arith.constant 4 : index
    %c0_97 = arith.constant 0 : index
    %479 = vector.load %arg1[%c4_96, %c0_97] : memref<10x64xf32, #tpu.memory_space<vmem>>, vector<1x64xf32>
    %480 = vector.broadcast %479 : vector<1x64xf32> to vector<8x64xf32>
    %481 = arith.addf %3, %480 : vector<8x64xf32>
    %482 = vector.extract_strided_slice %478 {offsets = [0, 0], sizes = [8, 1], strides = [1, 1]} : vector<8x8xf32> to vector<8x1xf32>
    %483 = vector.extract_strided_slice %4 {offsets = [0, 0], sizes = [1, 64], strides = [1, 1]} : vector<8x64xf32> to vector<1x64xf32>
    %484 = vector.broadcast %482 : vector<8x1xf32> to vector<8x64xf32>
    %485 = vector.broadcast %483 : vector<1x64xf32> to vector<8x64xf32>
    %486 = arith.mulf %484, %485 : vector<8x64xf32>
    %487 = arith.addf %481, %486 : vector<8x64xf32>
    %488 = vector.extract_strided_slice %478 {offsets = [0, 1], sizes = [8, 1], strides = [1, 1]} : vector<8x8xf32> to vector<8x1xf32>
    %489 = vector.extract_strided_slice %4 {offsets = [1, 0], sizes = [1, 64], strides = [1, 1]} : vector<8x64xf32> to vector<1x64xf32>
    %490 = vector.broadcast %488 : vector<8x1xf32> to vector<8x64xf32>
    %491 = vector.broadcast %489 : vector<1x64xf32> to vector<8x64xf32>
    %492 = arith.mulf %490, %491 : vector<8x64xf32>
    %493 = arith.addf %487, %492 : vector<8x64xf32>
    %494 = vector.extract_strided_slice %478 {offsets = [0, 2], sizes = [8, 1], strides = [1, 1]} : vector<8x8xf32> to vector<8x1xf32>
    %495 = vector.extract_strided_slice %4 {offsets = [2, 0], sizes = [1, 64], strides = [1, 1]} : vector<8x64xf32> to vector<1x64xf32>
    %496 = vector.broadcast %494 : vector<8x1xf32> to vector<8x64xf32>
    %497 = vector.broadcast %495 : vector<1x64xf32> to vector<8x64xf32>
    %498 = arith.mulf %496, %497 : vector<8x64xf32>
    %499 = arith.addf %493, %498 : vector<8x64xf32>
    %500 = vector.extract_strided_slice %478 {offsets = [0, 3], sizes = [8, 1], strides = [1, 1]} : vector<8x8xf32> to vector<8x1xf32>
    %501 = vector.extract_strided_slice %4 {offsets = [3, 0], sizes = [1, 64], strides = [1, 1]} : vector<8x64xf32> to vector<1x64xf32>
    %502 = vector.broadcast %500 : vector<8x1xf32> to vector<8x64xf32>
    %503 = vector.broadcast %501 : vector<1x64xf32> to vector<8x64xf32>
    %504 = arith.mulf %502, %503 : vector<8x64xf32>
    %505 = arith.addf %499, %504 : vector<8x64xf32>
    %506 = vector.extract_strided_slice %478 {offsets = [0, 4], sizes = [8, 1], strides = [1, 1]} : vector<8x8xf32> to vector<8x1xf32>
    %507 = vector.extract_strided_slice %4 {offsets = [4, 0], sizes = [1, 64], strides = [1, 1]} : vector<8x64xf32> to vector<1x64xf32>
    %508 = vector.broadcast %506 : vector<8x1xf32> to vector<8x64xf32>
    %509 = vector.broadcast %507 : vector<1x64xf32> to vector<8x64xf32>
    %510 = arith.mulf %508, %509 : vector<8x64xf32>
    %511 = arith.addf %505, %510 : vector<8x64xf32>
    %512 = vector.extract_strided_slice %478 {offsets = [0, 5], sizes = [8, 1], strides = [1, 1]} : vector<8x8xf32> to vector<8x1xf32>
    %513 = vector.extract_strided_slice %4 {offsets = [5, 0], sizes = [1, 64], strides = [1, 1]} : vector<8x64xf32> to vector<1x64xf32>
    %514 = vector.broadcast %512 : vector<8x1xf32> to vector<8x64xf32>
    %515 = vector.broadcast %513 : vector<1x64xf32> to vector<8x64xf32>
    %516 = arith.mulf %514, %515 : vector<8x64xf32>
    %517 = arith.addf %511, %516 : vector<8x64xf32>
    %518 = vector.extract_strided_slice %478 {offsets = [0, 6], sizes = [8, 1], strides = [1, 1]} : vector<8x8xf32> to vector<8x1xf32>
    %519 = vector.extract_strided_slice %4 {offsets = [6, 0], sizes = [1, 64], strides = [1, 1]} : vector<8x64xf32> to vector<1x64xf32>
    %520 = vector.broadcast %518 : vector<8x1xf32> to vector<8x64xf32>
    %521 = vector.broadcast %519 : vector<1x64xf32> to vector<8x64xf32>
    %522 = arith.mulf %520, %521 : vector<8x64xf32>
    %523 = arith.addf %517, %522 : vector<8x64xf32>
    %524 = vector.extract_strided_slice %478 {offsets = [0, 7], sizes = [8, 1], strides = [1, 1]} : vector<8x8xf32> to vector<8x1xf32>
    %525 = vector.extract_strided_slice %4 {offsets = [7, 0], sizes = [1, 64], strides = [1, 1]} : vector<8x64xf32> to vector<1x64xf32>
    %526 = vector.broadcast %524 : vector<8x1xf32> to vector<8x64xf32>
    %527 = vector.broadcast %525 : vector<1x64xf32> to vector<8x64xf32>
    %528 = arith.mulf %526, %527 : vector<8x64xf32>
    %529 = arith.addf %523, %528 : vector<8x64xf32>
    %530 = math.exp %529 : vector<8x64xf32>
    %cst_98 = arith.constant 1.000000e+00 : f32
    %531 = vector.broadcast %cst_98 : f32 to vector<8x64xf32>
    %532 = arith.addf %531, %530 : vector<8x64xf32>
    %cst_99 = arith.constant 2.000000e+00 : f32
    %533 = vector.broadcast %cst_99 : f32 to vector<8x64xf32>
    %534 = arith.mulf %533, %529 : vector<8x64xf32>
    %535 = arith.mulf %532, %532 : vector<8x64xf32>
    %cst_100 = arith.constant 1.000000e+00 : f32
    %536 = vector.broadcast %cst_100 : f32 to vector<8x64xf32>
    %537 = arith.addf %535, %536 : vector<8x64xf32>
    %538 = tpu.reciprocal %537 {approx = true} : vector<8x64xf32> -> vector<8x64xf32>
    %539 = arith.mulf %534, %538 : vector<8x64xf32>
    %540 = arith.subf %529, %539 : vector<8x64xf32>
    %cst_101 = arith.constant dense<0.000000e+00> : vector<8x64xf32>
    %541 = tpu.matmul %540, %5, %cst_101 {dimension_numbers = #tpu.dot_dimension_numbers<[1], [0], [0], [1], [0, 0, 1, 1], [], []>} : vector<8x64xf32>, vector<64x64xf32>, vector<8x64xf32> -> vector<8x64xf32>
    %542 = vector.broadcast %6 : vector<1x64xf32> to vector<8x64xf32>
    %543 = arith.addf %541, %542 : vector<8x64xf32>
    %544 = math.exp %543 : vector<8x64xf32>
    %cst_102 = arith.constant 1.000000e+00 : f32
    %545 = vector.broadcast %cst_102 : f32 to vector<8x64xf32>
    %546 = arith.addf %545, %544 : vector<8x64xf32>
    %cst_103 = arith.constant 2.000000e+00 : f32
    %547 = vector.broadcast %cst_103 : f32 to vector<8x64xf32>
    %548 = arith.mulf %547, %543 : vector<8x64xf32>
    %549 = arith.mulf %546, %546 : vector<8x64xf32>
    %cst_104 = arith.constant 1.000000e+00 : f32
    %550 = vector.broadcast %cst_104 : f32 to vector<8x64xf32>
    %551 = arith.addf %549, %550 : vector<8x64xf32>
    %552 = tpu.reciprocal %551 {approx = true} : vector<8x64xf32> -> vector<8x64xf32>
    %553 = arith.mulf %548, %552 : vector<8x64xf32>
    %554 = arith.subf %543, %553 : vector<8x64xf32>
    %cst_105 = arith.constant dense<0.000000e+00> : vector<8x64xf32>
    %555 = tpu.matmul %554, %7, %cst_105 {dimension_numbers = #tpu.dot_dimension_numbers<[1], [0], [0], [1], [0, 0, 1, 1], [], []>} : vector<8x64xf32>, vector<64x64xf32>, vector<8x64xf32> -> vector<8x64xf32>
    %556 = vector.broadcast %8 : vector<1x64xf32> to vector<8x64xf32>
    %557 = arith.addf %555, %556 : vector<8x64xf32>
    %558 = math.exp %557 : vector<8x64xf32>
    %cst_106 = arith.constant 1.000000e+00 : f32
    %559 = vector.broadcast %cst_106 : f32 to vector<8x64xf32>
    %560 = arith.addf %559, %558 : vector<8x64xf32>
    %cst_107 = arith.constant 2.000000e+00 : f32
    %561 = vector.broadcast %cst_107 : f32 to vector<8x64xf32>
    %562 = arith.mulf %561, %557 : vector<8x64xf32>
    %563 = arith.mulf %560, %560 : vector<8x64xf32>
    %cst_108 = arith.constant 1.000000e+00 : f32
    %564 = vector.broadcast %cst_108 : f32 to vector<8x64xf32>
    %565 = arith.addf %563, %564 : vector<8x64xf32>
    %566 = tpu.reciprocal %565 {approx = true} : vector<8x64xf32> -> vector<8x64xf32>
    %567 = arith.mulf %562, %566 : vector<8x64xf32>
    %568 = arith.subf %557, %567 : vector<8x64xf32>
    %cst_109 = arith.constant dense<0.000000e+00> : vector<8x8xf32>
    %569 = tpu.matmul %568, %9, %cst_109 {dimension_numbers = #tpu.dot_dimension_numbers<[1], [0], [0], [1], [0, 0, 1, 1], [], []>} : vector<8x64xf32>, vector<64x8xf32>, vector<8x8xf32> -> vector<8x8xf32>
    %570 = vector.broadcast %10 : vector<1x8xf32> to vector<8x8xf32>
    %571 = arith.addf %569, %570 : vector<8x8xf32>
    %c20 = arith.constant 20 : index
    %572 = memref.load %arg0[%c20] : memref<50xf32, #tpu.memory_space<smem>>
    %c21 = arith.constant 21 : index
    %573 = memref.load %arg0[%c21] : memref<50xf32, #tpu.memory_space<smem>>
    %c22 = arith.constant 22 : index
    %574 = memref.load %arg0[%c22] : memref<50xf32, #tpu.memory_space<smem>>
    %c23 = arith.constant 23 : index
    %575 = memref.load %arg0[%c23] : memref<50xf32, #tpu.memory_space<smem>>
    %c24 = arith.constant 24 : index
    %576 = memref.load %arg0[%c24] : memref<50xf32, #tpu.memory_space<smem>>
    %577 = vector.broadcast %572 : f32 to vector<8x8xf32>
    %578 = arith.mulf %577, %478 : vector<8x8xf32>
    %579 = vector.broadcast %573 : f32 to vector<8x8xf32>
    %580 = arith.mulf %579, %571 : vector<8x8xf32>
    %581 = arith.subf %578, %580 : vector<8x8xf32>
    %cst_110 = arith.constant -1.000000e+00 : f32
    %cst_111 = arith.constant 1.000000e+00 : f32
    %582 = vector.broadcast %cst_110 : f32 to vector<8x8xf32>
    %583 = arith.maximumf %582, %581 : vector<8x8xf32>
    %584 = vector.broadcast %cst_111 : f32 to vector<8x8xf32>
    %585 = arith.minimumf %584, %583 : vector<8x8xf32>
    %586 = vector.broadcast %574 : f32 to vector<8x8xf32>
    %587 = arith.mulf %586, %585 : vector<8x8xf32>
    %588 = vector.broadcast %575 : f32 to vector<8x8xf32>
    %589 = arith.mulf %588, %478 : vector<8x8xf32>
    %590 = arith.addf %587, %589 : vector<8x8xf32>
    %c4_112 = arith.constant 4 : index
    %c0_113 = arith.constant 0 : index
    %c0_114 = arith.constant 0 : index
    %591 = vector.load %arg2[%c4_112, %c0_113, %c0_114] : memref<10x8x8xf32, #tpu.memory_space<vmem>>, vector<1x8x8xf32>
    %592 = vector.shape_cast %591 : vector<1x8x8xf32> to vector<8x8xf32>
    %593 = vector.broadcast %576 : f32 to vector<8x8xf32>
    %594 = arith.mulf %593, %592 : vector<8x8xf32>
    %595 = arith.addf %590, %594 : vector<8x8xf32>
    %c5_115 = arith.constant 5 : index
    %c0_116 = arith.constant 0 : index
    %596 = vector.load %arg1[%c5_115, %c0_116] : memref<10x64xf32, #tpu.memory_space<vmem>>, vector<1x64xf32>
    %597 = vector.broadcast %596 : vector<1x64xf32> to vector<8x64xf32>
    %598 = arith.addf %3, %597 : vector<8x64xf32>
    %599 = vector.extract_strided_slice %595 {offsets = [0, 0], sizes = [8, 1], strides = [1, 1]} : vector<8x8xf32> to vector<8x1xf32>
    %600 = vector.extract_strided_slice %4 {offsets = [0, 0], sizes = [1, 64], strides = [1, 1]} : vector<8x64xf32> to vector<1x64xf32>
    %601 = vector.broadcast %599 : vector<8x1xf32> to vector<8x64xf32>
    %602 = vector.broadcast %600 : vector<1x64xf32> to vector<8x64xf32>
    %603 = arith.mulf %601, %602 : vector<8x64xf32>
    %604 = arith.addf %598, %603 : vector<8x64xf32>
    %605 = vector.extract_strided_slice %595 {offsets = [0, 1], sizes = [8, 1], strides = [1, 1]} : vector<8x8xf32> to vector<8x1xf32>
    %606 = vector.extract_strided_slice %4 {offsets = [1, 0], sizes = [1, 64], strides = [1, 1]} : vector<8x64xf32> to vector<1x64xf32>
    %607 = vector.broadcast %605 : vector<8x1xf32> to vector<8x64xf32>
    %608 = vector.broadcast %606 : vector<1x64xf32> to vector<8x64xf32>
    %609 = arith.mulf %607, %608 : vector<8x64xf32>
    %610 = arith.addf %604, %609 : vector<8x64xf32>
    %611 = vector.extract_strided_slice %595 {offsets = [0, 2], sizes = [8, 1], strides = [1, 1]} : vector<8x8xf32> to vector<8x1xf32>
    %612 = vector.extract_strided_slice %4 {offsets = [2, 0], sizes = [1, 64], strides = [1, 1]} : vector<8x64xf32> to vector<1x64xf32>
    %613 = vector.broadcast %611 : vector<8x1xf32> to vector<8x64xf32>
    %614 = vector.broadcast %612 : vector<1x64xf32> to vector<8x64xf32>
    %615 = arith.mulf %613, %614 : vector<8x64xf32>
    %616 = arith.addf %610, %615 : vector<8x64xf32>
    %617 = vector.extract_strided_slice %595 {offsets = [0, 3], sizes = [8, 1], strides = [1, 1]} : vector<8x8xf32> to vector<8x1xf32>
    %618 = vector.extract_strided_slice %4 {offsets = [3, 0], sizes = [1, 64], strides = [1, 1]} : vector<8x64xf32> to vector<1x64xf32>
    %619 = vector.broadcast %617 : vector<8x1xf32> to vector<8x64xf32>
    %620 = vector.broadcast %618 : vector<1x64xf32> to vector<8x64xf32>
    %621 = arith.mulf %619, %620 : vector<8x64xf32>
    %622 = arith.addf %616, %621 : vector<8x64xf32>
    %623 = vector.extract_strided_slice %595 {offsets = [0, 4], sizes = [8, 1], strides = [1, 1]} : vector<8x8xf32> to vector<8x1xf32>
    %624 = vector.extract_strided_slice %4 {offsets = [4, 0], sizes = [1, 64], strides = [1, 1]} : vector<8x64xf32> to vector<1x64xf32>
    %625 = vector.broadcast %623 : vector<8x1xf32> to vector<8x64xf32>
    %626 = vector.broadcast %624 : vector<1x64xf32> to vector<8x64xf32>
    %627 = arith.mulf %625, %626 : vector<8x64xf32>
    %628 = arith.addf %622, %627 : vector<8x64xf32>
    %629 = vector.extract_strided_slice %595 {offsets = [0, 5], sizes = [8, 1], strides = [1, 1]} : vector<8x8xf32> to vector<8x1xf32>
    %630 = vector.extract_strided_slice %4 {offsets = [5, 0], sizes = [1, 64], strides = [1, 1]} : vector<8x64xf32> to vector<1x64xf32>
    %631 = vector.broadcast %629 : vector<8x1xf32> to vector<8x64xf32>
    %632 = vector.broadcast %630 : vector<1x64xf32> to vector<8x64xf32>
    %633 = arith.mulf %631, %632 : vector<8x64xf32>
    %634 = arith.addf %628, %633 : vector<8x64xf32>
    %635 = vector.extract_strided_slice %595 {offsets = [0, 6], sizes = [8, 1], strides = [1, 1]} : vector<8x8xf32> to vector<8x1xf32>
    %636 = vector.extract_strided_slice %4 {offsets = [6, 0], sizes = [1, 64], strides = [1, 1]} : vector<8x64xf32> to vector<1x64xf32>
    %637 = vector.broadcast %635 : vector<8x1xf32> to vector<8x64xf32>
    %638 = vector.broadcast %636 : vector<1x64xf32> to vector<8x64xf32>
    %639 = arith.mulf %637, %638 : vector<8x64xf32>
    %640 = arith.addf %634, %639 : vector<8x64xf32>
    %641 = vector.extract_strided_slice %595 {offsets = [0, 7], sizes = [8, 1], strides = [1, 1]} : vector<8x8xf32> to vector<8x1xf32>
    %642 = vector.extract_strided_slice %4 {offsets = [7, 0], sizes = [1, 64], strides = [1, 1]} : vector<8x64xf32> to vector<1x64xf32>
    %643 = vector.broadcast %641 : vector<8x1xf32> to vector<8x64xf32>
    %644 = vector.broadcast %642 : vector<1x64xf32> to vector<8x64xf32>
    %645 = arith.mulf %643, %644 : vector<8x64xf32>
    %646 = arith.addf %640, %645 : vector<8x64xf32>
    %647 = math.exp %646 : vector<8x64xf32>
    %cst_117 = arith.constant 1.000000e+00 : f32
    %648 = vector.broadcast %cst_117 : f32 to vector<8x64xf32>
    %649 = arith.addf %648, %647 : vector<8x64xf32>
    %cst_118 = arith.constant 2.000000e+00 : f32
    %650 = vector.broadcast %cst_118 : f32 to vector<8x64xf32>
    %651 = arith.mulf %650, %646 : vector<8x64xf32>
    %652 = arith.mulf %649, %649 : vector<8x64xf32>
    %cst_119 = arith.constant 1.000000e+00 : f32
    %653 = vector.broadcast %cst_119 : f32 to vector<8x64xf32>
    %654 = arith.addf %652, %653 : vector<8x64xf32>
    %655 = tpu.reciprocal %654 {approx = true} : vector<8x64xf32> -> vector<8x64xf32>
    %656 = arith.mulf %651, %655 : vector<8x64xf32>
    %657 = arith.subf %646, %656 : vector<8x64xf32>
    %cst_120 = arith.constant dense<0.000000e+00> : vector<8x64xf32>
    %658 = tpu.matmul %657, %5, %cst_120 {dimension_numbers = #tpu.dot_dimension_numbers<[1], [0], [0], [1], [0, 0, 1, 1], [], []>} : vector<8x64xf32>, vector<64x64xf32>, vector<8x64xf32> -> vector<8x64xf32>
    %659 = vector.broadcast %6 : vector<1x64xf32> to vector<8x64xf32>
    %660 = arith.addf %658, %659 : vector<8x64xf32>
    %661 = math.exp %660 : vector<8x64xf32>
    %cst_121 = arith.constant 1.000000e+00 : f32
    %662 = vector.broadcast %cst_121 : f32 to vector<8x64xf32>
    %663 = arith.addf %662, %661 : vector<8x64xf32>
    %cst_122 = arith.constant 2.000000e+00 : f32
    %664 = vector.broadcast %cst_122 : f32 to vector<8x64xf32>
    %665 = arith.mulf %664, %660 : vector<8x64xf32>
    %666 = arith.mulf %663, %663 : vector<8x64xf32>
    %cst_123 = arith.constant 1.000000e+00 : f32
    %667 = vector.broadcast %cst_123 : f32 to vector<8x64xf32>
    %668 = arith.addf %666, %667 : vector<8x64xf32>
    %669 = tpu.reciprocal %668 {approx = true} : vector<8x64xf32> -> vector<8x64xf32>
    %670 = arith.mulf %665, %669 : vector<8x64xf32>
    %671 = arith.subf %660, %670 : vector<8x64xf32>
    %cst_124 = arith.constant dense<0.000000e+00> : vector<8x64xf32>
    %672 = tpu.matmul %671, %7, %cst_124 {dimension_numbers = #tpu.dot_dimension_numbers<[1], [0], [0], [1], [0, 0, 1, 1], [], []>} : vector<8x64xf32>, vector<64x64xf32>, vector<8x64xf32> -> vector<8x64xf32>
    %673 = vector.broadcast %8 : vector<1x64xf32> to vector<8x64xf32>
    %674 = arith.addf %672, %673 : vector<8x64xf32>
    %675 = math.exp %674 : vector<8x64xf32>
    %cst_125 = arith.constant 1.000000e+00 : f32
    %676 = vector.broadcast %cst_125 : f32 to vector<8x64xf32>
    %677 = arith.addf %676, %675 : vector<8x64xf32>
    %cst_126 = arith.constant 2.000000e+00 : f32
    %678 = vector.broadcast %cst_126 : f32 to vector<8x64xf32>
    %679 = arith.mulf %678, %674 : vector<8x64xf32>
    %680 = arith.mulf %677, %677 : vector<8x64xf32>
    %cst_127 = arith.constant 1.000000e+00 : f32
    %681 = vector.broadcast %cst_127 : f32 to vector<8x64xf32>
    %682 = arith.addf %680, %681 : vector<8x64xf32>
    %683 = tpu.reciprocal %682 {approx = true} : vector<8x64xf32> -> vector<8x64xf32>
    %684 = arith.mulf %679, %683 : vector<8x64xf32>
    %685 = arith.subf %674, %684 : vector<8x64xf32>
    %cst_128 = arith.constant dense<0.000000e+00> : vector<8x8xf32>
    %686 = tpu.matmul %685, %9, %cst_128 {dimension_numbers = #tpu.dot_dimension_numbers<[1], [0], [0], [1], [0, 0, 1, 1], [], []>} : vector<8x64xf32>, vector<64x8xf32>, vector<8x8xf32> -> vector<8x8xf32>
    %687 = vector.broadcast %10 : vector<1x8xf32> to vector<8x8xf32>
    %688 = arith.addf %686, %687 : vector<8x8xf32>
    %c25 = arith.constant 25 : index
    %689 = memref.load %arg0[%c25] : memref<50xf32, #tpu.memory_space<smem>>
    %c26 = arith.constant 26 : index
    %690 = memref.load %arg0[%c26] : memref<50xf32, #tpu.memory_space<smem>>
    %c27 = arith.constant 27 : index
    %691 = memref.load %arg0[%c27] : memref<50xf32, #tpu.memory_space<smem>>
    %c28 = arith.constant 28 : index
    %692 = memref.load %arg0[%c28] : memref<50xf32, #tpu.memory_space<smem>>
    %c29 = arith.constant 29 : index
    %693 = memref.load %arg0[%c29] : memref<50xf32, #tpu.memory_space<smem>>
    %694 = vector.broadcast %689 : f32 to vector<8x8xf32>
    %695 = arith.mulf %694, %595 : vector<8x8xf32>
    %696 = vector.broadcast %690 : f32 to vector<8x8xf32>
    %697 = arith.mulf %696, %688 : vector<8x8xf32>
    %698 = arith.subf %695, %697 : vector<8x8xf32>
    %cst_129 = arith.constant -1.000000e+00 : f32
    %cst_130 = arith.constant 1.000000e+00 : f32
    %699 = vector.broadcast %cst_129 : f32 to vector<8x8xf32>
    %700 = arith.maximumf %699, %698 : vector<8x8xf32>
    %701 = vector.broadcast %cst_130 : f32 to vector<8x8xf32>
    %702 = arith.minimumf %701, %700 : vector<8x8xf32>
    %703 = vector.broadcast %691 : f32 to vector<8x8xf32>
    %704 = arith.mulf %703, %702 : vector<8x8xf32>
    %705 = vector.broadcast %692 : f32 to vector<8x8xf32>
    %706 = arith.mulf %705, %595 : vector<8x8xf32>
    %707 = arith.addf %704, %706 : vector<8x8xf32>
    %c5_131 = arith.constant 5 : index
    %c0_132 = arith.constant 0 : index
    %c0_133 = arith.constant 0 : index
    %708 = vector.load %arg2[%c5_131, %c0_132, %c0_133] : memref<10x8x8xf32, #tpu.memory_space<vmem>>, vector<1x8x8xf32>
    %709 = vector.shape_cast %708 : vector<1x8x8xf32> to vector<8x8xf32>
    %710 = vector.broadcast %693 : f32 to vector<8x8xf32>
    %711 = arith.mulf %710, %709 : vector<8x8xf32>
    %712 = arith.addf %707, %711 : vector<8x8xf32>
    %c6_134 = arith.constant 6 : index
    %c0_135 = arith.constant 0 : index
    %713 = vector.load %arg1[%c6_134, %c0_135] : memref<10x64xf32, #tpu.memory_space<vmem>>, vector<1x64xf32>
    %714 = vector.broadcast %713 : vector<1x64xf32> to vector<8x64xf32>
    %715 = arith.addf %3, %714 : vector<8x64xf32>
    %716 = vector.extract_strided_slice %712 {offsets = [0, 0], sizes = [8, 1], strides = [1, 1]} : vector<8x8xf32> to vector<8x1xf32>
    %717 = vector.extract_strided_slice %4 {offsets = [0, 0], sizes = [1, 64], strides = [1, 1]} : vector<8x64xf32> to vector<1x64xf32>
    %718 = vector.broadcast %716 : vector<8x1xf32> to vector<8x64xf32>
    %719 = vector.broadcast %717 : vector<1x64xf32> to vector<8x64xf32>
    %720 = arith.mulf %718, %719 : vector<8x64xf32>
    %721 = arith.addf %715, %720 : vector<8x64xf32>
    %722 = vector.extract_strided_slice %712 {offsets = [0, 1], sizes = [8, 1], strides = [1, 1]} : vector<8x8xf32> to vector<8x1xf32>
    %723 = vector.extract_strided_slice %4 {offsets = [1, 0], sizes = [1, 64], strides = [1, 1]} : vector<8x64xf32> to vector<1x64xf32>
    %724 = vector.broadcast %722 : vector<8x1xf32> to vector<8x64xf32>
    %725 = vector.broadcast %723 : vector<1x64xf32> to vector<8x64xf32>
    %726 = arith.mulf %724, %725 : vector<8x64xf32>
    %727 = arith.addf %721, %726 : vector<8x64xf32>
    %728 = vector.extract_strided_slice %712 {offsets = [0, 2], sizes = [8, 1], strides = [1, 1]} : vector<8x8xf32> to vector<8x1xf32>
    %729 = vector.extract_strided_slice %4 {offsets = [2, 0], sizes = [1, 64], strides = [1, 1]} : vector<8x64xf32> to vector<1x64xf32>
    %730 = vector.broadcast %728 : vector<8x1xf32> to vector<8x64xf32>
    %731 = vector.broadcast %729 : vector<1x64xf32> to vector<8x64xf32>
    %732 = arith.mulf %730, %731 : vector<8x64xf32>
    %733 = arith.addf %727, %732 : vector<8x64xf32>
    %734 = vector.extract_strided_slice %712 {offsets = [0, 3], sizes = [8, 1], strides = [1, 1]} : vector<8x8xf32> to vector<8x1xf32>
    %735 = vector.extract_strided_slice %4 {offsets = [3, 0], sizes = [1, 64], strides = [1, 1]} : vector<8x64xf32> to vector<1x64xf32>
    %736 = vector.broadcast %734 : vector<8x1xf32> to vector<8x64xf32>
    %737 = vector.broadcast %735 : vector<1x64xf32> to vector<8x64xf32>
    %738 = arith.mulf %736, %737 : vector<8x64xf32>
    %739 = arith.addf %733, %738 : vector<8x64xf32>
    %740 = vector.extract_strided_slice %712 {offsets = [0, 4], sizes = [8, 1], strides = [1, 1]} : vector<8x8xf32> to vector<8x1xf32>
    %741 = vector.extract_strided_slice %4 {offsets = [4, 0], sizes = [1, 64], strides = [1, 1]} : vector<8x64xf32> to vector<1x64xf32>
    %742 = vector.broadcast %740 : vector<8x1xf32> to vector<8x64xf32>
    %743 = vector.broadcast %741 : vector<1x64xf32> to vector<8x64xf32>
    %744 = arith.mulf %742, %743 : vector<8x64xf32>
    %745 = arith.addf %739, %744 : vector<8x64xf32>
    %746 = vector.extract_strided_slice %712 {offsets = [0, 5], sizes = [8, 1], strides = [1, 1]} : vector<8x8xf32> to vector<8x1xf32>
    %747 = vector.extract_strided_slice %4 {offsets = [5, 0], sizes = [1, 64], strides = [1, 1]} : vector<8x64xf32> to vector<1x64xf32>
    %748 = vector.broadcast %746 : vector<8x1xf32> to vector<8x64xf32>
    %749 = vector.broadcast %747 : vector<1x64xf32> to vector<8x64xf32>
    %750 = arith.mulf %748, %749 : vector<8x64xf32>
    %751 = arith.addf %745, %750 : vector<8x64xf32>
    %752 = vector.extract_strided_slice %712 {offsets = [0, 6], sizes = [8, 1], strides = [1, 1]} : vector<8x8xf32> to vector<8x1xf32>
    %753 = vector.extract_strided_slice %4 {offsets = [6, 0], sizes = [1, 64], strides = [1, 1]} : vector<8x64xf32> to vector<1x64xf32>
    %754 = vector.broadcast %752 : vector<8x1xf32> to vector<8x64xf32>
    %755 = vector.broadcast %753 : vector<1x64xf32> to vector<8x64xf32>
    %756 = arith.mulf %754, %755 : vector<8x64xf32>
    %757 = arith.addf %751, %756 : vector<8x64xf32>
    %758 = vector.extract_strided_slice %712 {offsets = [0, 7], sizes = [8, 1], strides = [1, 1]} : vector<8x8xf32> to vector<8x1xf32>
    %759 = vector.extract_strided_slice %4 {offsets = [7, 0], sizes = [1, 64], strides = [1, 1]} : vector<8x64xf32> to vector<1x64xf32>
    %760 = vector.broadcast %758 : vector<8x1xf32> to vector<8x64xf32>
    %761 = vector.broadcast %759 : vector<1x64xf32> to vector<8x64xf32>
    %762 = arith.mulf %760, %761 : vector<8x64xf32>
    %763 = arith.addf %757, %762 : vector<8x64xf32>
    %764 = math.exp %763 : vector<8x64xf32>
    %cst_136 = arith.constant 1.000000e+00 : f32
    %765 = vector.broadcast %cst_136 : f32 to vector<8x64xf32>
    %766 = arith.addf %765, %764 : vector<8x64xf32>
    %cst_137 = arith.constant 2.000000e+00 : f32
    %767 = vector.broadcast %cst_137 : f32 to vector<8x64xf32>
    %768 = arith.mulf %767, %763 : vector<8x64xf32>
    %769 = arith.mulf %766, %766 : vector<8x64xf32>
    %cst_138 = arith.constant 1.000000e+00 : f32
    %770 = vector.broadcast %cst_138 : f32 to vector<8x64xf32>
    %771 = arith.addf %769, %770 : vector<8x64xf32>
    %772 = tpu.reciprocal %771 {approx = true} : vector<8x64xf32> -> vector<8x64xf32>
    %773 = arith.mulf %768, %772 : vector<8x64xf32>
    %774 = arith.subf %763, %773 : vector<8x64xf32>
    %cst_139 = arith.constant dense<0.000000e+00> : vector<8x64xf32>
    %775 = tpu.matmul %774, %5, %cst_139 {dimension_numbers = #tpu.dot_dimension_numbers<[1], [0], [0], [1], [0, 0, 1, 1], [], []>} : vector<8x64xf32>, vector<64x64xf32>, vector<8x64xf32> -> vector<8x64xf32>
    %776 = vector.broadcast %6 : vector<1x64xf32> to vector<8x64xf32>
    %777 = arith.addf %775, %776 : vector<8x64xf32>
    %778 = math.exp %777 : vector<8x64xf32>
    %cst_140 = arith.constant 1.000000e+00 : f32
    %779 = vector.broadcast %cst_140 : f32 to vector<8x64xf32>
    %780 = arith.addf %779, %778 : vector<8x64xf32>
    %cst_141 = arith.constant 2.000000e+00 : f32
    %781 = vector.broadcast %cst_141 : f32 to vector<8x64xf32>
    %782 = arith.mulf %781, %777 : vector<8x64xf32>
    %783 = arith.mulf %780, %780 : vector<8x64xf32>
    %cst_142 = arith.constant 1.000000e+00 : f32
    %784 = vector.broadcast %cst_142 : f32 to vector<8x64xf32>
    %785 = arith.addf %783, %784 : vector<8x64xf32>
    %786 = tpu.reciprocal %785 {approx = true} : vector<8x64xf32> -> vector<8x64xf32>
    %787 = arith.mulf %782, %786 : vector<8x64xf32>
    %788 = arith.subf %777, %787 : vector<8x64xf32>
    %cst_143 = arith.constant dense<0.000000e+00> : vector<8x64xf32>
    %789 = tpu.matmul %788, %7, %cst_143 {dimension_numbers = #tpu.dot_dimension_numbers<[1], [0], [0], [1], [0, 0, 1, 1], [], []>} : vector<8x64xf32>, vector<64x64xf32>, vector<8x64xf32> -> vector<8x64xf32>
    %790 = vector.broadcast %8 : vector<1x64xf32> to vector<8x64xf32>
    %791 = arith.addf %789, %790 : vector<8x64xf32>
    %792 = math.exp %791 : vector<8x64xf32>
    %cst_144 = arith.constant 1.000000e+00 : f32
    %793 = vector.broadcast %cst_144 : f32 to vector<8x64xf32>
    %794 = arith.addf %793, %792 : vector<8x64xf32>
    %cst_145 = arith.constant 2.000000e+00 : f32
    %795 = vector.broadcast %cst_145 : f32 to vector<8x64xf32>
    %796 = arith.mulf %795, %791 : vector<8x64xf32>
    %797 = arith.mulf %794, %794 : vector<8x64xf32>
    %cst_146 = arith.constant 1.000000e+00 : f32
    %798 = vector.broadcast %cst_146 : f32 to vector<8x64xf32>
    %799 = arith.addf %797, %798 : vector<8x64xf32>
    %800 = tpu.reciprocal %799 {approx = true} : vector<8x64xf32> -> vector<8x64xf32>
    %801 = arith.mulf %796, %800 : vector<8x64xf32>
    %802 = arith.subf %791, %801 : vector<8x64xf32>
    %cst_147 = arith.constant dense<0.000000e+00> : vector<8x8xf32>
    %803 = tpu.matmul %802, %9, %cst_147 {dimension_numbers = #tpu.dot_dimension_numbers<[1], [0], [0], [1], [0, 0, 1, 1], [], []>} : vector<8x64xf32>, vector<64x8xf32>, vector<8x8xf32> -> vector<8x8xf32>
    %804 = vector.broadcast %10 : vector<1x8xf32> to vector<8x8xf32>
    %805 = arith.addf %803, %804 : vector<8x8xf32>
    %c30 = arith.constant 30 : index
    %806 = memref.load %arg0[%c30] : memref<50xf32, #tpu.memory_space<smem>>
    %c31 = arith.constant 31 : index
    %807 = memref.load %arg0[%c31] : memref<50xf32, #tpu.memory_space<smem>>
    %c32 = arith.constant 32 : index
    %808 = memref.load %arg0[%c32] : memref<50xf32, #tpu.memory_space<smem>>
    %c33 = arith.constant 33 : index
    %809 = memref.load %arg0[%c33] : memref<50xf32, #tpu.memory_space<smem>>
    %c34 = arith.constant 34 : index
    %810 = memref.load %arg0[%c34] : memref<50xf32, #tpu.memory_space<smem>>
    %811 = vector.broadcast %806 : f32 to vector<8x8xf32>
    %812 = arith.mulf %811, %712 : vector<8x8xf32>
    %813 = vector.broadcast %807 : f32 to vector<8x8xf32>
    %814 = arith.mulf %813, %805 : vector<8x8xf32>
    %815 = arith.subf %812, %814 : vector<8x8xf32>
    %cst_148 = arith.constant -1.000000e+00 : f32
    %cst_149 = arith.constant 1.000000e+00 : f32
    %816 = vector.broadcast %cst_148 : f32 to vector<8x8xf32>
    %817 = arith.maximumf %816, %815 : vector<8x8xf32>
    %818 = vector.broadcast %cst_149 : f32 to vector<8x8xf32>
    %819 = arith.minimumf %818, %817 : vector<8x8xf32>
    %820 = vector.broadcast %808 : f32 to vector<8x8xf32>
    %821 = arith.mulf %820, %819 : vector<8x8xf32>
    %822 = vector.broadcast %809 : f32 to vector<8x8xf32>
    %823 = arith.mulf %822, %712 : vector<8x8xf32>
    %824 = arith.addf %821, %823 : vector<8x8xf32>
    %c6_150 = arith.constant 6 : index
    %c0_151 = arith.constant 0 : index
    %c0_152 = arith.constant 0 : index
    %825 = vector.load %arg2[%c6_150, %c0_151, %c0_152] : memref<10x8x8xf32, #tpu.memory_space<vmem>>, vector<1x8x8xf32>
    %826 = vector.shape_cast %825 : vector<1x8x8xf32> to vector<8x8xf32>
    %827 = vector.broadcast %810 : f32 to vector<8x8xf32>
    %828 = arith.mulf %827, %826 : vector<8x8xf32>
    %829 = arith.addf %824, %828 : vector<8x8xf32>
    %c7_153 = arith.constant 7 : index
    %c0_154 = arith.constant 0 : index
    %830 = vector.load %arg1[%c7_153, %c0_154] : memref<10x64xf32, #tpu.memory_space<vmem>>, vector<1x64xf32>
    %831 = vector.broadcast %830 : vector<1x64xf32> to vector<8x64xf32>
    %832 = arith.addf %3, %831 : vector<8x64xf32>
    %833 = vector.extract_strided_slice %829 {offsets = [0, 0], sizes = [8, 1], strides = [1, 1]} : vector<8x8xf32> to vector<8x1xf32>
    %834 = vector.extract_strided_slice %4 {offsets = [0, 0], sizes = [1, 64], strides = [1, 1]} : vector<8x64xf32> to vector<1x64xf32>
    %835 = vector.broadcast %833 : vector<8x1xf32> to vector<8x64xf32>
    %836 = vector.broadcast %834 : vector<1x64xf32> to vector<8x64xf32>
    %837 = arith.mulf %835, %836 : vector<8x64xf32>
    %838 = arith.addf %832, %837 : vector<8x64xf32>
    %839 = vector.extract_strided_slice %829 {offsets = [0, 1], sizes = [8, 1], strides = [1, 1]} : vector<8x8xf32> to vector<8x1xf32>
    %840 = vector.extract_strided_slice %4 {offsets = [1, 0], sizes = [1, 64], strides = [1, 1]} : vector<8x64xf32> to vector<1x64xf32>
    %841 = vector.broadcast %839 : vector<8x1xf32> to vector<8x64xf32>
    %842 = vector.broadcast %840 : vector<1x64xf32> to vector<8x64xf32>
    %843 = arith.mulf %841, %842 : vector<8x64xf32>
    %844 = arith.addf %838, %843 : vector<8x64xf32>
    %845 = vector.extract_strided_slice %829 {offsets = [0, 2], sizes = [8, 1], strides = [1, 1]} : vector<8x8xf32> to vector<8x1xf32>
    %846 = vector.extract_strided_slice %4 {offsets = [2, 0], sizes = [1, 64], strides = [1, 1]} : vector<8x64xf32> to vector<1x64xf32>
    %847 = vector.broadcast %845 : vector<8x1xf32> to vector<8x64xf32>
    %848 = vector.broadcast %846 : vector<1x64xf32> to vector<8x64xf32>
    %849 = arith.mulf %847, %848 : vector<8x64xf32>
    %850 = arith.addf %844, %849 : vector<8x64xf32>
    %851 = vector.extract_strided_slice %829 {offsets = [0, 3], sizes = [8, 1], strides = [1, 1]} : vector<8x8xf32> to vector<8x1xf32>
    %852 = vector.extract_strided_slice %4 {offsets = [3, 0], sizes = [1, 64], strides = [1, 1]} : vector<8x64xf32> to vector<1x64xf32>
    %853 = vector.broadcast %851 : vector<8x1xf32> to vector<8x64xf32>
    %854 = vector.broadcast %852 : vector<1x64xf32> to vector<8x64xf32>
    %855 = arith.mulf %853, %854 : vector<8x64xf32>
    %856 = arith.addf %850, %855 : vector<8x64xf32>
    %857 = vector.extract_strided_slice %829 {offsets = [0, 4], sizes = [8, 1], strides = [1, 1]} : vector<8x8xf32> to vector<8x1xf32>
    %858 = vector.extract_strided_slice %4 {offsets = [4, 0], sizes = [1, 64], strides = [1, 1]} : vector<8x64xf32> to vector<1x64xf32>
    %859 = vector.broadcast %857 : vector<8x1xf32> to vector<8x64xf32>
    %860 = vector.broadcast %858 : vector<1x64xf32> to vector<8x64xf32>
    %861 = arith.mulf %859, %860 : vector<8x64xf32>
    %862 = arith.addf %856, %861 : vector<8x64xf32>
    %863 = vector.extract_strided_slice %829 {offsets = [0, 5], sizes = [8, 1], strides = [1, 1]} : vector<8x8xf32> to vector<8x1xf32>
    %864 = vector.extract_strided_slice %4 {offsets = [5, 0], sizes = [1, 64], strides = [1, 1]} : vector<8x64xf32> to vector<1x64xf32>
    %865 = vector.broadcast %863 : vector<8x1xf32> to vector<8x64xf32>
    %866 = vector.broadcast %864 : vector<1x64xf32> to vector<8x64xf32>
    %867 = arith.mulf %865, %866 : vector<8x64xf32>
    %868 = arith.addf %862, %867 : vector<8x64xf32>
    %869 = vector.extract_strided_slice %829 {offsets = [0, 6], sizes = [8, 1], strides = [1, 1]} : vector<8x8xf32> to vector<8x1xf32>
    %870 = vector.extract_strided_slice %4 {offsets = [6, 0], sizes = [1, 64], strides = [1, 1]} : vector<8x64xf32> to vector<1x64xf32>
    %871 = vector.broadcast %869 : vector<8x1xf32> to vector<8x64xf32>
    %872 = vector.broadcast %870 : vector<1x64xf32> to vector<8x64xf32>
    %873 = arith.mulf %871, %872 : vector<8x64xf32>
    %874 = arith.addf %868, %873 : vector<8x64xf32>
    %875 = vector.extract_strided_slice %829 {offsets = [0, 7], sizes = [8, 1], strides = [1, 1]} : vector<8x8xf32> to vector<8x1xf32>
    %876 = vector.extract_strided_slice %4 {offsets = [7, 0], sizes = [1, 64], strides = [1, 1]} : vector<8x64xf32> to vector<1x64xf32>
    %877 = vector.broadcast %875 : vector<8x1xf32> to vector<8x64xf32>
    %878 = vector.broadcast %876 : vector<1x64xf32> to vector<8x64xf32>
    %879 = arith.mulf %877, %878 : vector<8x64xf32>
    %880 = arith.addf %874, %879 : vector<8x64xf32>
    %881 = math.exp %880 : vector<8x64xf32>
    %cst_155 = arith.constant 1.000000e+00 : f32
    %882 = vector.broadcast %cst_155 : f32 to vector<8x64xf32>
    %883 = arith.addf %882, %881 : vector<8x64xf32>
    %cst_156 = arith.constant 2.000000e+00 : f32
    %884 = vector.broadcast %cst_156 : f32 to vector<8x64xf32>
    %885 = arith.mulf %884, %880 : vector<8x64xf32>
    %886 = arith.mulf %883, %883 : vector<8x64xf32>
    %cst_157 = arith.constant 1.000000e+00 : f32
    %887 = vector.broadcast %cst_157 : f32 to vector<8x64xf32>
    %888 = arith.addf %886, %887 : vector<8x64xf32>
    %889 = tpu.reciprocal %888 {approx = true} : vector<8x64xf32> -> vector<8x64xf32>
    %890 = arith.mulf %885, %889 : vector<8x64xf32>
    %891 = arith.subf %880, %890 : vector<8x64xf32>
    %cst_158 = arith.constant dense<0.000000e+00> : vector<8x64xf32>
    %892 = tpu.matmul %891, %5, %cst_158 {dimension_numbers = #tpu.dot_dimension_numbers<[1], [0], [0], [1], [0, 0, 1, 1], [], []>} : vector<8x64xf32>, vector<64x64xf32>, vector<8x64xf32> -> vector<8x64xf32>
    %893 = vector.broadcast %6 : vector<1x64xf32> to vector<8x64xf32>
    %894 = arith.addf %892, %893 : vector<8x64xf32>
    %895 = math.exp %894 : vector<8x64xf32>
    %cst_159 = arith.constant 1.000000e+00 : f32
    %896 = vector.broadcast %cst_159 : f32 to vector<8x64xf32>
    %897 = arith.addf %896, %895 : vector<8x64xf32>
    %cst_160 = arith.constant 2.000000e+00 : f32
    %898 = vector.broadcast %cst_160 : f32 to vector<8x64xf32>
    %899 = arith.mulf %898, %894 : vector<8x64xf32>
    %900 = arith.mulf %897, %897 : vector<8x64xf32>
    %cst_161 = arith.constant 1.000000e+00 : f32
    %901 = vector.broadcast %cst_161 : f32 to vector<8x64xf32>
    %902 = arith.addf %900, %901 : vector<8x64xf32>
    %903 = tpu.reciprocal %902 {approx = true} : vector<8x64xf32> -> vector<8x64xf32>
    %904 = arith.mulf %899, %903 : vector<8x64xf32>
    %905 = arith.subf %894, %904 : vector<8x64xf32>
    %cst_162 = arith.constant dense<0.000000e+00> : vector<8x64xf32>
    %906 = tpu.matmul %905, %7, %cst_162 {dimension_numbers = #tpu.dot_dimension_numbers<[1], [0], [0], [1], [0, 0, 1, 1], [], []>} : vector<8x64xf32>, vector<64x64xf32>, vector<8x64xf32> -> vector<8x64xf32>
    %907 = vector.broadcast %8 : vector<1x64xf32> to vector<8x64xf32>
    %908 = arith.addf %906, %907 : vector<8x64xf32>
    %909 = math.exp %908 : vector<8x64xf32>
    %cst_163 = arith.constant 1.000000e+00 : f32
    %910 = vector.broadcast %cst_163 : f32 to vector<8x64xf32>
    %911 = arith.addf %910, %909 : vector<8x64xf32>
    %cst_164 = arith.constant 2.000000e+00 : f32
    %912 = vector.broadcast %cst_164 : f32 to vector<8x64xf32>
    %913 = arith.mulf %912, %908 : vector<8x64xf32>
    %914 = arith.mulf %911, %911 : vector<8x64xf32>
    %cst_165 = arith.constant 1.000000e+00 : f32
    %915 = vector.broadcast %cst_165 : f32 to vector<8x64xf32>
    %916 = arith.addf %914, %915 : vector<8x64xf32>
    %917 = tpu.reciprocal %916 {approx = true} : vector<8x64xf32> -> vector<8x64xf32>
    %918 = arith.mulf %913, %917 : vector<8x64xf32>
    %919 = arith.subf %908, %918 : vector<8x64xf32>
    %cst_166 = arith.constant dense<0.000000e+00> : vector<8x8xf32>
    %920 = tpu.matmul %919, %9, %cst_166 {dimension_numbers = #tpu.dot_dimension_numbers<[1], [0], [0], [1], [0, 0, 1, 1], [], []>} : vector<8x64xf32>, vector<64x8xf32>, vector<8x8xf32> -> vector<8x8xf32>
    %921 = vector.broadcast %10 : vector<1x8xf32> to vector<8x8xf32>
    %922 = arith.addf %920, %921 : vector<8x8xf32>
    %c35 = arith.constant 35 : index
    %923 = memref.load %arg0[%c35] : memref<50xf32, #tpu.memory_space<smem>>
    %c36 = arith.constant 36 : index
    %924 = memref.load %arg0[%c36] : memref<50xf32, #tpu.memory_space<smem>>
    %c37 = arith.constant 37 : index
    %925 = memref.load %arg0[%c37] : memref<50xf32, #tpu.memory_space<smem>>
    %c38 = arith.constant 38 : index
    %926 = memref.load %arg0[%c38] : memref<50xf32, #tpu.memory_space<smem>>
    %c39 = arith.constant 39 : index
    %927 = memref.load %arg0[%c39] : memref<50xf32, #tpu.memory_space<smem>>
    %928 = vector.broadcast %923 : f32 to vector<8x8xf32>
    %929 = arith.mulf %928, %829 : vector<8x8xf32>
    %930 = vector.broadcast %924 : f32 to vector<8x8xf32>
    %931 = arith.mulf %930, %922 : vector<8x8xf32>
    %932 = arith.subf %929, %931 : vector<8x8xf32>
    %cst_167 = arith.constant -1.000000e+00 : f32
    %cst_168 = arith.constant 1.000000e+00 : f32
    %933 = vector.broadcast %cst_167 : f32 to vector<8x8xf32>
    %934 = arith.maximumf %933, %932 : vector<8x8xf32>
    %935 = vector.broadcast %cst_168 : f32 to vector<8x8xf32>
    %936 = arith.minimumf %935, %934 : vector<8x8xf32>
    %937 = vector.broadcast %925 : f32 to vector<8x8xf32>
    %938 = arith.mulf %937, %936 : vector<8x8xf32>
    %939 = vector.broadcast %926 : f32 to vector<8x8xf32>
    %940 = arith.mulf %939, %829 : vector<8x8xf32>
    %941 = arith.addf %938, %940 : vector<8x8xf32>
    %c7_169 = arith.constant 7 : index
    %c0_170 = arith.constant 0 : index
    %c0_171 = arith.constant 0 : index
    %942 = vector.load %arg2[%c7_169, %c0_170, %c0_171] : memref<10x8x8xf32, #tpu.memory_space<vmem>>, vector<1x8x8xf32>
    %943 = vector.shape_cast %942 : vector<1x8x8xf32> to vector<8x8xf32>
    %944 = vector.broadcast %927 : f32 to vector<8x8xf32>
    %945 = arith.mulf %944, %943 : vector<8x8xf32>
    %946 = arith.addf %941, %945 : vector<8x8xf32>
    %c8_172 = arith.constant 8 : index
    %c0_173 = arith.constant 0 : index
    %947 = vector.load %arg1[%c8_172, %c0_173] : memref<10x64xf32, #tpu.memory_space<vmem>>, vector<1x64xf32>
    %948 = vector.broadcast %947 : vector<1x64xf32> to vector<8x64xf32>
    %949 = arith.addf %3, %948 : vector<8x64xf32>
    %950 = vector.extract_strided_slice %946 {offsets = [0, 0], sizes = [8, 1], strides = [1, 1]} : vector<8x8xf32> to vector<8x1xf32>
    %951 = vector.extract_strided_slice %4 {offsets = [0, 0], sizes = [1, 64], strides = [1, 1]} : vector<8x64xf32> to vector<1x64xf32>
    %952 = vector.broadcast %950 : vector<8x1xf32> to vector<8x64xf32>
    %953 = vector.broadcast %951 : vector<1x64xf32> to vector<8x64xf32>
    %954 = arith.mulf %952, %953 : vector<8x64xf32>
    %955 = arith.addf %949, %954 : vector<8x64xf32>
    %956 = vector.extract_strided_slice %946 {offsets = [0, 1], sizes = [8, 1], strides = [1, 1]} : vector<8x8xf32> to vector<8x1xf32>
    %957 = vector.extract_strided_slice %4 {offsets = [1, 0], sizes = [1, 64], strides = [1, 1]} : vector<8x64xf32> to vector<1x64xf32>
    %958 = vector.broadcast %956 : vector<8x1xf32> to vector<8x64xf32>
    %959 = vector.broadcast %957 : vector<1x64xf32> to vector<8x64xf32>
    %960 = arith.mulf %958, %959 : vector<8x64xf32>
    %961 = arith.addf %955, %960 : vector<8x64xf32>
    %962 = vector.extract_strided_slice %946 {offsets = [0, 2], sizes = [8, 1], strides = [1, 1]} : vector<8x8xf32> to vector<8x1xf32>
    %963 = vector.extract_strided_slice %4 {offsets = [2, 0], sizes = [1, 64], strides = [1, 1]} : vector<8x64xf32> to vector<1x64xf32>
    %964 = vector.broadcast %962 : vector<8x1xf32> to vector<8x64xf32>
    %965 = vector.broadcast %963 : vector<1x64xf32> to vector<8x64xf32>
    %966 = arith.mulf %964, %965 : vector<8x64xf32>
    %967 = arith.addf %961, %966 : vector<8x64xf32>
    %968 = vector.extract_strided_slice %946 {offsets = [0, 3], sizes = [8, 1], strides = [1, 1]} : vector<8x8xf32> to vector<8x1xf32>
    %969 = vector.extract_strided_slice %4 {offsets = [3, 0], sizes = [1, 64], strides = [1, 1]} : vector<8x64xf32> to vector<1x64xf32>
    %970 = vector.broadcast %968 : vector<8x1xf32> to vector<8x64xf32>
    %971 = vector.broadcast %969 : vector<1x64xf32> to vector<8x64xf32>
    %972 = arith.mulf %970, %971 : vector<8x64xf32>
    %973 = arith.addf %967, %972 : vector<8x64xf32>
    %974 = vector.extract_strided_slice %946 {offsets = [0, 4], sizes = [8, 1], strides = [1, 1]} : vector<8x8xf32> to vector<8x1xf32>
    %975 = vector.extract_strided_slice %4 {offsets = [4, 0], sizes = [1, 64], strides = [1, 1]} : vector<8x64xf32> to vector<1x64xf32>
    %976 = vector.broadcast %974 : vector<8x1xf32> to vector<8x64xf32>
    %977 = vector.broadcast %975 : vector<1x64xf32> to vector<8x64xf32>
    %978 = arith.mulf %976, %977 : vector<8x64xf32>
    %979 = arith.addf %973, %978 : vector<8x64xf32>
    %980 = vector.extract_strided_slice %946 {offsets = [0, 5], sizes = [8, 1], strides = [1, 1]} : vector<8x8xf32> to vector<8x1xf32>
    %981 = vector.extract_strided_slice %4 {offsets = [5, 0], sizes = [1, 64], strides = [1, 1]} : vector<8x64xf32> to vector<1x64xf32>
    %982 = vector.broadcast %980 : vector<8x1xf32> to vector<8x64xf32>
    %983 = vector.broadcast %981 : vector<1x64xf32> to vector<8x64xf32>
    %984 = arith.mulf %982, %983 : vector<8x64xf32>
    %985 = arith.addf %979, %984 : vector<8x64xf32>
    %986 = vector.extract_strided_slice %946 {offsets = [0, 6], sizes = [8, 1], strides = [1, 1]} : vector<8x8xf32> to vector<8x1xf32>
    %987 = vector.extract_strided_slice %4 {offsets = [6, 0], sizes = [1, 64], strides = [1, 1]} : vector<8x64xf32> to vector<1x64xf32>
    %988 = vector.broadcast %986 : vector<8x1xf32> to vector<8x64xf32>
    %989 = vector.broadcast %987 : vector<1x64xf32> to vector<8x64xf32>
    %990 = arith.mulf %988, %989 : vector<8x64xf32>
    %991 = arith.addf %985, %990 : vector<8x64xf32>
    %992 = vector.extract_strided_slice %946 {offsets = [0, 7], sizes = [8, 1], strides = [1, 1]} : vector<8x8xf32> to vector<8x1xf32>
    %993 = vector.extract_strided_slice %4 {offsets = [7, 0], sizes = [1, 64], strides = [1, 1]} : vector<8x64xf32> to vector<1x64xf32>
    %994 = vector.broadcast %992 : vector<8x1xf32> to vector<8x64xf32>
    %995 = vector.broadcast %993 : vector<1x64xf32> to vector<8x64xf32>
    %996 = arith.mulf %994, %995 : vector<8x64xf32>
    %997 = arith.addf %991, %996 : vector<8x64xf32>
    %998 = math.exp %997 : vector<8x64xf32>
    %cst_174 = arith.constant 1.000000e+00 : f32
    %999 = vector.broadcast %cst_174 : f32 to vector<8x64xf32>
    %1000 = arith.addf %999, %998 : vector<8x64xf32>
    %cst_175 = arith.constant 2.000000e+00 : f32
    %1001 = vector.broadcast %cst_175 : f32 to vector<8x64xf32>
    %1002 = arith.mulf %1001, %997 : vector<8x64xf32>
    %1003 = arith.mulf %1000, %1000 : vector<8x64xf32>
    %cst_176 = arith.constant 1.000000e+00 : f32
    %1004 = vector.broadcast %cst_176 : f32 to vector<8x64xf32>
    %1005 = arith.addf %1003, %1004 : vector<8x64xf32>
    %1006 = tpu.reciprocal %1005 {approx = true} : vector<8x64xf32> -> vector<8x64xf32>
    %1007 = arith.mulf %1002, %1006 : vector<8x64xf32>
    %1008 = arith.subf %997, %1007 : vector<8x64xf32>
    %cst_177 = arith.constant dense<0.000000e+00> : vector<8x64xf32>
    %1009 = tpu.matmul %1008, %5, %cst_177 {dimension_numbers = #tpu.dot_dimension_numbers<[1], [0], [0], [1], [0, 0, 1, 1], [], []>} : vector<8x64xf32>, vector<64x64xf32>, vector<8x64xf32> -> vector<8x64xf32>
    %1010 = vector.broadcast %6 : vector<1x64xf32> to vector<8x64xf32>
    %1011 = arith.addf %1009, %1010 : vector<8x64xf32>
    %1012 = math.exp %1011 : vector<8x64xf32>
    %cst_178 = arith.constant 1.000000e+00 : f32
    %1013 = vector.broadcast %cst_178 : f32 to vector<8x64xf32>
    %1014 = arith.addf %1013, %1012 : vector<8x64xf32>
    %cst_179 = arith.constant 2.000000e+00 : f32
    %1015 = vector.broadcast %cst_179 : f32 to vector<8x64xf32>
    %1016 = arith.mulf %1015, %1011 : vector<8x64xf32>
    %1017 = arith.mulf %1014, %1014 : vector<8x64xf32>
    %cst_180 = arith.constant 1.000000e+00 : f32
    %1018 = vector.broadcast %cst_180 : f32 to vector<8x64xf32>
    %1019 = arith.addf %1017, %1018 : vector<8x64xf32>
    %1020 = tpu.reciprocal %1019 {approx = true} : vector<8x64xf32> -> vector<8x64xf32>
    %1021 = arith.mulf %1016, %1020 : vector<8x64xf32>
    %1022 = arith.subf %1011, %1021 : vector<8x64xf32>
    %cst_181 = arith.constant dense<0.000000e+00> : vector<8x64xf32>
    %1023 = tpu.matmul %1022, %7, %cst_181 {dimension_numbers = #tpu.dot_dimension_numbers<[1], [0], [0], [1], [0, 0, 1, 1], [], []>} : vector<8x64xf32>, vector<64x64xf32>, vector<8x64xf32> -> vector<8x64xf32>
    %1024 = vector.broadcast %8 : vector<1x64xf32> to vector<8x64xf32>
    %1025 = arith.addf %1023, %1024 : vector<8x64xf32>
    %1026 = math.exp %1025 : vector<8x64xf32>
    %cst_182 = arith.constant 1.000000e+00 : f32
    %1027 = vector.broadcast %cst_182 : f32 to vector<8x64xf32>
    %1028 = arith.addf %1027, %1026 : vector<8x64xf32>
    %cst_183 = arith.constant 2.000000e+00 : f32
    %1029 = vector.broadcast %cst_183 : f32 to vector<8x64xf32>
    %1030 = arith.mulf %1029, %1025 : vector<8x64xf32>
    %1031 = arith.mulf %1028, %1028 : vector<8x64xf32>
    %cst_184 = arith.constant 1.000000e+00 : f32
    %1032 = vector.broadcast %cst_184 : f32 to vector<8x64xf32>
    %1033 = arith.addf %1031, %1032 : vector<8x64xf32>
    %1034 = tpu.reciprocal %1033 {approx = true} : vector<8x64xf32> -> vector<8x64xf32>
    %1035 = arith.mulf %1030, %1034 : vector<8x64xf32>
    %1036 = arith.subf %1025, %1035 : vector<8x64xf32>
    %cst_185 = arith.constant dense<0.000000e+00> : vector<8x8xf32>
    %1037 = tpu.matmul %1036, %9, %cst_185 {dimension_numbers = #tpu.dot_dimension_numbers<[1], [0], [0], [1], [0, 0, 1, 1], [], []>} : vector<8x64xf32>, vector<64x8xf32>, vector<8x8xf32> -> vector<8x8xf32>
    %1038 = vector.broadcast %10 : vector<1x8xf32> to vector<8x8xf32>
    %1039 = arith.addf %1037, %1038 : vector<8x8xf32>
    %c40 = arith.constant 40 : index
    %1040 = memref.load %arg0[%c40] : memref<50xf32, #tpu.memory_space<smem>>
    %c41 = arith.constant 41 : index
    %1041 = memref.load %arg0[%c41] : memref<50xf32, #tpu.memory_space<smem>>
    %c42 = arith.constant 42 : index
    %1042 = memref.load %arg0[%c42] : memref<50xf32, #tpu.memory_space<smem>>
    %c43 = arith.constant 43 : index
    %1043 = memref.load %arg0[%c43] : memref<50xf32, #tpu.memory_space<smem>>
    %c44 = arith.constant 44 : index
    %1044 = memref.load %arg0[%c44] : memref<50xf32, #tpu.memory_space<smem>>
    %1045 = vector.broadcast %1040 : f32 to vector<8x8xf32>
    %1046 = arith.mulf %1045, %946 : vector<8x8xf32>
    %1047 = vector.broadcast %1041 : f32 to vector<8x8xf32>
    %1048 = arith.mulf %1047, %1039 : vector<8x8xf32>
    %1049 = arith.subf %1046, %1048 : vector<8x8xf32>
    %cst_186 = arith.constant -1.000000e+00 : f32
    %cst_187 = arith.constant 1.000000e+00 : f32
    %1050 = vector.broadcast %cst_186 : f32 to vector<8x8xf32>
    %1051 = arith.maximumf %1050, %1049 : vector<8x8xf32>
    %1052 = vector.broadcast %cst_187 : f32 to vector<8x8xf32>
    %1053 = arith.minimumf %1052, %1051 : vector<8x8xf32>
    %1054 = vector.broadcast %1042 : f32 to vector<8x8xf32>
    %1055 = arith.mulf %1054, %1053 : vector<8x8xf32>
    %1056 = vector.broadcast %1043 : f32 to vector<8x8xf32>
    %1057 = arith.mulf %1056, %946 : vector<8x8xf32>
    %1058 = arith.addf %1055, %1057 : vector<8x8xf32>
    %c8_188 = arith.constant 8 : index
    %c0_189 = arith.constant 0 : index
    %c0_190 = arith.constant 0 : index
    %1059 = vector.load %arg2[%c8_188, %c0_189, %c0_190] : memref<10x8x8xf32, #tpu.memory_space<vmem>>, vector<1x8x8xf32>
    %1060 = vector.shape_cast %1059 : vector<1x8x8xf32> to vector<8x8xf32>
    %1061 = vector.broadcast %1044 : f32 to vector<8x8xf32>
    %1062 = arith.mulf %1061, %1060 : vector<8x8xf32>
    %1063 = arith.addf %1058, %1062 : vector<8x8xf32>
    %c9_191 = arith.constant 9 : index
    %c0_192 = arith.constant 0 : index
    %1064 = vector.load %arg1[%c9_191, %c0_192] : memref<10x64xf32, #tpu.memory_space<vmem>>, vector<1x64xf32>
    %1065 = vector.broadcast %1064 : vector<1x64xf32> to vector<8x64xf32>
    %1066 = arith.addf %3, %1065 : vector<8x64xf32>
    %1067 = vector.extract_strided_slice %1063 {offsets = [0, 0], sizes = [8, 1], strides = [1, 1]} : vector<8x8xf32> to vector<8x1xf32>
    %1068 = vector.extract_strided_slice %4 {offsets = [0, 0], sizes = [1, 64], strides = [1, 1]} : vector<8x64xf32> to vector<1x64xf32>
    %1069 = vector.broadcast %1067 : vector<8x1xf32> to vector<8x64xf32>
    %1070 = vector.broadcast %1068 : vector<1x64xf32> to vector<8x64xf32>
    %1071 = arith.mulf %1069, %1070 : vector<8x64xf32>
    %1072 = arith.addf %1066, %1071 : vector<8x64xf32>
    %1073 = vector.extract_strided_slice %1063 {offsets = [0, 1], sizes = [8, 1], strides = [1, 1]} : vector<8x8xf32> to vector<8x1xf32>
    %1074 = vector.extract_strided_slice %4 {offsets = [1, 0], sizes = [1, 64], strides = [1, 1]} : vector<8x64xf32> to vector<1x64xf32>
    %1075 = vector.broadcast %1073 : vector<8x1xf32> to vector<8x64xf32>
    %1076 = vector.broadcast %1074 : vector<1x64xf32> to vector<8x64xf32>
    %1077 = arith.mulf %1075, %1076 : vector<8x64xf32>
    %1078 = arith.addf %1072, %1077 : vector<8x64xf32>
    %1079 = vector.extract_strided_slice %1063 {offsets = [0, 2], sizes = [8, 1], strides = [1, 1]} : vector<8x8xf32> to vector<8x1xf32>
    %1080 = vector.extract_strided_slice %4 {offsets = [2, 0], sizes = [1, 64], strides = [1, 1]} : vector<8x64xf32> to vector<1x64xf32>
    %1081 = vector.broadcast %1079 : vector<8x1xf32> to vector<8x64xf32>
    %1082 = vector.broadcast %1080 : vector<1x64xf32> to vector<8x64xf32>
    %1083 = arith.mulf %1081, %1082 : vector<8x64xf32>
    %1084 = arith.addf %1078, %1083 : vector<8x64xf32>
    %1085 = vector.extract_strided_slice %1063 {offsets = [0, 3], sizes = [8, 1], strides = [1, 1]} : vector<8x8xf32> to vector<8x1xf32>
    %1086 = vector.extract_strided_slice %4 {offsets = [3, 0], sizes = [1, 64], strides = [1, 1]} : vector<8x64xf32> to vector<1x64xf32>
    %1087 = vector.broadcast %1085 : vector<8x1xf32> to vector<8x64xf32>
    %1088 = vector.broadcast %1086 : vector<1x64xf32> to vector<8x64xf32>
    %1089 = arith.mulf %1087, %1088 : vector<8x64xf32>
    %1090 = arith.addf %1084, %1089 : vector<8x64xf32>
    %1091 = vector.extract_strided_slice %1063 {offsets = [0, 4], sizes = [8, 1], strides = [1, 1]} : vector<8x8xf32> to vector<8x1xf32>
    %1092 = vector.extract_strided_slice %4 {offsets = [4, 0], sizes = [1, 64], strides = [1, 1]} : vector<8x64xf32> to vector<1x64xf32>
    %1093 = vector.broadcast %1091 : vector<8x1xf32> to vector<8x64xf32>
    %1094 = vector.broadcast %1092 : vector<1x64xf32> to vector<8x64xf32>
    %1095 = arith.mulf %1093, %1094 : vector<8x64xf32>
    %1096 = arith.addf %1090, %1095 : vector<8x64xf32>
    %1097 = vector.extract_strided_slice %1063 {offsets = [0, 5], sizes = [8, 1], strides = [1, 1]} : vector<8x8xf32> to vector<8x1xf32>
    %1098 = vector.extract_strided_slice %4 {offsets = [5, 0], sizes = [1, 64], strides = [1, 1]} : vector<8x64xf32> to vector<1x64xf32>
    %1099 = vector.broadcast %1097 : vector<8x1xf32> to vector<8x64xf32>
    %1100 = vector.broadcast %1098 : vector<1x64xf32> to vector<8x64xf32>
    %1101 = arith.mulf %1099, %1100 : vector<8x64xf32>
    %1102 = arith.addf %1096, %1101 : vector<8x64xf32>
    %1103 = vector.extract_strided_slice %1063 {offsets = [0, 6], sizes = [8, 1], strides = [1, 1]} : vector<8x8xf32> to vector<8x1xf32>
    %1104 = vector.extract_strided_slice %4 {offsets = [6, 0], sizes = [1, 64], strides = [1, 1]} : vector<8x64xf32> to vector<1x64xf32>
    %1105 = vector.broadcast %1103 : vector<8x1xf32> to vector<8x64xf32>
    %1106 = vector.broadcast %1104 : vector<1x64xf32> to vector<8x64xf32>
    %1107 = arith.mulf %1105, %1106 : vector<8x64xf32>
    %1108 = arith.addf %1102, %1107 : vector<8x64xf32>
    %1109 = vector.extract_strided_slice %1063 {offsets = [0, 7], sizes = [8, 1], strides = [1, 1]} : vector<8x8xf32> to vector<8x1xf32>
    %1110 = vector.extract_strided_slice %4 {offsets = [7, 0], sizes = [1, 64], strides = [1, 1]} : vector<8x64xf32> to vector<1x64xf32>
    %1111 = vector.broadcast %1109 : vector<8x1xf32> to vector<8x64xf32>
    %1112 = vector.broadcast %1110 : vector<1x64xf32> to vector<8x64xf32>
    %1113 = arith.mulf %1111, %1112 : vector<8x64xf32>
    %1114 = arith.addf %1108, %1113 : vector<8x64xf32>
    %1115 = math.exp %1114 : vector<8x64xf32>
    %cst_193 = arith.constant 1.000000e+00 : f32
    %1116 = vector.broadcast %cst_193 : f32 to vector<8x64xf32>
    %1117 = arith.addf %1116, %1115 : vector<8x64xf32>
    %cst_194 = arith.constant 2.000000e+00 : f32
    %1118 = vector.broadcast %cst_194 : f32 to vector<8x64xf32>
    %1119 = arith.mulf %1118, %1114 : vector<8x64xf32>
    %1120 = arith.mulf %1117, %1117 : vector<8x64xf32>
    %cst_195 = arith.constant 1.000000e+00 : f32
    %1121 = vector.broadcast %cst_195 : f32 to vector<8x64xf32>
    %1122 = arith.addf %1120, %1121 : vector<8x64xf32>
    %1123 = tpu.reciprocal %1122 {approx = true} : vector<8x64xf32> -> vector<8x64xf32>
    %1124 = arith.mulf %1119, %1123 : vector<8x64xf32>
    %1125 = arith.subf %1114, %1124 : vector<8x64xf32>
    %cst_196 = arith.constant dense<0.000000e+00> : vector<8x64xf32>
    %1126 = tpu.matmul %1125, %5, %cst_196 {dimension_numbers = #tpu.dot_dimension_numbers<[1], [0], [0], [1], [0, 0, 1, 1], [], []>} : vector<8x64xf32>, vector<64x64xf32>, vector<8x64xf32> -> vector<8x64xf32>
    %1127 = vector.broadcast %6 : vector<1x64xf32> to vector<8x64xf32>
    %1128 = arith.addf %1126, %1127 : vector<8x64xf32>
    %1129 = math.exp %1128 : vector<8x64xf32>
    %cst_197 = arith.constant 1.000000e+00 : f32
    %1130 = vector.broadcast %cst_197 : f32 to vector<8x64xf32>
    %1131 = arith.addf %1130, %1129 : vector<8x64xf32>
    %cst_198 = arith.constant 2.000000e+00 : f32
    %1132 = vector.broadcast %cst_198 : f32 to vector<8x64xf32>
    %1133 = arith.mulf %1132, %1128 : vector<8x64xf32>
    %1134 = arith.mulf %1131, %1131 : vector<8x64xf32>
    %cst_199 = arith.constant 1.000000e+00 : f32
    %1135 = vector.broadcast %cst_199 : f32 to vector<8x64xf32>
    %1136 = arith.addf %1134, %1135 : vector<8x64xf32>
    %1137 = tpu.reciprocal %1136 {approx = true} : vector<8x64xf32> -> vector<8x64xf32>
    %1138 = arith.mulf %1133, %1137 : vector<8x64xf32>
    %1139 = arith.subf %1128, %1138 : vector<8x64xf32>
    %cst_200 = arith.constant dense<0.000000e+00> : vector<8x64xf32>
    %1140 = tpu.matmul %1139, %7, %cst_200 {dimension_numbers = #tpu.dot_dimension_numbers<[1], [0], [0], [1], [0, 0, 1, 1], [], []>} : vector<8x64xf32>, vector<64x64xf32>, vector<8x64xf32> -> vector<8x64xf32>
    %1141 = vector.broadcast %8 : vector<1x64xf32> to vector<8x64xf32>
    %1142 = arith.addf %1140, %1141 : vector<8x64xf32>
    %1143 = math.exp %1142 : vector<8x64xf32>
    %cst_201 = arith.constant 1.000000e+00 : f32
    %1144 = vector.broadcast %cst_201 : f32 to vector<8x64xf32>
    %1145 = arith.addf %1144, %1143 : vector<8x64xf32>
    %cst_202 = arith.constant 2.000000e+00 : f32
    %1146 = vector.broadcast %cst_202 : f32 to vector<8x64xf32>
    %1147 = arith.mulf %1146, %1142 : vector<8x64xf32>
    %1148 = arith.mulf %1145, %1145 : vector<8x64xf32>
    %cst_203 = arith.constant 1.000000e+00 : f32
    %1149 = vector.broadcast %cst_203 : f32 to vector<8x64xf32>
    %1150 = arith.addf %1148, %1149 : vector<8x64xf32>
    %1151 = tpu.reciprocal %1150 {approx = true} : vector<8x64xf32> -> vector<8x64xf32>
    %1152 = arith.mulf %1147, %1151 : vector<8x64xf32>
    %1153 = arith.subf %1142, %1152 : vector<8x64xf32>
    %cst_204 = arith.constant dense<0.000000e+00> : vector<8x8xf32>
    %1154 = tpu.matmul %1153, %9, %cst_204 {dimension_numbers = #tpu.dot_dimension_numbers<[1], [0], [0], [1], [0, 0, 1, 1], [], []>} : vector<8x64xf32>, vector<64x8xf32>, vector<8x8xf32> -> vector<8x8xf32>
    %1155 = vector.broadcast %10 : vector<1x8xf32> to vector<8x8xf32>
    %1156 = arith.addf %1154, %1155 : vector<8x8xf32>
    %c45 = arith.constant 45 : index
    %1157 = memref.load %arg0[%c45] : memref<50xf32, #tpu.memory_space<smem>>
    %c46 = arith.constant 46 : index
    %1158 = memref.load %arg0[%c46] : memref<50xf32, #tpu.memory_space<smem>>
    %c47 = arith.constant 47 : index
    %1159 = memref.load %arg0[%c47] : memref<50xf32, #tpu.memory_space<smem>>
    %c48 = arith.constant 48 : index
    %1160 = memref.load %arg0[%c48] : memref<50xf32, #tpu.memory_space<smem>>
    %c49 = arith.constant 49 : index
    %1161 = memref.load %arg0[%c49] : memref<50xf32, #tpu.memory_space<smem>>
    %1162 = vector.broadcast %1157 : f32 to vector<8x8xf32>
    %1163 = arith.mulf %1162, %1063 : vector<8x8xf32>
    %1164 = vector.broadcast %1158 : f32 to vector<8x8xf32>
    %1165 = arith.mulf %1164, %1156 : vector<8x8xf32>
    %1166 = arith.subf %1163, %1165 : vector<8x8xf32>
    %cst_205 = arith.constant -1.000000e+00 : f32
    %cst_206 = arith.constant 1.000000e+00 : f32
    %1167 = vector.broadcast %cst_205 : f32 to vector<8x8xf32>
    %1168 = arith.maximumf %1167, %1166 : vector<8x8xf32>
    %1169 = vector.broadcast %cst_206 : f32 to vector<8x8xf32>
    %1170 = arith.minimumf %1169, %1168 : vector<8x8xf32>
    %1171 = vector.broadcast %1159 : f32 to vector<8x8xf32>
    %1172 = arith.mulf %1171, %1170 : vector<8x8xf32>
    %1173 = vector.broadcast %1160 : f32 to vector<8x8xf32>
    %1174 = arith.mulf %1173, %1063 : vector<8x8xf32>
    %1175 = arith.addf %1172, %1174 : vector<8x8xf32>
    %c9_207 = arith.constant 9 : index
    %c0_208 = arith.constant 0 : index
    %c0_209 = arith.constant 0 : index
    %1176 = vector.load %arg2[%c9_207, %c0_208, %c0_209] : memref<10x8x8xf32, #tpu.memory_space<vmem>>, vector<1x8x8xf32>
    %1177 = vector.shape_cast %1176 : vector<1x8x8xf32> to vector<8x8xf32>
    %1178 = vector.broadcast %1161 : f32 to vector<8x8xf32>
    %1179 = arith.mulf %1178, %1177 : vector<8x8xf32>
    %1180 = arith.addf %1175, %1179 : vector<8x8xf32>
    %cst_210 = arith.constant -1.000000e+00 : f32
    %cst_211 = arith.constant 1.000000e+00 : f32
    %1181 = vector.broadcast %cst_210 : f32 to vector<8x8xf32>
    %1182 = arith.maximumf %1181, %1180 : vector<8x8xf32>
    %1183 = vector.broadcast %cst_211 : f32 to vector<8x8xf32>
    %1184 = arith.minimumf %1183, %1182 : vector<8x8xf32>
    %c0_212 = arith.constant 0 : index
    %c0_213 = arith.constant 0 : index
    %1185 = vector.load %arg13[%c0_212, %c0_213] : memref<8x8xf32, #tpu.memory_space<vmem>>, vector<8x8xf32>
    tpu.vector_store %arg13[%c0_212, %c0_213], %1184 {strides = array<i32>} : memref<8x8xf32, #tpu.memory_space<vmem>>, vector<8x8xf32>,
    return
  }
}

</mosaic_0001>

<bundles_post_ra>
// kernel: diffusion_sample.1
= control target key start
LH: loop header
LB: loop body
LE: loop exit
PB: predicated region body
PF: predicated region fallthrough
CT: control target
= control target key end

     0   :  { %18 = vsyncpa [#allocation4], 0  ;;  %s6210_s0 = inlined_call_operand.vmem [shape: f32[50], index: 0, kind: input, shape index: {}]   ;;  %s6211_s1 = inlined_call_operand.vmem [shape: f32[10,64], index: 1, kind: input, shape index: {}]   ;;  %s6212_s2 = inlined_call_operand.vmem [shape: f32[10,8,8], index: 2, kind: input, shape index: {}]   ;;  %s6213_s3 = inlined_call_operand.vmem [shape: f32[8,8], index: 3, kind: input, shape index: {}]   ;;  %s6214_s4 = inlined_call_operand.vmem [shape: f32[8,16], index: 4, kind: input, shape index: {}]   ;;  %s6215_s5 = inlined_call_operand.vmem [shape: f32[8,64], index: 5, kind: input, shape index: {}]   ;;  %s6216_s6 = inlined_call_operand.vmem [shape: f32[16,64], index: 6, kind: input, shape index: {}]   ;;  %s6217_s7 = inlined_call_operand.vmem [shape: f32[64,64], index: 7, kind: input, shape index: {}]   ;;  %s6218_s8 = inlined_call_operand.vmem [shape: f32[1,64], index: 8, kind: input, shape index: {}]   ;;  %s6219_s9 = inlined_call_operand.vmem [shape: f32[64,64], index: 9, kind: input, shape index: {}]   ;;  %s6220_s10 = inlined_call_operand.vmem [shape: f32[1,64], index: 10, kind: input, shape index: {}]   ;;  %s6221_s11 = inlined_call_operand.vmem [shape: f32[64,8], index: 11, kind: input, shape index: {}]   ;;  %s6222_s12 = inlined_call_operand.vmem [shape: f32[1,8], index: 12, kind: input, shape index: {}]   ;;  %s6223_s13 = inlined_call_operand.hbm [shape: f32[8,8], index: 13, kind: output, shape index: {}]  }
   0x1   :  { %19 = vsyncpa [#allocation3], 0  ;;  %s26_s27 = sshll.u32 %s6210_s0, 4  ;;  %s27_s27 = int_to_ptr.vmem [resolvable:$true] %s26_s27 }
   0x2   :  { %s4693_s28 = scalar_lea.vmem %s27_s27, 16  ;;  %p4698_p1 = scmp.lt.s32.totalorder %s27_s27, %s27_s27 }
   0x3   :  { %p4694_p0 = scmp.ne.s32.totalorder %s27_s27, %s4693_s28  ;;  %p4699_p2 = scmp.lt.s32.totalorder %s4693_s28, %s4693_s28 }
   0x5   :  { %p4700_p3 = por %p4699_p2, %p4698_p1 }
   0x7   :  { %p4701_p4 = pnand %p4700_p3, %p4694_p0 }
   0x9   :  { %4704 = shalt.err (!%p4701_p4)
}
   0xa   :  { %s4729_s29 = smov [#allocation2]  }
   0xb   :  { %29 = dma.vmem_to_smem %s27_s27, 16, %s4729_s29, [#allocation4]  }
   0xc   :  { %4725 = dma.done.wait [#allocation4], 16  }
   0xd   :  { %4726 = vsyncadd [#allocation4], 4294967280 }
   0xe   :  { %57 = sfence }
   0xf   :  { %v61_v0 = vld [vmem:[%s6216_s6 + $0x8] sm:$0xff]  ;;  %v4730_v1 = vmov 0.0   ;;  %v60_v2 = vld [vmem:[%s6216_s6] sm:$0xff]  ;;  %vm4731_vm0 = vmmov 0   ;;  %vm62_vm1 = vcmask 130048   ;;  %v4732_v5 = vmov 2  }
  0x10   :  { %3849 = vmatprep.subr.mxu0 %v4730_v1  ;;  %3853 = vmatprep.mubr.msk.f32.mxu0 %vm4731_vm0, %v4730_v1  ;;  %v4826_v3 = vld [vmem:[%s6213_s3] sm:$0xff]  ;;  %v4733_v6 = vmov 0   ;;  %v4734_v7 = vmov 3   ;;  %v6224_v8 = vmov 1   ;;  %v4736_v9 = vmov 4   ;;  %v4859_v13 = vld [vmem:[%s6217_s7 + $0x38] sm:$0xff] }
  0x11   :  { %3850 = vmatpush3.msra.mxu0 %v61_v0  ;;  %v59_v4 = vld [vmem:[%s6214_s4] sm:$0xff]  ;;  %4440 = vset.pattern.permute.xlu1 %v4732_v5  ;;  %v4737_v10 = vmov 5   ;;  %v4738_v11 = vmov 6   ;;  %v4739_v12 = vmov 7   ;;  %v4866_v14 = vld [vmem:[%s6217_s7 + $0x30] sm:$0xff]  ;;  %v4873_v15 = vld [vmem:[%s6217_s7 + $0x28] sm:$0xff]  ;;  %v175_v22 = vlaneseq }
  0x12   :  { %3851 = vmatprep.subr.mxu0 %v4730_v1  ;;  %192 = vperm.xlu1 %4440, %v4826_v3   ;;  %v4880_v16 = vld [vmem:[%s6217_s7 + $0x20] sm:$0xff]  ;;  %v4887_v17 = vld [vmem:[%s6217_s7 + $0x18] sm:$0xff]  ;;  %v4894_v18 = vld [vmem:[%s6217_s7 + $0x10] sm:$0xff]  ;;  %vm266_vm2 = vcmask 523264   ;;  %s516_s29 = sld [smem:[#allocation2]]  ;;  %vm3446_vm3 = vcmask 64512  }
  0x13   :  { %3852 = vmatpush3.msra.mxu0 %v60_v2  ;;  %4438 = vset.pattern.permute.xlu0 %v4733_v6  ;;  %v4901_v19 = vld [vmem:[%s6217_s7 + $0x8] sm:$0xff]  ;;  %v4908_v20 = vld [vmem:[%s6217_s7] sm:$0xff]  ;;  %v176_v23 = vshrl.u32 %v175_v22, 7  ;;  %s3471_s30 = sld [smem:[#allocation2 + $0x1]] }
  0x14   :  { %3854 = vmatmul.mubr.msk.f32.vlgmr.msra.gmra.mxu0 %vm62_vm1, %v59_v4  ;;  %172 = vperm.xlu0 %4438, %v4826_v3   ;;  %v136_v28 = vld [vmem:[%s6215_s5] sm:$0xff]  ;;  %s3473_s14 = sld [smem:[#allocation2 + $0x3]] }
  0x15   :  { %3856 = vmatprep.subr.mxu1 %v4730_v1  ;;  %3872 = vmatprep.mubr.msk.f32.mxu1 %vm4731_vm0, %v4730_v1  ;;  %v177_v26 = vsub.s32 0, %v176_v23  ;;  %v187_v27 = vsub.s32 1, %v176_v23  ;;  %v197_v29 = vsub.s32 2, %v176_v23  ;;  %v3464_v32 = vld [vmem:[%s6211_s1] ss:$0 sm:$0xff]  ;;  %v207_v35 = vsub.s32 3, %v176_v23 }
  0x16   :  { %4441 = vset.pattern.permute.xlu1 %v4734_v7  ;;  %3875 = vmatprep.subr.mxu0 %v4730_v1  ;;  %v217_v38 = vsub.s32 4, %v176_v23  ;;  %v227_v42 = vsub.s32 5, %v176_v23  ;;  %v237_v47 = vsub.s32 6, %v176_v23  ;;  %v247_v52 = vsub.s32 7, %v176_v23  ;;  %s3472_s0 = sld [smem:[#allocation2 + $0x2]] }
  0x17   :  { %202 = vperm.xlu1 %4441, %v4826_v3   ;;  %3891 = vmatprep.mubr.msk.f32.mxu0 %vm4731_vm0, %v4730_v1  ;;  %v4915_v30 = vrot.slane %v136_v28, %v177_v26  ;;  %v4917_v31 = vrot.slane %v136_v28, %v187_v27  ;;  %v4922_v36 = vrot.slane %v136_v28, %v197_v29  ;;  %s3474_s17 = sld [smem:[#allocation2 + $0x4]] }
  0x18   :  { %4439 = vset.pattern.permute.xlu0 %v6224_v8  ;;  %3857 = vmatpush3.msra.mxu1 %v4859_v13  ;;  %v4929_v44 = vrot.slane %v136_v28, %v207_v35  ;;  %v4931_v46 = vrot.slane %v136_v28, %v217_v38  ;;  %v4934_v51 = vrot.slane %v136_v28, %v227_v42  ;;  %v4965_v35 = vld [vmem:[%s6219_s9 + $0x28] sm:$0xff]  ;;  %v4972_v38 = vld [vmem:[%s6219_s9 + $0x20] sm:$0xff]  ;;  %s3480_s4 = sld [smem:[#allocation2 + $0x5]] }
  0x19   :  { %182 = vperm.xlu0 %4439, %v4826_v3   ;;  %3858 = vmatprep.subr.mxu1 %v4730_v1  ;;  %v4937_v56 = vrot.slane %v136_v28, %v237_v47  ;;  %v4941_v60 = vrot.slane %v136_v28, %v247_v52  ;;  %v5000_v42 = vld [vmem:[%s6219_s9] sm:$0xff]  ;;  %s3481_s6 = sld [smem:[#allocation2 + $0x6]] }
  0x1a   :  { %3859 = vmatpush3.msra.mxu1 %v4866_v14  ;;  %s3483_s20 = sld [smem:[#allocation2 + $0x8]] }
  0x1b   :  { %4442 = vset.pattern.permute.xlu1 %v4736_v9  ;;  %3860 = vmatprep.subr.mxu1 %v4730_v1  ;;  %s3482_s21 = sld [smem:[#allocation2 + $0x7]] }
  0x1c   :  { %212 = vperm.xlu1 %4442, %v4826_v3   ;;  %3861 = vmatpush3.msra.mxu1 %v4873_v15  ;;  %s3484_s22 = sld [smem:[#allocation2 + $0x9]] }
  0x1d   :  { %4443 = vset.pattern.permute.xlu0 %v4737_v10  ;;  %3862 = vmatprep.subr.mxu1 %v4730_v1  ;;  %s3491_s27 = sld [smem:[#allocation2 + $0xa]] }
  0x1e   :  { %222 = vperm.xlu0 %4443, %v4826_v3   ;;  %3863 = vmatpush3.msra.mxu1 %v4880_v16  ;;  %s3492_s28 = sld [smem:[#allocation2 + $0xb]] }
  0x1f   :  { %3864 = vmatprep.subr.mxu1 %v4730_v1  ;;  %s3502_s24 = sld [smem:[#allocation2 + $0xf]] }
  0x20   :  { %4444 = vset.pattern.permute.xlu1 %v4738_v11  ;;  %3865 = vmatpush3.msra.mxu1 %v4887_v17  ;;  %s3503_s25 = sld [smem:[#allocation2 + $0x10]] }
  0x21   :  { %232 = vperm.xlu1 %4444, %v4826_v3   ;;  %3866 = vmatprep.subr.mxu1 %v4730_v1  ;;  %s3505_s26 = sld [smem:[#allocation2 + $0x12]] }
  0x22   :  { %4446 = vset.pattern.permute.xlu0 %v4733_v6  ;;  %3867 = vmatpush3.msra.mxu1 %v4894_v18  ;;  %s3516_s15 = sld [smem:[#allocation2 + $0x17]] }
  0x23   :  { %3868 = vmatprep.subr.mxu1 %v4730_v1  ;;  %s3515_s16 = sld [smem:[#allocation2 + $0x16]] }
  0x24   :  { %3869 = vmatpush3.msra.mxu1 %v4901_v19  ;;  %s3526_s23 = sld [smem:[#allocation2 + $0x1b]] }
  0x25   :  { %4445 = vset.pattern.permute.xlu1 %v4739_v12  ;;  %3870 = vmatprep.subr.mxu1 %v4730_v1  ;;  %s3571_s18 = sld [smem:[#allocation2 + $0x30]] }
  0x26   :  { %242 = vperm.xlu1 %4445, %v4826_v3   ;;  %3871 = vmatpush3.msra.mxu1 %v4908_v20  ;;  %s3570_s5 = sld [smem:[#allocation2 + $0x2f]] }
  0x27   :  { %3894 = vmatprep.subr.mxu1 %v4730_v1  ;;  %s3572_s19 = sld [smem:[#allocation2 + $0x31]] }
  0x2a   :  { %4447 = vset.pattern.permute.xlu1 %v6224_v8 }
  0x8d   :  { %v193_v21 = vpop.permute.xlu1 %192 }
  0x8e   :  { %v199_v49 = vmul.f32 %v4922_v36, %v193_v21 }
  0x8f   :  { %v173_v24 = vpop.permute.xlu0 %172 }
  0x90   :  { %v179_v39 = vmul.f32 %v4915_v30, %v173_v24 }
  0x92   :  { %v203_v25 = vpop.permute.xlu1 %202 }
  0x93   :  { %v209_v54 = vmul.f32 %v4929_v44, %v203_v25 }
  0x94   :  { %v183_v33 = vpop.permute.xlu0 %182 }
  0x95   :  { %v189_v41 = vmul.f32 %v4917_v31, %v183_v33  ;;  %v4951_v33 = vld [vmem:[%s6219_s9 + $0x38] sm:$0xff] }
  0x96   :  { %3876 = vmatpush3.msra.mxu0 %v4951_v33 }
  0x97   :  { %v213_v34 = vpop.permute.xlu1 %212  ;;  %3877 = vmatprep.subr.mxu0 %v4730_v1 }
  0x98   :  { %v219_v58 = vmul.f32 %v4931_v46, %v213_v34  ;;  %v4958_v34 = vld [vmem:[%s6219_s9 + $0x30] sm:$0xff] }
  0x99   :  { %v223_v53 = vpop.permute.xlu0 %222  ;;  %3878 = vmatpush3.msra.mxu0 %v4958_v34 }
  0x9a   :  { %v229_v59 = vmul.f32 %v4934_v51, %v223_v53  ;;  %3879 = vmatprep.subr.mxu0 %v4730_v1 }
  0x9b   :  { %3880 = vmatpush3.msra.mxu0 %v4965_v35 }
  0x9c   :  { %v233_v48 = vpop.permute.xlu1 %232  ;;  %3881 = vmatprep.subr.mxu0 %v4730_v1 }
  0x9d   :  { %v239_v63 = vmul.f32 %v4937_v56, %v233_v48  ;;  %3882 = vmatpush3.msra.mxu0 %v4972_v38 }
  0x9e   :  { %3883 = vmatprep.subr.mxu0 %v4730_v1 }
  0xa1   :  { %v243_v61 = vpop.permute.xlu1 %242 }
  0xa2   :  { %v249_v2 = vmul.f32 %v4941_v60, %v243_v61  ;;  %v5032_v61 = vld [vmem:[%s6221_s11 + $0x38] sm:$0xff] }
  0xd4   :  { %v4924_v37 = vpop.f32.mrf.mxu0 }
  0xd5   :  { %v169_v40 = vadd.f32 %v3464_v32, %v4924_v37 }
  0xd6   :  { %v3855_v43 = vpop.f32.mrf.mxu0 }
  0xd7   :  { %v180_v45 = vadd.f32 %v179_v39, %v169_v40  ;;  %v4979_v39 = vld [vmem:[%s6219_s9 + $0x18] sm:$0xff]  ;;  %v4986_v40 = vld [vmem:[%s6219_s9 + $0x10] sm:$0xff]  ;;  %v5007_v43 = vld [vmem:[%s6218_s8] ss:$0 sm:$0xff] }
  0xd8   :  { %3884 = vmatpush3.msra.mxu0 %v4979_v39 }
  0xd9   :  { %v190_v50 = vadd.f32 %v189_v41, %v180_v45  ;;  %3885 = vmatprep.subr.mxu0 %v4730_v1  ;;  %v4993_v41 = vld [vmem:[%s6219_s9 + $0x8] sm:$0xff] }
  0xda   :  { %3886 = vmatpush3.msra.mxu0 %v4986_v40 }
  0xdb   :  { %v200_v55 = vadd.f32 %v199_v49, %v190_v50  ;;  %3887 = vmatprep.subr.mxu0 %v4730_v1 }
  0xdc   :  { %3888 = vmatpush3.msra.mxu0 %v4993_v41 }
  0xdd   :  { %v210_v57 = vadd.f32 %v209_v54, %v200_v55  ;;  %3889 = vmatprep.subr.mxu0 %v4730_v1 }
  0xde   :  { %3890 = vmatpush3.msra.mxu0 %v5000_v42 }
  0xdf   :  { %v220_v62 = vadd.f32 %v219_v58, %v210_v57  ;;  %3913 = vmatprep.subr.mxu0 %v4730_v1 }
  0xe1   :  { %v230_v0 = vadd.f32 %v229_v59, %v220_v62  ;;  %v5039_v62 = vld [vmem:[%s6221_s11 + $0x30] sm:$0xff] }
  0xe3   :  { %v240_v4 = vadd.f32 %v239_v63, %v230_v0  ;;  %v5046_v63 = vld [vmem:[%s6221_s11 + $0x28] sm:$0xff]  ;;  %v5053_v0 = vld [vmem:[%s6221_s11 + $0x20] sm:$0xff] }
  0xe5   :  { %v250_v21 = vadd.f32 %v249_v2, %v240_v4  ;;  %v5060_v2 = vld [vmem:[%s6221_s11 + $0x18] sm:$0xff]  ;;  %v5067_v4 = vld [vmem:[%s6221_s11 + $0x10] sm:$0xff] }
  0xe7   :  { %v251_v22 = vmul.f32 1.442695, %v250_v21  ;;  %v254_v27 = vmul.f32 2.0, %v250_v21 }
  0xe9   :  { %4519 = vpow2.f32 %v251_v22  ;;  %v5081_v22 = vld [vmem:[%s6221_s11] sm:$0xff] }
  0xf6   :  { %v4520_v23 = vpop.eup %4519 }
  0xf7   :  { %v253_v24 = vadd.f32 1.0, %v4520_v23  ;;  %v5088_v23 = vld [vmem:[%s6220_s10] ss:$0 sm:$0xff] }
  0xf9   :  { %v255_v25 = vmul.f32 %v253_v24, %v253_v24 }
  0xfb   :  { %v256_v26 = vadd.f32 1.0, %v255_v25 }
  0xfd   :  { %4521 = vrcp.f32 %v256_v26 }
 0x10a   :  { %v4522_v29 = vpop.eup %4521 }
 0x10b   :  { %v258_v28 = vmul.f32 %v4522_v29, %v254_v27 }
 0x10d   :  { %v259_v32 = vsub.f32 %v250_v21, %v258_v28  ;;  %v5074_v21 = vld [vmem:[%s6221_s11 + $0x8] sm:$0xff] }
 0x10f   :  { %3873 = vmatmul.mubr.msk.f32.vlgmr.msra.gmra.mxu1 %vm266_vm2, %v259_v32 }
 0x110   :  { %3910 = vmatprep.mubr.msk.f32.mxu1 %vm4731_vm0, %v4730_v1  ;;  %3895 = vmatpush3.msra.mxu1 %v5032_v61 }
 0x111   :  { %3896 = vmatprep.subr.mxu1 %v4730_v1 }
 0x112   :  { %3897 = vmatpush3.msra.mxu1 %v5039_v62 }
 0x113   :  { %3898 = vmatprep.subr.mxu1 %v4730_v1 }
 0x114   :  { %3899 = vmatpush3.msra.mxu1 %v5046_v63 }
 0x115   :  { %3900 = vmatprep.subr.mxu1 %v4730_v1 }
 0x116   :  { %3901 = vmatpush3.msra.mxu1 %v5053_v0 }
 0x117   :  { %3902 = vmatprep.subr.mxu1 %v4730_v1 }
 0x118   :  { %3903 = vmatpush3.msra.mxu1 %v5060_v2 }
 0x119   :  { %3904 = vmatprep.subr.mxu1 %v4730_v1 }
 0x11a   :  { %3905 = vmatpush3.msra.mxu1 %v5067_v4 }
 0x11b   :  { %3906 = vmatprep.subr.mxu1 %v4730_v1 }
 0x11c   :  { %3907 = vmatpush3.msra.mxu1 %v5074_v21 }
 0x11d   :  { %3908 = vmatprep.subr.mxu1 %v4730_v1 }
 0x11e   :  { %3909 = vmatpush3.msra.mxu1 %v5081_v22 }
 0x11f   :  { %3932 = vmatprep.subr.mxu1 %v4730_v1 }
 0x1cf   :  { %v336_v45 = vpop.f32.mrf.mxu1 }
 0x1d0   :  { %v337_v47 = vadd.f32 %v5007_v43, %v336_v45 }
 0x1d1   :  { %v3874_v48 = vpop.f32.mrf.mxu1 }
 0x1d2   :  { %v340_v49 = vmul.f32 1.442695, %v337_v47  ;;  %v343_v55 = vmul.f32 2.0, %v337_v47 }
 0x1d4   :  { %4523 = vpow2.f32 %v340_v49 }
 0x1e1   :  { %v4524_v50 = vpop.eup %4523 }
 0x1e2   :  { %v342_v52 = vadd.f32 1.0, %v4524_v50 }
 0x1e4   :  { %v344_v53 = vmul.f32 %v342_v52, %v342_v52  ;;  %v5113_v52 = vld [vmem:[%s6222_s12] ss:$0 sm:$0xff] }
 0x1e6   :  { %v345_v54 = vadd.f32 1.0, %v344_v53  ;;  %v521_v53 = vstv %s516_s29  ;;  %s3494_s29 = sld [smem:[#allocation2 + $0xd]] }
 0x1e8   :  { %4525 = vrcp.f32 %v345_v54 }
 0x1f5   :  { %v4526_v57 = vpop.eup %4525 }
 0x1f6   :  { %v347_v58 = vmul.f32 %v4526_v57, %v343_v55  ;;  %v523_v55 = vstv %s3471_s30  ;;  %s3493_s30 = sld [smem:[#allocation2 + $0xc]] }
 0x1f8   :  { %v348_v59 = vsub.f32 %v337_v47, %v347_v58  ;;  %v522_v58 = vmul.f32 %v521_v53, %v4826_v3 }
 0x1fa   :  { %3892 = vmatmul.mubr.msk.f32.vlgmr.msra.gmra.mxu0 %vm266_vm2, %v348_v59 }
 0x1fb   :  { %3914 = vmatpush3.msra.mxu0 %v4859_v13  ;;  %3929 = vmatprep.mubr.msk.f32.mxu0 %vm4731_vm0, %v4730_v1 }
 0x1fc   :  { %3915 = vmatprep.subr.mxu0 %v4730_v1 }
 0x1fd   :  { %3916 = vmatpush3.msra.mxu0 %v4866_v14 }
 0x1fe   :  { %3917 = vmatprep.subr.mxu0 %v4730_v1 }
 0x1ff   :  { %3918 = vmatpush3.msra.mxu0 %v4873_v15 }
 0x200   :  { %3919 = vmatprep.subr.mxu0 %v4730_v1 }
 0x201   :  { %3920 = vmatpush3.msra.mxu0 %v4880_v16 }
 0x202   :  { %3921 = vmatprep.subr.mxu0 %v4730_v1 }
 0x203   :  { %3922 = vmatpush3.msra.mxu0 %v4887_v17 }
 0x204   :  { %3923 = vmatprep.subr.mxu0 %v4730_v1 }
 0x205   :  { %3924 = vmatpush3.msra.mxu0 %v4894_v18 }
 0x206   :  { %3925 = vmatprep.subr.mxu0 %v4730_v1 }
 0x207   :  { %3926 = vmatpush3.msra.mxu0 %v4901_v19 }
 0x208   :  { %3927 = vmatprep.subr.mxu0 %v4730_v1 }
 0x209   :  { %3928 = vmatpush3.msra.mxu0 %v4908_v20 }
 0x20a   :  { %3951 = vmatprep.subr.mxu0 %v4730_v1 }
 0x2ba   :  { %v424_v24 = vpop.f32.mrf.mxu0 }
 0x2bb   :  { %v425_v25 = vadd.f32 %v5088_v23, %v424_v24 }
 0x2bc   :  { %v3893_v26 = vpop.f32.mrf.mxu0 }
 0x2bd   :  { %v428_v27 = vmul.f32 1.442695, %v425_v25  ;;  %v431_v47 = vmul.f32 2.0, %v425_v25 }
 0x2bf   :  { %4527 = vpow2.f32 %v428_v27  ;;  %v528_v27 = vstv %s3472_s0  ;;  %s3514_s0 = sld [smem:[#allocation2 + $0x15]] }
 0x2cc   :  { %v4528_v29 = vpop.eup %4527 }
 0x2cd   :  { %v430_v28 = vadd.f32 1.0, %v4528_v29  ;;  %v533_v29 = vld [vmem:[%s6212_s2] sm:$0xff] }
 0x2cf   :  { %v432_v32 = vmul.f32 %v430_v28, %v430_v28  ;;  %v534_v28 = vstv %s3474_s17  ;;  %s3517_s17 = sld [smem:[#allocation2 + $0x18]] }
 0x2d1   :  { %v433_v45 = vadd.f32 1.0, %v432_v32 }
 0x2d3   :  { %4529 = vrcp.f32 %v433_v45 }
 0x2e0   :  { %v4530_v48 = vpop.eup %4529 }
 0x2e1   :  { %v435_v49 = vmul.f32 %v4530_v48, %v431_v47  ;;  %v535_v48 = vmul.f32 %v534_v28, %v533_v29 }
 0x2e3   :  { %v436_v50 = vsub.f32 %v425_v25, %v435_v49  ;;  %v530_v25 = vstv %s3473_s14  ;;  %s3495_s14 = sld [smem:[#allocation2 + $0xe]] }
 0x2e4   :  { %v531_v45 = vmul.f32 %v530_v25, %v4826_v3  ;;  %v3476_v3 = vld [vmem:[%s6211_s1 + $0x1] ss:$0 sm:$0xff] }
 0x2e5   :  { %3911 = vmatmul.mubr.msk.f32.vlgmr.msra.gmra.mxu1 %vm266_vm2, %v436_v50 }
 0x2e6   :  { %3933 = vmatpush3.msra.mxu1 %v4951_v33  ;;  %3948 = vmatprep.mubr.msk.f32.mxu1 %vm4731_vm0, %v4730_v1 }
 0x2e7   :  { %3934 = vmatprep.subr.mxu1 %v4730_v1 }
 0x2e8   :  { %3935 = vmatpush3.msra.mxu1 %v4958_v34 }
 0x2e9   :  { %3936 = vmatprep.subr.mxu1 %v4730_v1 }
 0x2ea   :  { %3937 = vmatpush3.msra.mxu1 %v4965_v35 }
 0x2eb   :  { %3938 = vmatprep.subr.mxu1 %v4730_v1 }
 0x2ec   :  { %3939 = vmatpush3.msra.mxu1 %v4972_v38 }
 0x2ed   :  { %3940 = vmatprep.subr.mxu1 %v4730_v1 }
 0x2ee   :  { %3941 = vmatpush3.msra.mxu1 %v4979_v39 }
 0x2ef   :  { %3942 = vmatprep.subr.mxu1 %v4730_v1 }
 0x2f0   :  { %3943 = vmatpush3.msra.mxu1 %v4986_v40 }
 0x2f1   :  { %3944 = vmatprep.subr.mxu1 %v4730_v1 }
 0x2f2   :  { %3945 = vmatpush3.msra.mxu1 %v4993_v41 }
 0x2f3   :  { %3946 = vmatprep.subr.mxu1 %v4730_v1 }
 0x2f4   :  { %3947 = vmatpush3.msra.mxu1 %v5000_v42 }
 0x2f5   :  { %3970 = vmatprep.subr.mxu1 %v4730_v1 }
 0x3a5   :  { %v512_v54 = vpop.f32.mrf.mxu1 }
 0x3a6   :  { %v513_v57 = vadd.f32 %v5113_v52, %v512_v54 }
 0x3a7   :  { %v3912_v59 = vpop.f32.mrf.mxu1 }
 0x3a8   :  { %v524_v24 = vmul.f32 %v523_v55, %v513_v57  ;;  %v542_v55 = vadd.f32 %v3476_v3, %v4924_v37 }
 0x3aa   :  { %v525_v26 = vsub.f32 %v522_v58, %v524_v24 }
 0x3ac   :  { %v3475_v32 = vclamps-f32 %v525_v26, 1.0 }
 0x3ae   :  { %v529_v47 = vmul.f32 %v3475_v32, %v528_v27 }
 0x3b0   :  { %v532_v49 = vadd.f32 %v531_v45, %v529_v47 }
 0x3b2   :  { %v5121_v50 = vadd.f32 %v535_v48, %v532_v49 }
 0x3b4   :  { %551 = vperm.xlu1 %4447, %v5121_v50   ;;  %545 = vperm.xlu0 %4446, %v5121_v50  }
 0x3b8   :  { %4448 = vset.pattern.permute.xlu1 %v4732_v5  ;;  %4449 = vset.pattern.permute.xlu0 %v4734_v7 }
 0x3b9   :  { %557 = vperm.xlu1 %4448, %v5121_v50   ;;  %563 = vperm.xlu0 %4449, %v5121_v50  }
 0x3bd   :  { %4450 = vset.pattern.permute.xlu1 %v4736_v9  ;;  %4452 = vset.pattern.permute.xlu0 %v4738_v11 }
 0x3be   :  { %569 = vperm.xlu1 %4450, %v5121_v50   ;;  %581 = vperm.xlu0 %4452, %v5121_v50  }
 0x3c2   :  { %4451 = vset.pattern.permute.xlu1 %v4737_v10  ;;  %4455 = vset.pattern.permute.xlu0 %v6224_v8 }
 0x3c3   :  { %575 = vperm.xlu1 %4451, %v5121_v50  }
 0x3c7   :  { %4453 = vset.pattern.permute.xlu1 %v4739_v12 }
 0x3c8   :  { %587 = vperm.xlu1 %4453, %v5121_v50  }
 0x3cc   :  { %4454 = vset.pattern.permute.xlu1 %v4733_v6 }
 0x42f   :  { %v552_v53 = vpop.permute.xlu1 %551  ;;  %v546_v54 = vpop.permute.xlu0 %545 }
 0x430   :  { %v548_v57 = vmul.f32 %v546_v54, %v4915_v30  ;;  %v554_v58 = vmul.f32 %v552_v53, %v4917_v31 }
 0x432   :  { %v549_v59 = vadd.f32 %v548_v57, %v542_v55 }
 0x434   :  { %v558_v24 = vpop.permute.xlu1 %557  ;;  %v555_v25 = vadd.f32 %v554_v58, %v549_v59  ;;  %v564_v27 = vpop.permute.xlu0 %563 }
 0x435   :  { %v560_v26 = vmul.f32 %v558_v24, %v4922_v36  ;;  %v566_v28 = vmul.f32 %v564_v27, %v4929_v44 }
 0x437   :  { %v561_v29 = vadd.f32 %v560_v26, %v555_v25 }
 0x439   :  { %v570_v32 = vpop.permute.xlu1 %569  ;;  %v567_v45 = vadd.f32 %v566_v28, %v561_v29  ;;  %v582_v48 = vpop.permute.xlu0 %581 }
 0x43a   :  { %v572_v47 = vmul.f32 %v570_v32, %v4931_v46  ;;  %v584_v53 = vmul.f32 %v582_v48, %v4937_v56 }
 0x43c   :  { %v573_v3 = vadd.f32 %v572_v47, %v567_v45 }
 0x43e   :  { %v576_v49 = vpop.permute.xlu1 %575 }
 0x43f   :  { %v578_v54 = vmul.f32 %v576_v49, %v4934_v51 }
 0x441   :  { %v579_v55 = vadd.f32 %v578_v54, %v573_v3 }
 0x443   :  { %v588_v57 = vpop.permute.xlu1 %587  ;;  %v585_v58 = vadd.f32 %v584_v53, %v579_v55 }
 0x444   :  { %v590_v59 = vmul.f32 %v588_v57, %v4941_v60 }
 0x446   :  { %v591_v24 = vadd.f32 %v590_v59, %v585_v58 }
 0x448   :  { %v592_v25 = vmul.f32 1.442695, %v591_v24  ;;  %v595_v32 = vmul.f32 2.0, %v591_v24 }
 0x44a   :  { %4531 = vpow2.f32 %v592_v25 }
 0x457   :  { %v4532_v26 = vpop.eup %4531 }
 0x458   :  { %v594_v27 = vadd.f32 1.0, %v4532_v26 }
 0x45a   :  { %v596_v29 = vmul.f32 %v594_v27, %v594_v27 }
 0x45c   :  { %v597_v28 = vadd.f32 1.0, %v596_v29 }
 0x45e   :  { %4533 = vrcp.f32 %v597_v28 }
 0x46b   :  { %v4534_v8 = vpop.eup %4533 }
 0x46c   :  { %v599_v45 = vmul.f32 %v4534_v8, %v595_v32 }
 0x46e   :  { %v600_v47 = vsub.f32 %v591_v24, %v599_v45 }
 0x470   :  { %3930 = vmatmul.mubr.msk.f32.vlgmr.msra.gmra.mxu0 %vm266_vm2, %v600_v47 }
 0x471   :  { %3952 = vmatpush3.msra.mxu0 %v5032_v61  ;;  %3967 = vmatprep.mubr.msk.f32.mxu0 %vm4731_vm0, %v4730_v1 }
 0x472   :  { %3953 = vmatprep.subr.mxu0 %v4730_v1 }
 0x473   :  { %3954 = vmatpush3.msra.mxu0 %v5039_v62 }
 0x474   :  { %3955 = vmatprep.subr.mxu0 %v4730_v1 }
 0x475   :  { %3956 = vmatpush3.msra.mxu0 %v5046_v63 }
 0x476   :  { %3957 = vmatprep.subr.mxu0 %v4730_v1 }
 0x477   :  { %3958 = vmatpush3.msra.mxu0 %v5053_v0 }
 0x478   :  { %3959 = vmatprep.subr.mxu0 %v4730_v1 }
 0x479   :  { %3960 = vmatpush3.msra.mxu0 %v5060_v2 }
 0x47a   :  { %3961 = vmatprep.subr.mxu0 %v4730_v1 }
 0x47b   :  { %3962 = vmatpush3.msra.mxu0 %v5067_v4 }
 0x47c   :  { %3963 = vmatprep.subr.mxu0 %v4730_v1 }
 0x47d   :  { %3964 = vmatpush3.msra.mxu0 %v5074_v21 }
 0x47e   :  { %3965 = vmatprep.subr.mxu0 %v4730_v1 }
 0x47f   :  { %3966 = vmatpush3.msra.mxu0 %v5081_v22 }
 0x480   :  { %3989 = vmatprep.subr.mxu0 %v4730_v1 }
 0x530   :  { %v670_v8 = vpop.f32.mrf.mxu0 }
 0x531   :  { %v671_v48 = vadd.f32 %v5007_v43, %v670_v8 }
 0x532   :  { %v3931_v49 = vpop.f32.mrf.mxu0 }
 0x533   :  { %v674_v3 = vmul.f32 1.442695, %v671_v48  ;;  %v677_v58 = vmul.f32 2.0, %v671_v48 }
 0x535   :  { %4535 = vpow2.f32 %v674_v3 }
 0x542   :  { %v4536_v54 = vpop.eup %4535 }
 0x543   :  { %v676_v53 = vadd.f32 1.0, %v4536_v54 }
 0x545   :  { %v678_v55 = vmul.f32 %v676_v53, %v676_v53 }
 0x547   :  { %v679_v57 = vadd.f32 1.0, %v678_v55  ;;  %v843_v55 = vstv %s3480_s4 }
 0x549   :  { %4537 = vrcp.f32 %v679_v57  ;;  %v845_v57 = vstv %s3481_s6  ;;  %s4740_s6 = smov [#allocation5]  }
 0x556   :  { %v4538_v59 = vpop.eup %4537 }
 0x557   :  { %v681_v24 = vmul.f32 %v4538_v59, %v677_v58 }
 0x559   :  { %v682_v25 = vsub.f32 %v671_v48, %v681_v24  ;;  %v844_v24 = vmul.f32 %v843_v55, %v5121_v50 }
 0x55b   :  { %3949 = vmatmul.mubr.msk.f32.vlgmr.msra.gmra.mxu1 %vm266_vm2, %v682_v25 }
 0x55c   :  { %3971 = vmatpush3.msra.mxu1 %v4859_v13  ;;  %3986 = vmatprep.mubr.msk.f32.mxu1 %vm4731_vm0, %v4730_v1 }
 0x55d   :  { %3972 = vmatprep.subr.mxu1 %v4730_v1 }
 0x55e   :  { %3973 = vmatpush3.msra.mxu1 %v4866_v14 }
 0x55f   :  { %3974 = vmatprep.subr.mxu1 %v4730_v1 }
 0x560   :  { %3975 = vmatpush3.msra.mxu1 %v4873_v15 }
 0x561   :  { %3976 = vmatprep.subr.mxu1 %v4730_v1 }
 0x562   :  { %3977 = vmatpush3.msra.mxu1 %v4880_v16 }
 0x563   :  { %3978 = vmatprep.subr.mxu1 %v4730_v1 }
 0x564   :  { %3979 = vmatpush3.msra.mxu1 %v4887_v17 }
 0x565   :  { %3980 = vmatprep.subr.mxu1 %v4730_v1 }
 0x566   :  { %3981 = vmatpush3.msra.mxu1 %v4894_v18 }
 0x567   :  { %3982 = vmatprep.subr.mxu1 %v4730_v1 }
 0x568   :  { %3983 = vmatpush3.msra.mxu1 %v4901_v19 }
 0x569   :  { %3984 = vmatprep.subr.mxu1 %v4730_v1 }
 0x56a   :  { %3985 = vmatpush3.msra.mxu1 %v4908_v20 }
 0x56b   :  { %4008 = vmatprep.subr.mxu1 %v4730_v1 }
 0x61b   :  { %v752_v26 = vpop.f32.mrf.mxu1 }
 0x61c   :  { %v753_v27 = vadd.f32 %v5088_v23, %v752_v26 }
 0x61d   :  { %v3950_v29 = vpop.f32.mrf.mxu1 }
 0x61e   :  { %v756_v28 = vmul.f32 1.442695, %v753_v27  ;;  %v759_v48 = vmul.f32 2.0, %v753_v27  ;;  %v852_v29 = vstv %s3483_s20  ;;  %s3524_s20 = sld [smem:[#allocation2 + $0x19]] }
 0x620   :  { %4539 = vpow2.f32 %v756_v28  ;;  %v3486_v28 = vld [vmem:[%s6212_s2 + $0x8] sm:$0xff] }
 0x62d   :  { %v4540_v32 = vpop.eup %4539 }
 0x62e   :  { %v758_v45 = vadd.f32 1.0, %v4540_v32  ;;  %v857_v32 = vstv %s3484_s22  ;;  %s3527_s22 = sld [smem:[#allocation2 + $0x1c]] }
 0x630   :  { %v760_v47 = vmul.f32 %v758_v45, %v758_v45 }
 0x632   :  { %v761_v8 = vadd.f32 1.0, %v760_v47 }
 0x634   :  { %4541 = vrcp.f32 %v761_v8  ;;  %v853_v8 = vmul.f32 %v852_v29, %v5121_v50  ;;  %v3487_v50 = vld [vmem:[%s6211_s1 + $0x2] ss:$0 sm:$0xff] }
 0x641   :  { %v4542_v49 = vpop.eup %4541 }
 0x642   :  { %v763_v3 = vmul.f32 %v4542_v49, %v759_v48  ;;  %v858_v48 = vmul.f32 %v3486_v28, %v857_v32 }
 0x644   :  { %v764_v54 = vsub.f32 %v753_v27, %v763_v3  ;;  %v850_v27 = vstv %s3482_s21  ;;  %s3525_s21 = sld [smem:[#allocation2 + $0x1a]] }
 0x646   :  { %3968 = vmatmul.mubr.msk.f32.vlgmr.msra.gmra.mxu0 %vm266_vm2, %v764_v54 }
 0x647   :  { %3990 = vmatpush3.msra.mxu0 %v4951_v33  ;;  %4005 = vmatprep.mubr.msk.f32.mxu0 %vm4731_vm0, %v4730_v1 }
 0x648   :  { %3991 = vmatprep.subr.mxu0 %v4730_v1 }
 0x649   :  { %3992 = vmatpush3.msra.mxu0 %v4958_v34 }
 0x64a   :  { %3993 = vmatprep.subr.mxu0 %v4730_v1 }
 0x64b   :  { %3994 = vmatpush3.msra.mxu0 %v4965_v35 }
 0x64c   :  { %3995 = vmatprep.subr.mxu0 %v4730_v1 }
 0x64d   :  { %3996 = vmatpush3.msra.mxu0 %v4972_v38 }
 0x64e   :  { %3997 = vmatprep.subr.mxu0 %v4730_v1 }
 0x64f   :  { %3998 = vmatpush3.msra.mxu0 %v4979_v39 }
 0x650   :  { %3999 = vmatprep.subr.mxu0 %v4730_v1 }
 0x651   :  { %4000 = vmatpush3.msra.mxu0 %v4986_v40 }
 0x652   :  { %4001 = vmatprep.subr.mxu0 %v4730_v1 }
 0x653   :  { %4002 = vmatpush3.msra.mxu0 %v4993_v41 }
 0x654   :  { %4003 = vmatprep.subr.mxu0 %v4730_v1 }
 0x655   :  { %4004 = vmatpush3.msra.mxu0 %v5000_v42 }
 0x656   :  { %4027 = vmatprep.subr.mxu0 %v4730_v1 }
 0x706   :  { %v834_v53 = vpop.f32.mrf.mxu0 }
 0x707   :  { %v835_v58 = vadd.f32 %v5113_v52, %v834_v53  ;;  %v865_v53 = vadd.f32 %v3487_v50, %v4924_v37 }
 0x708   :  { %v3969_v59 = vpop.f32.mrf.mxu0 }
 0x709   :  { %v846_v25 = vmul.f32 %v845_v57, %v835_v58 }
 0x70b   :  { %v847_v26 = vsub.f32 %v844_v24, %v846_v25 }
 0x70d   :  { %v3485_v45 = vclamps-f32 %v847_v26, 1.0 }
 0x70f   :  { %v851_v47 = vmul.f32 %v3485_v45, %v850_v27 }
 0x711   :  { %v854_v49 = vadd.f32 %v853_v8, %v851_v47 }
 0x713   :  { %v5216_v3 = vadd.f32 %v858_v48, %v854_v49 }
 0x715   :  { %874 = vperm.xlu0 %4455, %v5216_v3   ;;  %868 = vperm.xlu1 %4454, %v5216_v3  }
 0x719   :  { %4458 = vset.pattern.permute.xlu0 %v4736_v9  ;;  %4456 = vset.pattern.permute.xlu1 %v4732_v5 }
 0x71a   :  { %892 = vperm.xlu0 %4458, %v5216_v3   ;;  %880 = vperm.xlu1 %4456, %v5216_v3  }
 0x71e   :  { %4461 = vset.pattern.permute.xlu0 %v4739_v12  ;;  %4457 = vset.pattern.permute.xlu1 %v4734_v7 }
 0x71f   :  { %910 = vperm.xlu0 %4461, %v5216_v3   ;;  %886 = vperm.xlu1 %4457, %v5216_v3  }
 0x723   :  { %4459 = vset.pattern.permute.xlu1 %v4737_v10  ;;  %4464 = vset.pattern.permute.xlu0 %v4732_v5 }
 0x724   :  { %898 = vperm.xlu1 %4459, %v5216_v3  }
 0x728   :  { %4460 = vset.pattern.permute.xlu1 %v4738_v11 }
 0x729   :  { %904 = vperm.xlu1 %4460, %v5216_v3  }
 0x72d   :  { %4462 = vset.pattern.permute.xlu1 %v4733_v6 }
 0x790   :  { %v869_v54 = vpop.permute.xlu1 %868  ;;  %v875_v57 = vpop.permute.xlu0 %874 }
 0x791   :  { %v871_v55 = vmul.f32 %v869_v54, %v4915_v30  ;;  %v877_v59 = vmul.f32 %v875_v57, %v4917_v31 }
 0x793   :  { %v872_v58 = vadd.f32 %v871_v55, %v865_v53 }
 0x795   :  { %v881_v24 = vpop.permute.xlu1 %880  ;;  %v878_v25 = vadd.f32 %v877_v59, %v872_v58  ;;  %v893_v32 = vpop.permute.xlu0 %892 }
 0x796   :  { %v883_v26 = vmul.f32 %v881_v24, %v4922_v36  ;;  %v895_v47 = vmul.f32 %v893_v32, %v4931_v46 }
 0x798   :  { %v884_v29 = vadd.f32 %v883_v26, %v878_v25 }
 0x79a   :  { %v887_v27 = vpop.permute.xlu1 %886  ;;  %v911_v50 = vpop.permute.xlu0 %910 }
 0x79b   :  { %v889_v28 = vmul.f32 %v887_v27, %v4929_v44  ;;  %v913_v57 = vmul.f32 %v911_v50, %v4941_v60 }
 0x79d   :  { %v890_v45 = vadd.f32 %v889_v28, %v884_v29 }
 0x79f   :  { %v899_v8 = vpop.permute.xlu1 %898  ;;  %v896_v48 = vadd.f32 %v895_v47, %v890_v45 }
 0x7a0   :  { %v901_v49 = vmul.f32 %v899_v8, %v4934_v51 }
 0x7a2   :  { %v902_v53 = vadd.f32 %v901_v49, %v896_v48 }
 0x7a4   :  { %v905_v54 = vpop.permute.xlu1 %904 }
 0x7a5   :  { %v907_v55 = vmul.f32 %v905_v54, %v4937_v56 }
 0x7a7   :  { %v908_v58 = vadd.f32 %v907_v55, %v902_v53 }
 0x7a9   :  { %v914_v59 = vadd.f32 %v913_v57, %v908_v58 }
 0x7ab   :  { %v915_v24 = vmul.f32 1.442695, %v914_v59  ;;  %v918_v28 = vmul.f32 2.0, %v914_v59 }
 0x7ad   :  { %4543 = vpow2.f32 %v915_v24 }
 0x7ba   :  { %v4544_v25 = vpop.eup %4543 }
 0x7bb   :  { %v917_v26 = vadd.f32 1.0, %v4544_v25 }
 0x7bd   :  { %v919_v27 = vmul.f32 %v917_v26, %v917_v26 }
 0x7bf   :  { %v920_v29 = vadd.f32 1.0, %v919_v27 }
 0x7c1   :  { %4545 = vrcp.f32 %v920_v29 }
 0x7ce   :  { %v4546_v32 = vpop.eup %4545 }
 0x7cf   :  { %v922_v45 = vmul.f32 %v4546_v32, %v918_v28 }
 0x7d1   :  { %v923_v47 = vsub.f32 %v914_v59, %v922_v45  ;;  %v1173_v45 = vstv %s3493_s30  ;;  %s3536_s30 = sld [smem:[#allocation2 + $0x1f]] }
 0x7d3   :  { %3987 = vmatmul.mubr.msk.f32.vlgmr.msra.gmra.mxu1 %vm266_vm2, %v923_v47  ;;  %v1175_v47 = vstv %s3494_s29  ;;  %s3535_s29 = sld [smem:[#allocation2 + $0x1e]] }
 0x7d4   :  { %4009 = vmatpush3.msra.mxu1 %v5032_v61  ;;  %4024 = vmatprep.mubr.msk.f32.mxu1 %vm4731_vm0, %v4730_v1 }
 0x7d5   :  { %4010 = vmatprep.subr.mxu1 %v4730_v1 }
 0x7d6   :  { %4011 = vmatpush3.msra.mxu1 %v5039_v62 }
 0x7d7   :  { %4012 = vmatprep.subr.mxu1 %v4730_v1 }
 0x7d8   :  { %4013 = vmatpush3.msra.mxu1 %v5046_v63 }
 0x7d9   :  { %4014 = vmatprep.subr.mxu1 %v4730_v1 }
 0x7da   :  { %4015 = vmatpush3.msra.mxu1 %v5053_v0 }
 0x7db   :  { %4016 = vmatprep.subr.mxu1 %v4730_v1 }
 0x7dc   :  { %4017 = vmatpush3.msra.mxu1 %v5060_v2 }
 0x7dd   :  { %4018 = vmatprep.subr.mxu1 %v4730_v1 }
 0x7de   :  { %4019 = vmatpush3.msra.mxu1 %v5067_v4 }
 0x7df   :  { %4020 = vmatprep.subr.mxu1 %v4730_v1 }
 0x7e0   :  { %4021 = vmatpush3.msra.mxu1 %v5074_v21 }
 0x7e1   :  { %4022 = vmatprep.subr.mxu1 %v4730_v1 }
 0x7e2   :  { %4023 = vmatpush3.msra.mxu1 %v5081_v22 }
 0x7e3   :  { %4046 = vmatprep.subr.mxu1 %v4730_v1 }
 0x893   :  { %v993_v8 = vpop.f32.mrf.mxu1 }
 0x894   :  { %v994_v48 = vadd.f32 %v5007_v43, %v993_v8  ;;  %v1180_v8 = vstv %s3495_s14  ;;  %s3513_s14 = sld [smem:[#allocation2 + $0x14]] }
 0x895   :  { %v3988_v49 = vpop.f32.mrf.mxu1 }
 0x896   :  { %v997_v50 = vmul.f32 1.442695, %v994_v48  ;;  %v1000_v58 = vmul.f32 2.0, %v994_v48 }
 0x898   :  { %4547 = vpow2.f32 %v997_v50  ;;  %v1176_v50 = vmul.f32 %v1175_v47, %v5216_v3 }
 0x8a5   :  { %v4548_v54 = vpop.eup %4547 }
 0x8a6   :  { %v999_v53 = vadd.f32 1.0, %v4548_v54 }
 0x8a8   :  { %v1001_v55 = vmul.f32 %v999_v53, %v999_v53 }
 0x8aa   :  { %v1002_v57 = vadd.f32 1.0, %v1001_v55 }
 0x8ac   :  { %4549 = vrcp.f32 %v1002_v57  ;;  %v6226_v57 = vmov 1  }
 0x8b9   :  { %v4550_v59 = vpop.eup %4549 }
 0x8ba   :  { %v1004_v24 = vmul.f32 %v4550_v59, %v1000_v58  ;;  %v3498_v58 = vld [vmem:[%s6211_s1 + $0x3] ss:$0 sm:$0xff] }
 0x8bc   :  { %v1005_v25 = vsub.f32 %v994_v48, %v1004_v24  ;;  %v1188_v24 = vadd.f32 %v3498_v58, %v4924_v37 }
 0x8be   :  { %4006 = vmatmul.mubr.msk.f32.vlgmr.msra.gmra.mxu0 %vm266_vm2, %v1005_v25 }
 0x8bf   :  { %4028 = vmatpush3.msra.mxu0 %v4859_v13  ;;  %4043 = vmatprep.mubr.msk.f32.mxu0 %vm4731_vm0, %v4730_v1 }
 0x8c0   :  { %4029 = vmatprep.subr.mxu0 %v4730_v1 }
 0x8c1   :  { %4030 = vmatpush3.msra.mxu0 %v4866_v14 }
 0x8c2   :  { %4031 = vmatprep.subr.mxu0 %v4730_v1 }
 0x8c3   :  { %4032 = vmatpush3.msra.mxu0 %v4873_v15 }
 0x8c4   :  { %4033 = vmatprep.subr.mxu0 %v4730_v1 }
 0x8c5   :  { %4034 = vmatpush3.msra.mxu0 %v4880_v16 }
 0x8c6   :  { %4035 = vmatprep.subr.mxu0 %v4730_v1 }
 0x8c7   :  { %4036 = vmatpush3.msra.mxu0 %v4887_v17 }
 0x8c8   :  { %4037 = vmatprep.subr.mxu0 %v4730_v1 }
 0x8c9   :  { %4038 = vmatpush3.msra.mxu0 %v4894_v18 }
 0x8ca   :  { %4039 = vmatprep.subr.mxu0 %v4730_v1 }
 0x8cb   :  { %4040 = vmatpush3.msra.mxu0 %v4901_v19 }
 0x8cc   :  { %4041 = vmatprep.subr.mxu0 %v4730_v1 }
 0x8cd   :  { %4042 = vmatpush3.msra.mxu0 %v4908_v20 }
 0x8ce   :  { %4065 = vmatprep.subr.mxu0 %v4730_v1 }
 0x97e   :  { %v1075_v13 = vpop.f32.mrf.mxu0 }
 0x97f   :  { %v1076_v14 = vadd.f32 %v5088_v23, %v1075_v13 }
 0x980   :  { %v4007_v15 = vpop.f32.mrf.mxu0 }
 0x981   :  { %v1079_v16 = vmul.f32 1.442695, %v1076_v14  ;;  %v1082_v29 = vmul.f32 2.0, %v1076_v14 }
 0x983   :  { %4551 = vpow2.f32 %v1079_v16 }
 0x990   :  { %v4552_v17 = vpop.eup %4551 }
 0x991   :  { %v1081_v26 = vadd.f32 1.0, %v4552_v17 }
 0x993   :  { %v1083_v27 = vmul.f32 %v1081_v26, %v1081_v26 }
 0x995   :  { %v1084_v18 = vadd.f32 1.0, %v1083_v27 }
 0x997   :  { %4553 = vrcp.f32 %v1084_v18 }
 0x9a4   :  { %v4554_v28 = vpop.eup %4553 }
 0x9a5   :  { %v1086_v19 = vmul.f32 %v4554_v28, %v1082_v29 }
 0x9a7   :  { %v1087_v32 = vsub.f32 %v1076_v14, %v1086_v19 }
 0x9a9   :  { %4025 = vmatmul.mubr.msk.f32.vlgmr.msra.gmra.mxu1 %vm266_vm2, %v1087_v32 }
 0x9aa   :  { %4047 = vmatpush3.msra.mxu1 %v4951_v33  ;;  %4062 = vmatprep.mubr.msk.f32.mxu1 %vm4731_vm0, %v4730_v1  ;;  %v1166_v33 = vstv %s3491_s27  ;;  %s3504_s27 = sld [smem:[#allocation2 + $0x11]] }
 0x9ab   :  { %4048 = vmatprep.subr.mxu1 %v4730_v1 }
 0x9ac   :  { %4049 = vmatpush3.msra.mxu1 %v4958_v34  ;;  %v1168_v34 = vstv %s3492_s28  ;;  %s3506_s28 = sld [smem:[#allocation2 + $0x13]] }
 0x9ad   :  { %4050 = vmatprep.subr.mxu1 %v4730_v1 }
 0x9ae   :  { %4051 = vmatpush3.msra.mxu1 %v4965_v35 }
 0x9af   :  { %4052 = vmatprep.subr.mxu1 %v4730_v1 }
 0x9b0   :  { %4053 = vmatpush3.msra.mxu1 %v4972_v38 }
 0x9b1   :  { %4054 = vmatprep.subr.mxu1 %v4730_v1 }
 0x9b2   :  { %4055 = vmatpush3.msra.mxu1 %v4979_v39  ;;  %v1167_v39 = vmul.f32 %v1166_v33, %v5216_v3 }
 0x9b3   :  { %4056 = vmatprep.subr.mxu1 %v4730_v1 }
 0x9b4   :  { %4057 = vmatpush3.msra.mxu1 %v4986_v40 }
 0x9b5   :  { %4058 = vmatprep.subr.mxu1 %v4730_v1 }
 0x9b6   :  { %4059 = vmatpush3.msra.mxu1 %v4993_v41 }
 0x9b7   :  { %4060 = vmatprep.subr.mxu1 %v4730_v1 }
 0x9b8   :  { %4061 = vmatpush3.msra.mxu1 %v5000_v42  ;;  %v3497_v42 = vld [vmem:[%s6212_s2 + $0x10] sm:$0xff] }
 0x9b9   :  { %4084 = vmatprep.subr.mxu1 %v4730_v1  ;;  %v1181_v54 = vmul.f32 %v3497_v42, %v1180_v8 }
 0xa69   :  { %v1157_v20 = vpop.f32.mrf.mxu1 }
 0xa6a   :  { %v1158_v35 = vadd.f32 %v5113_v52, %v1157_v20 }
 0xa6b   :  { %v4026_v38 = vpop.f32.mrf.mxu1 }
 0xa6c   :  { %v1169_v40 = vmul.f32 %v1168_v34, %v1158_v35 }
 0xa6e   :  { %v1170_v41 = vsub.f32 %v1167_v39, %v1169_v40 }
 0xa70   :  { %v3496_v48 = vclamps-f32 %v1170_v41, 1.0 }
 0xa72   :  { %v1174_v49 = vmul.f32 %v3496_v48, %v1173_v45 }
 0xa74   :  { %v1177_v53 = vadd.f32 %v1176_v50, %v1174_v49 }
 0xa76   :  { %v5311_v55 = vadd.f32 %v1181_v54, %v1177_v53 }
 0xa78   :  { %1203 = vperm.xlu0 %4464, %v5311_v55   ;;  %1191 = vperm.xlu1 %4462, %v5311_v55  }
 0xa7c   :  { %4467 = vset.pattern.permute.xlu0 %v4737_v10  ;;  %4463 = vset.pattern.permute.xlu1 %v6226_v57 }
 0xa7d   :  { %1221 = vperm.xlu0 %4467, %v5311_v55   ;;  %1197 = vperm.xlu1 %4463, %v5311_v55  }
 0xa81   :  { %4465 = vset.pattern.permute.xlu1 %v4734_v7  ;;  %4470 = vset.pattern.permute.xlu0 %v4733_v6 }
 0xa82   :  { %1209 = vperm.xlu1 %4465, %v5311_v55  }
 0xa86   :  { %4466 = vset.pattern.permute.xlu1 %v4736_v9 }
 0xa87   :  { %1215 = vperm.xlu1 %4466, %v5311_v55  }
 0xa8b   :  { %4468 = vset.pattern.permute.xlu1 %v4738_v11 }
 0xa8c   :  { %1227 = vperm.xlu1 %4468, %v5311_v55  }
 0xa90   :  { %4469 = vset.pattern.permute.xlu1 %v4739_v12 }
 0xa91   :  { %1233 = vperm.xlu1 %4469, %v5311_v55  }
 0xa95   :  { %4471 = vset.pattern.permute.xlu1 %v6226_v57 }
 0xaf3   :  { %v1192_v3 = vpop.permute.xlu1 %1191  ;;  %v1204_v15 = vpop.permute.xlu0 %1203 }
 0xaf4   :  { %v1194_v59 = vmul.f32 %v1192_v3, %v4915_v30  ;;  %v1206_v17 = vmul.f32 %v1204_v15, %v4922_v36  ;;  %v5388_v15 = vld [vmem:[%s6217_s7 + $0x20] sm:$0xff] }
 0xaf6   :  { %v1195_v13 = vadd.f32 %v1194_v59, %v1188_v24 }
 0xaf8   :  { %v1198_v25 = vpop.permute.xlu1 %1197  ;;  %v1222_v32 = vpop.permute.xlu0 %1221 }
 0xaf9   :  { %v1200_v14 = vmul.f32 %v1198_v25, %v4917_v31  ;;  %v1224_v33 = vmul.f32 %v1222_v32, %v4934_v51 }
 0xafb   :  { %v1201_v16 = vadd.f32 %v1200_v14, %v1195_v13  ;;  %v5381_v14 = vld [vmem:[%s6217_s7 + $0x28] sm:$0xff] }
 0xafd   :  { %v1210_v26 = vpop.permute.xlu1 %1209  ;;  %v1207_v27 = vadd.f32 %v1206_v17, %v1201_v16  ;;  %v5395_v16 = vld [vmem:[%s6217_s7 + $0x18] sm:$0xff]  ;;  %v5402_v17 = vld [vmem:[%s6217_s7 + $0x10] sm:$0xff] }
 0xafe   :  { %v1212_v18 = vmul.f32 %v1210_v26, %v4929_v44  ;;  %v5409_v26 = vld [vmem:[%s6217_s7 + $0x8] sm:$0xff] }
 0xb00   :  { %v1213_v28 = vadd.f32 %v1212_v18, %v1207_v27  ;;  %v5416_v27 = vld [vmem:[%s6217_s7] sm:$0xff] }
 0xb02   :  { %v1216_v29 = vpop.permute.xlu1 %1215 }
 0xb03   :  { %v1218_v19 = vmul.f32 %v1216_v29, %v4931_v46 }
 0xb05   :  { %v1219_v20 = vadd.f32 %v1218_v19, %v1213_v28 }
 0xb07   :  { %v1228_v34 = vpop.permute.xlu1 %1227  ;;  %v1225_v35 = vadd.f32 %v1224_v33, %v1219_v20 }
 0xb08   :  { %v1230_v38 = vmul.f32 %v1228_v34, %v4937_v56 }
 0xb0a   :  { %v1231_v40 = vadd.f32 %v1230_v38, %v1225_v35 }
 0xb0c   :  { %v1234_v39 = vpop.permute.xlu1 %1233 }
 0xb0d   :  { %v1236_v41 = vmul.f32 %v1234_v39, %v4941_v60 }
 0xb0f   :  { %v1237_v45 = vadd.f32 %v1236_v41, %v1231_v40  ;;  %v5425_v41 = vld [vmem:[%s6219_s9 + $0x38] sm:$0xff] }
 0xb11   :  { %v1238_v47 = vmul.f32 1.442695, %v1237_v45  ;;  %v1241_v50 = vmul.f32 2.0, %v1237_v45 }
 0xb13   :  { %4555 = vpow2.f32 %v1238_v47  ;;  %v5448_v47 = vld [vmem:[%s6219_s9 + $0x20] sm:$0xff] }
 0xb20   :  { %v4556_v42 = vpop.eup %4555 }
 0xb21   :  { %v1240_v8 = vadd.f32 1.0, %v4556_v42  ;;  %v5455_v42 = vld [vmem:[%s6219_s9 + $0x18] sm:$0xff] }
 0xb23   :  { %v1242_v48 = vmul.f32 %v1240_v8, %v1240_v8  ;;  %v5462_v8 = vld [vmem:[%s6219_s9 + $0x10] sm:$0xff] }
 0xb25   :  { %v1243_v49 = vadd.f32 1.0, %v1242_v48  ;;  %v5469_v48 = vld [vmem:[%s6219_s9 + $0x8] sm:$0xff] }
 0xb27   :  { %4557 = vrcp.f32 %v1243_v49  ;;  %v5476_v49 = vld [vmem:[%s6219_s9] sm:$0xff] }
 0xb34   :  { %v4558_v54 = vpop.eup %4557 }
 0xb35   :  { %v1245_v53 = vmul.f32 %v4558_v54, %v1241_v50  ;;  %v1489_v54 = vstv %s3502_s24  ;;  %s3528_s24 = sld [smem:[#allocation2 + $0x1d]] }
 0xb37   :  { %v1246_v3 = vsub.f32 %v1237_v45, %v1245_v53  ;;  %v5441_v45 = vld [vmem:[%s6219_s9 + $0x28] sm:$0xff]  ;;  %v1491_v53 = vstv %s3503_s25  ;;  %s3546_s25 = sld [smem:[#allocation2 + $0x23]] }
 0xb39   :  { %4044 = vmatmul.mubr.msk.f32.vlgmr.msra.gmra.mxu0 %vm266_vm2, %v1246_v3 }
 0xb3a   :  { %4066 = vmatpush3.msra.mxu0 %v5032_v61  ;;  %4081 = vmatprep.mubr.msk.f32.mxu0 %vm4731_vm0, %v4730_v1 }
 0xb3b   :  { %4067 = vmatprep.subr.mxu0 %v4730_v1 }
 0xb3c   :  { %4068 = vmatpush3.msra.mxu0 %v5039_v62 }
 0xb3d   :  { %4069 = vmatprep.subr.mxu0 %v4730_v1 }
 0xb3e   :  { %4070 = vmatpush3.msra.mxu0 %v5046_v63 }
 0xb3f   :  { %4071 = vmatprep.subr.mxu0 %v4730_v1 }
 0xb40   :  { %4072 = vmatpush3.msra.mxu0 %v5053_v0 }
 0xb41   :  { %4073 = vmatprep.subr.mxu0 %v4730_v1 }
 0xb42   :  { %4074 = vmatpush3.msra.mxu0 %v5060_v2 }
 0xb43   :  { %4075 = vmatprep.subr.mxu0 %v4730_v1 }
 0xb44   :  { %4076 = vmatpush3.msra.mxu0 %v5067_v4 }
 0xb45   :  { %4077 = vmatprep.subr.mxu0 %v4730_v1 }
 0xb46   :  { %4078 = vmatpush3.msra.mxu0 %v5074_v21 }
 0xb47   :  { %4079 = vmatprep.subr.mxu0 %v4730_v1 }
 0xb48   :  { %4080 = vmatpush3.msra.mxu0 %v5081_v22  ;;  %v5365_v22 = vld [vmem:[%s6217_s7 + $0x38] sm:$0xff] }
 0xb49   :  { %4103 = vmatprep.subr.mxu0 %v4730_v1 }
 0xbf9   :  { %v1316_v61 = vpop.f32.mrf.mxu0 }
 0xbfa   :  { %v1317_v62 = vadd.f32 %v5007_v43, %v1316_v61  ;;  %v5374_v43 = vld [vmem:[%s6217_s7 + $0x30] sm:$0xff] }
 0xbfb   :  { %v4045_v63 = vpop.f32.mrf.mxu0 }
 0xbfc   :  { %v1320_v0 = vmul.f32 1.442695, %v1317_v62  ;;  %v1323_v24 = vmul.f32 2.0, %v1317_v62 }
 0xbfe   :  { %4559 = vpow2.f32 %v1320_v0 }
 0xc0b   :  { %v4560_v2 = vpop.eup %4559 }
 0xc0c   :  { %v1322_v58 = vadd.f32 1.0, %v4560_v2  ;;  %v1496_v2 = vstv %s3504_s27  ;;  %s3549_s27 = sld [smem:[#allocation2 + $0x26]] }
 0xc0e   :  { %v1324_v59 = vmul.f32 %v1322_v58, %v1322_v58  ;;  %v1498_v58 = vstv %s3505_s26  ;;  %s3547_s26 = sld [smem:[#allocation2 + $0x24]] }
 0xc10   :  { %v1325_v4 = vadd.f32 1.0, %v1324_v59  ;;  %v3508_v59 = vld [vmem:[%s6212_s2 + $0x18] sm:$0xff] }
 0xc12   :  { %4561 = vrcp.f32 %v1325_v4  ;;  %v1503_v4 = vstv %s3506_s28  ;;  %s3548_s28 = sld [smem:[#allocation2 + $0x25]] }
 0xc1f   :  { %v4562_v25 = vpop.eup %4561 }
 0xc20   :  { %v1327_v21 = vmul.f32 %v4562_v25, %v1323_v24 }
 0xc22   :  { %v1328_v13 = vsub.f32 %v1317_v62, %v1327_v21  ;;  %v1490_v62 = vmul.f32 %v1489_v54, %v5311_v55  ;;  %v1499_v21 = vmul.f32 %v1498_v58, %v5311_v55 }
 0xc24   :  { %4063 = vmatmul.mubr.msk.f32.vlgmr.msra.gmra.mxu1 %vm266_vm2, %v1328_v13  ;;  %v1504_v13 = vmul.f32 %v3508_v59, %v1503_v4 }
 0xc25   :  { %4085 = vmatpush3.msra.mxu1 %v5365_v22  ;;  %4100 = vmatprep.mubr.msk.f32.mxu1 %vm4731_vm0, %v4730_v1 }
 0xc26   :  { %4086 = vmatprep.subr.mxu1 %v4730_v1 }
 0xc27   :  { %4087 = vmatpush3.msra.mxu1 %v5374_v43 }
 0xc28   :  { %4088 = vmatprep.subr.mxu1 %v4730_v1 }
 0xc29   :  { %4089 = vmatpush3.msra.mxu1 %v5381_v14 }
 0xc2a   :  { %4090 = vmatprep.subr.mxu1 %v4730_v1 }
 0xc2b   :  { %4091 = vmatpush3.msra.mxu1 %v5388_v15 }
 0xc2c   :  { %4092 = vmatprep.subr.mxu1 %v4730_v1 }
 0xc2d   :  { %4093 = vmatpush3.msra.mxu1 %v5395_v16 }
 0xc2e   :  { %4094 = vmatprep.subr.mxu1 %v4730_v1 }
 0xc2f   :  { %4095 = vmatpush3.msra.mxu1 %v5402_v17 }
 0xc30   :  { %4096 = vmatprep.subr.mxu1 %v4730_v1 }
 0xc31   :  { %4097 = vmatpush3.msra.mxu1 %v5409_v26 }
 0xc32   :  { %4098 = vmatprep.subr.mxu1 %v4730_v1 }
 0xc33   :  { %4099 = vmatpush3.msra.mxu1 %v5416_v27 }
 0xc34   :  { %4122 = vmatprep.subr.mxu1 %v4730_v1 }
 0xce4   :  { %v1398_v18 = vpop.f32.mrf.mxu1 }
 0xce5   :  { %v1399_v29 = vadd.f32 %v5088_v23, %v1398_v18  ;;  %v5434_v23 = vld [vmem:[%s6219_s9 + $0x30] sm:$0xff] }
 0xce6   :  { %v4064_v28 = vpop.f32.mrf.mxu1 }
 0xce7   :  { %v1402_v19 = vmul.f32 1.442695, %v1399_v29  ;;  %v1405_v35 = vmul.f32 2.0, %v1399_v29 }
 0xce9   :  { %4563 = vpow2.f32 %v1402_v19 }
 0xcf6   :  { %v4564_v32 = vpop.eup %4563 }
 0xcf7   :  { %v1404_v20 = vadd.f32 1.0, %v4564_v32 }
 0xcf9   :  { %v1406_v33 = vmul.f32 %v1404_v20, %v1404_v20 }
 0xcfb   :  { %v1407_v34 = vadd.f32 1.0, %v1406_v33 }
 0xcfd   :  { %4565 = vrcp.f32 %v1407_v34 }
 0xd0a   :  { %v4566_v38 = vpop.eup %4565 }
 0xd0b   :  { %v1409_v39 = vmul.f32 %v4566_v38, %v1405_v35 }
 0xd0d   :  { %v1410_v40 = vsub.f32 %v1399_v29, %v1409_v39 }
 0xd0f   :  { %4082 = vmatmul.mubr.msk.f32.vlgmr.msra.gmra.mxu0 %vm266_vm2, %v1410_v40 }
 0xd10   :  { %4104 = vmatpush3.msra.mxu0 %v5425_v41  ;;  %4119 = vmatprep.mubr.msk.f32.mxu0 %vm4731_vm0, %v4730_v1 }
 0xd11   :  { %4105 = vmatprep.subr.mxu0 %v4730_v1 }
 0xd12   :  { %4106 = vmatpush3.msra.mxu0 %v5434_v23 }
 0xd13   :  { %4107 = vmatprep.subr.mxu0 %v4730_v1 }
 0xd14   :  { %4108 = vmatpush3.msra.mxu0 %v5441_v45 }
 0xd15   :  { %4109 = vmatprep.subr.mxu0 %v4730_v1 }
 0xd16   :  { %4110 = vmatpush3.msra.mxu0 %v5448_v47 }
 0xd17   :  { %4111 = vmatprep.subr.mxu0 %v4730_v1 }
 0xd18   :  { %4112 = vmatpush3.msra.mxu0 %v5455_v42 }
 0xd19   :  { %4113 = vmatprep.subr.mxu0 %v4730_v1 }
 0xd1a   :  { %4114 = vmatpush3.msra.mxu0 %v5462_v8 }
 0xd1b   :  { %4115 = vmatprep.subr.mxu0 %v4730_v1 }
 0xd1c   :  { %4116 = vmatpush3.msra.mxu0 %v5469_v48 }
 0xd1d   :  { %4117 = vmatprep.subr.mxu0 %v4730_v1 }
 0xd1e   :  { %4118 = vmatpush3.msra.mxu0 %v5476_v49 }
 0xd1f   :  { %4141 = vmatprep.subr.mxu0 %v4730_v1 }
 0xdcf   :  { %v1480_v50 = vpop.f32.mrf.mxu0 }
 0xdd0   :  { %v1481_v3 = vadd.f32 %v5113_v52, %v1480_v50  ;;  %v3509_v52 = vld [vmem:[%s6211_s1 + $0x4] ss:$0 sm:$0xff] }
 0xdd1   :  { %v4083_v61 = vpop.f32.mrf.mxu0  ;;  %v1511_v19 = vadd.f32 %v3509_v52, %v4924_v37 }
 0xdd2   :  { %v1492_v63 = vmul.f32 %v1491_v53, %v1481_v3 }
 0xdd4   :  { %v1493_v0 = vsub.f32 %v1490_v62, %v1492_v63 }
 0xdd6   :  { %v3507_v24 = vclamps-f32 %v1493_v0, 1.0 }
 0xdd8   :  { %v1497_v25 = vmul.f32 %v3507_v24, %v1496_v2 }
 0xdda   :  { %v1500_v18 = vadd.f32 %v1499_v21, %v1497_v25 }
 0xddc   :  { %v5486_v29 = vadd.f32 %v1504_v13, %v1500_v18 }
 0xdde   :  { %1520 = vperm.xlu1 %4471, %v5486_v29   ;;  %1514 = vperm.xlu0 %4470, %v5486_v29  }
 0xde2   :  { %4472 = vset.pattern.permute.xlu1 %v4732_v5  ;;  %4473 = vset.pattern.permute.xlu0 %v4734_v7 }
 0xde3   :  { %1526 = vperm.xlu1 %4472, %v5486_v29   ;;  %1532 = vperm.xlu0 %4473, %v5486_v29  }
 0xde7   :  { %4474 = vset.pattern.permute.xlu1 %v4736_v9  ;;  %4476 = vset.pattern.permute.xlu0 %v4738_v11 }
 0xde8   :  { %1538 = vperm.xlu1 %4474, %v5486_v29   ;;  %1550 = vperm.xlu0 %4476, %v5486_v29  }
 0xdec   :  { %4475 = vset.pattern.permute.xlu1 %v4737_v10  ;;  %4479 = vset.pattern.permute.xlu0 %v6226_v57 }
 0xded   :  { %1544 = vperm.xlu1 %4475, %v5486_v29  }
 0xdf1   :  { %4477 = vset.pattern.permute.xlu1 %v4739_v12 }
 0xdf2   :  { %1556 = vperm.xlu1 %4477, %v5486_v29  }
 0xdf6   :  { %4478 = vset.pattern.permute.xlu1 %v4733_v6 }
 0xe59   :  { %v1521_v55 = vpop.permute.xlu1 %1520  ;;  %v1515_v28 = vpop.permute.xlu0 %1514 }
 0xe5a   :  { %v1517_v32 = vmul.f32 %v1515_v28, %v4915_v30  ;;  %v1523_v20 = vmul.f32 %v1521_v55, %v4917_v31 }
 0xe5c   :  { %v1518_v33 = vadd.f32 %v1517_v32, %v1511_v19 }
 0xe5e   :  { %v1527_v34 = vpop.permute.xlu1 %1526  ;;  %v1524_v35 = vadd.f32 %v1523_v20, %v1518_v33  ;;  %v1533_v39 = vpop.permute.xlu0 %1532  ;;  %v5520_v33 = vld [vmem:[%s6221_s11 + $0x38] sm:$0xff] }
 0xe5f   :  { %v1529_v38 = vmul.f32 %v1527_v34, %v4922_v36  ;;  %v1535_v50 = vmul.f32 %v1533_v39, %v4929_v44  ;;  %v5529_v34 = vld [vmem:[%s6221_s11 + $0x30] sm:$0xff]  ;;  %v5550_v39 = vld [vmem:[%s6221_s11 + $0x18] sm:$0xff] }
 0xe61   :  { %v1530_v40 = vadd.f32 %v1529_v38, %v1524_v35  ;;  %v5536_v35 = vld [vmem:[%s6221_s11 + $0x28] sm:$0xff]  ;;  %v5543_v38 = vld [vmem:[%s6221_s11 + $0x20] sm:$0xff] }
 0xe63   :  { %v1539_v54 = vpop.permute.xlu1 %1538  ;;  %v1536_v53 = vadd.f32 %v1535_v50, %v1530_v40  ;;  %v1551_v61 = vpop.permute.xlu0 %1550  ;;  %v5557_v40 = vld [vmem:[%s6221_s11 + $0x10] sm:$0xff]  ;;  %v5564_v50 = vld [vmem:[%s6221_s11 + $0x8] sm:$0xff] }
 0xe64   :  { %v1541_v3 = vmul.f32 %v1539_v54, %v4931_v46  ;;  %v1553_v2 = vmul.f32 %v1551_v61, %v4937_v56  ;;  %v5571_v54 = vld [vmem:[%s6221_s11] sm:$0xff] }
 0xe66   :  { %v1542_v63 = vadd.f32 %v1541_v3, %v1536_v53  ;;  %v5578_v3 = vld [vmem:[%s6218_s8] ss:$0 sm:$0xff] }
 0xe68   :  { %v1545_v62 = vpop.permute.xlu1 %1544 }
 0xe69   :  { %v1547_v0 = vmul.f32 %v1545_v62, %v4934_v51 }
 0xe6b   :  { %v1548_v58 = vadd.f32 %v1547_v0, %v1542_v63 }
 0xe6d   :  { %v1557_v59 = vpop.permute.xlu1 %1556  ;;  %v1554_v4 = vadd.f32 %v1553_v2, %v1548_v58 }
 0xe6e   :  { %v1559_v24 = vmul.f32 %v1557_v59, %v4941_v60 }
 0xe70   :  { %v1560_v25 = vadd.f32 %v1559_v24, %v1554_v4 }
 0xe72   :  { %v1561_v21 = vmul.f32 1.442695, %v1560_v25  ;;  %v1564_v28 = vmul.f32 2.0, %v1560_v25 }
 0xe74   :  { %4567 = vpow2.f32 %v1561_v21 }
 0xe81   :  { %v4568_v13 = vpop.eup %4567 }
 0xe82   :  { %v1563_v18 = vadd.f32 1.0, %v4568_v13 }
 0xe84   :  { %v1565_v52 = vmul.f32 %v1563_v18, %v1563_v18  ;;  %v5603_v18 = vld [vmem:[%s6220_s10] ss:$0 sm:$0xff] }
 0xe86   :  { %v1566_v55 = vadd.f32 1.0, %v1565_v52 }
 0xe88   :  { %4569 = vrcp.f32 %v1566_v55 }
 0xe95   :  { %v4570_v19 = vpop.eup %4569 }
 0xe96   :  { %v1568_v32 = vmul.f32 %v4570_v19, %v1564_v28 }
 0xe98   :  { %v1569_v20 = vsub.f32 %v1560_v25, %v1568_v32 }
 0xe9a   :  { %4101 = vmatmul.mubr.msk.f32.vlgmr.msra.gmra.mxu1 %vm266_vm2, %v1569_v20 }
 0xe9b   :  { %4123 = vmatpush3.msra.mxu1 %v5520_v33  ;;  %4138 = vmatprep.mubr.msk.f32.mxu1 %vm4731_vm0, %v4730_v1 }
 0xe9c   :  { %4124 = vmatprep.subr.mxu1 %v4730_v1 }
 0xe9d   :  { %4125 = vmatpush3.msra.mxu1 %v5529_v34 }
 0xe9e   :  { %4126 = vmatprep.subr.mxu1 %v4730_v1 }
 0xe9f   :  { %4127 = vmatpush3.msra.mxu1 %v5536_v35 }
 0xea0   :  { %4128 = vmatprep.subr.mxu1 %v4730_v1 }
 0xea1   :  { %4129 = vmatpush3.msra.mxu1 %v5543_v38 }
 0xea2   :  { %4130 = vmatprep.subr.mxu1 %v4730_v1 }
 0xea3   :  { %4131 = vmatpush3.msra.mxu1 %v5550_v39 }
 0xea4   :  { %4132 = vmatprep.subr.mxu1 %v4730_v1 }
 0xea5   :  { %4133 = vmatpush3.msra.mxu1 %v5557_v40 }
 0xea6   :  { %4134 = vmatprep.subr.mxu1 %v4730_v1 }
 0xea7   :  { %4135 = vmatpush3.msra.mxu1 %v5564_v50 }
 0xea8   :  { %4136 = vmatprep.subr.mxu1 %v4730_v1 }
 0xea9   :  { %4137 = vmatpush3.msra.mxu1 %v5571_v54 }
 0xeaa   :  { %4160 = vmatprep.subr.mxu1 %v4730_v1 }
 0xf5a   :  { %v1639_v53 = vpop.f32.mrf.mxu1 }
 0xf5b   :  { %v1640_v61 = vadd.f32 %v5578_v3, %v1639_v53 }
 0xf5c   :  { %v4102_v62 = vpop.f32.mrf.mxu1 }
 0xf5d   :  { %v1643_v63 = vmul.f32 1.442695, %v1640_v61  ;;  %v1646_v4 = vmul.f32 2.0, %v1640_v61 }
 0xf5f   :  { %4571 = vpow2.f32 %v1643_v63 }
 0xf6c   :  { %v4572_v0 = vpop.eup %4571 }
 0xf6d   :  { %v1645_v2 = vadd.f32 1.0, %v4572_v0 }
 0xf6f   :  { %v1647_v58 = vmul.f32 %v1645_v2, %v1645_v2 }
 0xf71   :  { %v1648_v59 = vadd.f32 1.0, %v1647_v58  ;;  %v1812_v58 = vstv %s3513_s14  ;;  %s3538_s14 = sld [smem:[#allocation2 + $0x21]] }
 0xf73   :  { %4573 = vrcp.f32 %v1648_v59  ;;  %v1814_v59 = vstv %s3514_s0  ;;  %s3537_s0 = sld [smem:[#allocation2 + $0x20]] }
 0xf80   :  { %v4574_v24 = vpop.eup %4573 }
 0xf81   :  { %v1650_v25 = vmul.f32 %v4574_v24, %v1646_v4  ;;  %v5628_v4 = vld [vmem:[%s6222_s12] ss:$0 sm:$0xff] }
 0xf83   :  { %v1651_v21 = vsub.f32 %v1640_v61, %v1650_v25 }
 0xf85   :  { %4120 = vmatmul.mubr.msk.f32.vlgmr.msra.gmra.mxu0 %vm266_vm2, %v1651_v21  ;;  %v1813_v21 = vmul.f32 %v1812_v58, %v5486_v29 }
 0xf86   :  { %4142 = vmatpush3.msra.mxu0 %v5365_v22  ;;  %4157 = vmatprep.mubr.msk.f32.mxu0 %vm4731_vm0, %v4730_v1 }
 0xf87   :  { %4143 = vmatprep.subr.mxu0 %v4730_v1 }
 0xf88   :  { %4144 = vmatpush3.msra.mxu0 %v5374_v43 }
 0xf89   :  { %4145 = vmatprep.subr.mxu0 %v4730_v1 }
 0xf8a   :  { %4146 = vmatpush3.msra.mxu0 %v5381_v14 }
 0xf8b   :  { %4147 = vmatprep.subr.mxu0 %v4730_v1 }
 0xf8c   :  { %4148 = vmatpush3.msra.mxu0 %v5388_v15 }
 0xf8d   :  { %4149 = vmatprep.subr.mxu0 %v4730_v1 }
 0xf8e   :  { %4150 = vmatpush3.msra.mxu0 %v5395_v16 }
 0xf8f   :  { %4151 = vmatprep.subr.mxu0 %v4730_v1 }
 0xf90   :  { %4152 = vmatpush3.msra.mxu0 %v5402_v17 }
 0xf91   :  { %4153 = vmatprep.subr.mxu0 %v4730_v1 }
 0xf92   :  { %4154 = vmatpush3.msra.mxu0 %v5409_v26 }
 0xf93   :  { %4155 = vmatprep.subr.mxu0 %v4730_v1 }
 0xf94   :  { %4156 = vmatpush3.msra.mxu0 %v5416_v27 }
 0xf95   :  { %4179 = vmatprep.subr.mxu0 %v4730_v1 }
0x1045   :  { %v1721_v13 = vpop.f32.mrf.mxu0 }
0x1046   :  { %v1722_v52 = vadd.f32 %v5603_v18, %v1721_v13 }
0x1047   :  { %v4121_v55 = vpop.f32.mrf.mxu0 }
0x1048   :  { %v1725_v28 = vmul.f32 1.442695, %v1722_v52  ;;  %v1728_v61 = vmul.f32 2.0, %v1722_v52  ;;  %v1819_v55 = vstv %s3515_s16 }
0x104a   :  { %4575 = vpow2.f32 %v1725_v28  ;;  %v1821_v28 = vstv %s3516_s15  ;;  %s3539_s15 = sld [smem:[#allocation2 + $0x22]] }
0x1057   :  { %v4576_v19 = vpop.eup %4575 }
0x1058   :  { %v1727_v32 = vadd.f32 1.0, %v4576_v19  ;;  %v3519_v19 = vld [vmem:[%s6212_s2 + $0x20] sm:$0xff] }
0x105a   :  { %v1729_v20 = vmul.f32 %v1727_v32, %v1727_v32  ;;  %v1826_v32 = vstv %s3517_s17  ;;  %s3569_s17 = sld [smem:[#allocation2 + $0x2e]] }
0x105c   :  { %v1730_v53 = vadd.f32 1.0, %v1729_v20 }
0x105e   :  { %4577 = vrcp.f32 %v1730_v53 }
0x106b   :  { %v4578_v62 = vpop.eup %4577 }
0x106c   :  { %v1732_v63 = vmul.f32 %v4578_v62, %v1728_v61  ;;  %v1822_v61 = vmul.f32 %v1821_v28, %v5486_v29  ;;  %v1827_v62 = vmul.f32 %v3519_v19, %v1826_v32  ;;  %v3520_v29 = vld [vmem:[%s6211_s1 + $0x5] ss:$0 sm:$0xff] }
0x106d   :  { %v1834_v58 = vadd.f32 %v3520_v29, %v4924_v37 }
0x106e   :  { %v1733_v0 = vsub.f32 %v1722_v52, %v1732_v63 }
0x1070   :  { %4139 = vmatmul.mubr.msk.f32.vlgmr.msra.gmra.mxu1 %vm266_vm2, %v1733_v0 }
0x1071   :  { %4161 = vmatpush3.msra.mxu1 %v5425_v41  ;;  %4176 = vmatprep.mubr.msk.f32.mxu1 %vm4731_vm0, %v4730_v1 }
0x1072   :  { %4162 = vmatprep.subr.mxu1 %v4730_v1 }
0x1073   :  { %4163 = vmatpush3.msra.mxu1 %v5434_v23 }
0x1074   :  { %4164 = vmatprep.subr.mxu1 %v4730_v1 }
0x1075   :  { %4165 = vmatpush3.msra.mxu1 %v5441_v45 }
0x1076   :  { %4166 = vmatprep.subr.mxu1 %v4730_v1 }
0x1077   :  { %4167 = vmatpush3.msra.mxu1 %v5448_v47 }
0x1078   :  { %4168 = vmatprep.subr.mxu1 %v4730_v1 }
0x1079   :  { %4169 = vmatpush3.msra.mxu1 %v5455_v42 }
0x107a   :  { %4170 = vmatprep.subr.mxu1 %v4730_v1 }
0x107b   :  { %4171 = vmatpush3.msra.mxu1 %v5462_v8 }
0x107c   :  { %4172 = vmatprep.subr.mxu1 %v4730_v1 }
0x107d   :  { %4173 = vmatpush3.msra.mxu1 %v5469_v48 }
0x107e   :  { %4174 = vmatprep.subr.mxu1 %v4730_v1 }
0x107f   :  { %4175 = vmatpush3.msra.mxu1 %v5476_v49 }
0x1080   :  { %4198 = vmatprep.subr.mxu1 %v4730_v1 }
0x1130   :  { %v1803_v2 = vpop.f32.mrf.mxu1 }
0x1131   :  { %v1804_v24 = vadd.f32 %v5628_v4, %v1803_v2 }
0x1132   :  { %v4140_v25 = vpop.f32.mrf.mxu1 }
0x1133   :  { %v1815_v13 = vmul.f32 %v1814_v59, %v1804_v24 }
0x1135   :  { %v1816_v52 = vsub.f32 %v1813_v21, %v1815_v13 }
0x1137   :  { %v3518_v20 = vclamps-f32 %v1816_v52, 1.0 }
0x1139   :  { %v1820_v53 = vmul.f32 %v3518_v20, %v1819_v55 }
0x113b   :  { %v1823_v63 = vadd.f32 %v1822_v61, %v1820_v53 }
0x113d   :  { %v5636_v0 = vadd.f32 %v1827_v62, %v1823_v63 }
0x113f   :  { %1843 = vperm.xlu0 %4479, %v5636_v0   ;;  %1837 = vperm.xlu1 %4478, %v5636_v0  }
0x1143   :  { %4482 = vset.pattern.permute.xlu0 %v4736_v9  ;;  %4480 = vset.pattern.permute.xlu1 %v4732_v5 }
0x1144   :  { %1861 = vperm.xlu0 %4482, %v5636_v0   ;;  %1849 = vperm.xlu1 %4480, %v5636_v0  }
0x1148   :  { %4485 = vset.pattern.permute.xlu0 %v4739_v12  ;;  %4481 = vset.pattern.permute.xlu1 %v4734_v7 }
0x1149   :  { %1879 = vperm.xlu0 %4485, %v5636_v0   ;;  %1855 = vperm.xlu1 %4481, %v5636_v0  }
0x114d   :  { %4483 = vset.pattern.permute.xlu1 %v4737_v10  ;;  %4488 = vset.pattern.permute.xlu0 %v4732_v5 }
0x114e   :  { %1867 = vperm.xlu1 %4483, %v5636_v0  }
0x1152   :  { %4484 = vset.pattern.permute.xlu1 %v4738_v11 }
0x1153   :  { %1873 = vperm.xlu1 %4484, %v5636_v0  }
0x1157   :  { %4486 = vset.pattern.permute.xlu1 %v4733_v6 }
0x11ba   :  { %v1838_v2 = vpop.permute.xlu1 %1837  ;;  %v1844_v24 = vpop.permute.xlu0 %1843 }
0x11bb   :  { %v1840_v59 = vmul.f32 %v1838_v2, %v4915_v30  ;;  %v1846_v21 = vmul.f32 %v1844_v24, %v4917_v31 }
0x11bd   :  { %v1841_v25 = vadd.f32 %v1840_v59, %v1834_v58 }
0x11bf   :  { %v1850_v13 = vpop.permute.xlu1 %1849  ;;  %v1847_v52 = vadd.f32 %v1846_v21, %v1841_v25  ;;  %v1862_v20 = vpop.permute.xlu0 %1861 }
0x11c0   :  { %v1852_v55 = vmul.f32 %v1850_v13, %v4922_v36  ;;  %v1864_v61 = vmul.f32 %v1862_v20, %v4931_v46 }
0x11c2   :  { %v1853_v19 = vadd.f32 %v1852_v55, %v1847_v52 }
0x11c4   :  { %v1856_v28 = vpop.permute.xlu1 %1855  ;;  %v1880_v2 = vpop.permute.xlu0 %1879 }
0x11c5   :  { %v1858_v32 = vmul.f32 %v1856_v28, %v4929_v44  ;;  %v1882_v25 = vmul.f32 %v1880_v2, %v4941_v60 }
0x11c7   :  { %v1859_v53 = vadd.f32 %v1858_v32, %v1853_v19 }
0x11c9   :  { %v1868_v62 = vpop.permute.xlu1 %1867  ;;  %v1865_v63 = vadd.f32 %v1864_v61, %v1859_v53 }
0x11ca   :  { %v1870_v29 = vmul.f32 %v1868_v62, %v4934_v51 }
0x11cc   :  { %v1871_v59 = vadd.f32 %v1870_v29, %v1865_v63 }
0x11ce   :  { %v1874_v58 = vpop.permute.xlu1 %1873 }
0x11cf   :  { %v1876_v24 = vmul.f32 %v1874_v58, %v4937_v56 }
0x11d1   :  { %v1877_v21 = vadd.f32 %v1876_v24, %v1871_v59 }
0x11d3   :  { %v1883_v13 = vadd.f32 %v1882_v25, %v1877_v21 }
0x11d5   :  { %v1884_v52 = vmul.f32 1.442695, %v1883_v13  ;;  %v1887_v20 = vmul.f32 2.0, %v1883_v13 }
0x11d7   :  { %4579 = vpow2.f32 %v1884_v52 }
0x11e4   :  { %v4580_v55 = vpop.eup %4579 }
0x11e5   :  { %v1886_v28 = vadd.f32 1.0, %v4580_v55 }
0x11e7   :  { %v1888_v19 = vmul.f32 %v1886_v28, %v1886_v28 }
0x11e9   :  { %v1889_v32 = vadd.f32 1.0, %v1888_v19 }
0x11eb   :  { %4581 = vrcp.f32 %v1889_v32 }
0x11f8   :  { %v4582_v53 = vpop.eup %4581 }
0x11f9   :  { %v1891_v61 = vmul.f32 %v4582_v53, %v1887_v20 }
0x11fb   :  { %v1892_v62 = vsub.f32 %v1883_v13, %v1891_v61 }
0x11fd   :  { %4158 = vmatmul.mubr.msk.f32.vlgmr.msra.gmra.mxu0 %vm266_vm2, %v1892_v62 }
0x11fe   :  { %4180 = vmatpush3.msra.mxu0 %v5520_v33  ;;  %4195 = vmatprep.mubr.msk.f32.mxu0 %vm4731_vm0, %v4730_v1 }
0x11ff   :  { %4181 = vmatprep.subr.mxu0 %v4730_v1 }
0x1200   :  { %4182 = vmatpush3.msra.mxu0 %v5529_v34 }
0x1201   :  { %4183 = vmatprep.subr.mxu0 %v4730_v1 }
0x1202   :  { %4184 = vmatpush3.msra.mxu0 %v5536_v35 }
0x1203   :  { %4185 = vmatprep.subr.mxu0 %v4730_v1 }
0x1204   :  { %4186 = vmatpush3.msra.mxu0 %v5543_v38 }
0x1205   :  { %4187 = vmatprep.subr.mxu0 %v4730_v1 }
0x1206   :  { %4188 = vmatpush3.msra.mxu0 %v5550_v39 }
0x1207   :  { %4189 = vmatprep.subr.mxu0 %v4730_v1 }
0x1208   :  { %4190 = vmatpush3.msra.mxu0 %v5557_v40 }
0x1209   :  { %4191 = vmatprep.subr.mxu0 %v4730_v1 }
0x120a   :  { %4192 = vmatpush3.msra.mxu0 %v5564_v50 }
0x120b   :  { %4193 = vmatprep.subr.mxu0 %v4730_v1 }
0x120c   :  { %4194 = vmatpush3.msra.mxu0 %v5571_v54 }
0x120d   :  { %4217 = vmatprep.subr.mxu0 %v4730_v1 }
0x12bd   :  { %v1962_v63 = vpop.f32.mrf.mxu0 }
0x12be   :  { %v1963_v29 = vadd.f32 %v5578_v3, %v1962_v63 }
0x12bf   :  { %v4159_v2 = vpop.f32.mrf.mxu0 }
0x12c0   :  { %v1966_v58 = vmul.f32 1.442695, %v1963_v29  ;;  %v1969_v13 = vmul.f32 2.0, %v1963_v29 }
0x12c2   :  { %4583 = vpow2.f32 %v1966_v58 }
0x12cf   :  { %v4584_v59 = vpop.eup %4583 }
0x12d0   :  { %v1968_v24 = vadd.f32 1.0, %v4584_v59 }
0x12d2   :  { %v1970_v25 = vmul.f32 %v1968_v24, %v1968_v24 }
0x12d4   :  { %v1971_v21 = vadd.f32 1.0, %v1970_v25 }
0x12d6   :  { %4585 = vrcp.f32 %v1971_v21  ;;  %v2135_v21 = vstv %s3524_s20  ;;  %s3454_s20 = sshll.u32 %s4740_s6, 4  ;;  %s3455_s20 = int_to_ptr.vmem [resolvable:$true] %s3454_s20 }
0x12d7   :  { %p4710_p6 = scmp.lt.s32.totalorder %s3455_s20, %s3455_s20 }
0x12e3   :  { %v4586_v52 = vpop.eup %4585 }
0x12e4   :  { %v1973_v55 = vmul.f32 %v4586_v52, %v1969_v13  ;;  %v2137_v13 = vstv %s3525_s21  ;;  %s4705_s21 = scalar_lea.vmem %s3455_s20, 128 }
0x12e5   :  { %p4706_p5 = scmp.ne.s32.totalorder %s3455_s20, %s4705_s21  ;;  %p4711_p7 = scmp.lt.s32.totalorder %s4705_s21, %s4705_s21 }
0x12e6   :  { %v1974_v28 = vsub.f32 %v1963_v29, %v1973_v55 }
0x12e7   :  { %p4712_p8 = por %p4711_p7, %p4710_p6 }
0x12e8   :  { %4177 = vmatmul.mubr.msk.f32.vlgmr.msra.gmra.mxu1 %vm266_vm2, %v1974_v28  ;;  %v2136_v28 = vmul.f32 %v2135_v21, %v5636_v0 }
0x12e9   :  { %4199 = vmatpush3.msra.mxu1 %v5365_v22  ;;  %4214 = vmatprep.mubr.msk.f32.mxu1 %vm4731_vm0, %v4730_v1  ;;  %p4713_p9 = pnand %p4712_p8, %p4706_p5 }
0x12ea   :  { %4200 = vmatprep.subr.mxu1 %v4730_v1 }
0x12eb   :  { %4201 = vmatpush3.msra.mxu1 %v5374_v43 }
0x12ec   :  { %4202 = vmatprep.subr.mxu1 %v4730_v1 }
0x12ed   :  { %4203 = vmatpush3.msra.mxu1 %v5381_v14 }
0x12ee   :  { %4204 = vmatprep.subr.mxu1 %v4730_v1 }
0x12ef   :  { %4205 = vmatpush3.msra.mxu1 %v5388_v15 }
0x12f0   :  { %4206 = vmatprep.subr.mxu1 %v4730_v1 }
0x12f1   :  { %4207 = vmatpush3.msra.mxu1 %v5395_v16 }
0x12f2   :  { %4208 = vmatprep.subr.mxu1 %v4730_v1 }
0x12f3   :  { %4209 = vmatpush3.msra.mxu1 %v5402_v17 }
0x12f4   :  { %4210 = vmatprep.subr.mxu1 %v4730_v1 }
0x12f5   :  { %4211 = vmatpush3.msra.mxu1 %v5409_v26 }
0x12f6   :  { %4212 = vmatprep.subr.mxu1 %v4730_v1 }
0x12f7   :  { %4213 = vmatpush3.msra.mxu1 %v5416_v27 }
0x12f8   :  { %4236 = vmatprep.subr.mxu1 %v4730_v1 }
0x13a8   :  { %v2044_v19 = vpop.f32.mrf.mxu1 }
0x13a9   :  { %v2045_v32 = vadd.f32 %v5603_v18, %v2044_v19 }
0x13aa   :  { %v4178_v20 = vpop.f32.mrf.mxu1 }
0x13ab   :  { %v2048_v53 = vmul.f32 1.442695, %v2045_v32  ;;  %v2051_v2 = vmul.f32 2.0, %v2045_v32  ;;  %v2142_v20 = vstv %s3526_s23 }
0x13ad   :  { %4587 = vpow2.f32 %v2048_v53  ;;  %v2144_v53 = vstv %s3527_s22 }
0x13ba   :  { %v4588_v61 = vpop.eup %4587 }
0x13bb   :  { %v2050_v62 = vadd.f32 1.0, %v4588_v61  ;;  %v3530_v61 = vld [vmem:[%s6212_s2 + $0x28] sm:$0xff] }
0x13bd   :  { %v2052_v63 = vmul.f32 %v2050_v62, %v2050_v62  ;;  %v2149_v62 = vstv %s3528_s24 }
0x13bf   :  { %v2053_v29 = vadd.f32 1.0, %v2052_v63 }
0x13c1   :  { %4589 = vrcp.f32 %v2053_v29 }
0x13ce   :  { %v4590_v58 = vpop.eup %4589 }
0x13cf   :  { %v2055_v59 = vmul.f32 %v4590_v58, %v2051_v2  ;;  %v2145_v2 = vmul.f32 %v2144_v53, %v5636_v0  ;;  %v2150_v58 = vmul.f32 %v3530_v61, %v2149_v62 }
0x13d1   :  { %v2056_v24 = vsub.f32 %v2045_v32, %v2055_v59 }
0x13d3   :  { %4196 = vmatmul.mubr.msk.f32.vlgmr.msra.gmra.mxu0 %vm266_vm2, %v2056_v24 }
0x13d4   :  { %4218 = vmatpush3.msra.mxu0 %v5425_v41  ;;  %4233 = vmatprep.mubr.msk.f32.mxu0 %vm4731_vm0, %v4730_v1 }
0x13d5   :  { %4219 = vmatprep.subr.mxu0 %v4730_v1 }
0x13d6   :  { %4220 = vmatpush3.msra.mxu0 %v5434_v23 }
0x13d7   :  { %4221 = vmatprep.subr.mxu0 %v4730_v1 }
0x13d8   :  { %4222 = vmatpush3.msra.mxu0 %v5441_v45 }
0x13d9   :  { %4223 = vmatprep.subr.mxu0 %v4730_v1 }
0x13da   :  { %4224 = vmatpush3.msra.mxu0 %v5448_v47 }
0x13db   :  { %4225 = vmatprep.subr.mxu0 %v4730_v1 }
0x13dc   :  { %4226 = vmatpush3.msra.mxu0 %v5455_v42 }
0x13dd   :  { %4227 = vmatprep.subr.mxu0 %v4730_v1 }
0x13de   :  { %4228 = vmatpush3.msra.mxu0 %v5462_v8 }
0x13df   :  { %4229 = vmatprep.subr.mxu0 %v4730_v1 }
0x13e0   :  { %4230 = vmatpush3.msra.mxu0 %v5469_v48 }
0x13e1   :  { %4231 = vmatprep.subr.mxu0 %v4730_v1 }
0x13e2   :  { %4232 = vmatpush3.msra.mxu0 %v5476_v49 }
0x13e3   :  { %4255 = vmatprep.subr.mxu0 %v4730_v1 }
0x1493   :  { %v2126_v25 = vpop.f32.mrf.mxu0 }
0x1494   :  { %v2127_v52 = vadd.f32 %v5628_v4, %v2126_v25  ;;  %v3531_v25 = vld [vmem:[%s6211_s1 + $0x6] ss:$0 sm:$0xff] }
0x1495   :  { %v4197_v55 = vpop.f32.mrf.mxu0 }
0x1496   :  { %v2138_v19 = vmul.f32 %v2137_v13, %v2127_v52  ;;  %v2157_v13 = vadd.f32 %v3531_v25, %v4924_v37 }
0x1498   :  { %v2139_v32 = vsub.f32 %v2136_v28, %v2138_v19 }
0x149a   :  { %v3529_v63 = vclamps-f32 %v2139_v32, 1.0 }
0x149c   :  { %v2143_v29 = vmul.f32 %v3529_v63, %v2142_v20 }
0x149e   :  { %v2146_v59 = vadd.f32 %v2145_v2, %v2143_v29 }
0x14a0   :  { %v5731_v24 = vadd.f32 %v2150_v58, %v2146_v59 }
0x14a2   :  { %2172 = vperm.xlu0 %4488, %v5731_v24   ;;  %2160 = vperm.xlu1 %4486, %v5731_v24  }
0x14a6   :  { %4491 = vset.pattern.permute.xlu0 %v4737_v10  ;;  %4487 = vset.pattern.permute.xlu1 %v6226_v57 }
0x14a7   :  { %2190 = vperm.xlu0 %4491, %v5731_v24   ;;  %2166 = vperm.xlu1 %4487, %v5731_v24  }
0x14ab   :  { %4489 = vset.pattern.permute.xlu1 %v4734_v7  ;;  %4494 = vset.pattern.permute.xlu0 %v4733_v6 }
0x14ac   :  { %2178 = vperm.xlu1 %4489, %v5731_v24  }
0x14b0   :  { %4490 = vset.pattern.permute.xlu1 %v4736_v9 }
0x14b1   :  { %2184 = vperm.xlu1 %4490, %v5731_v24  }
0x14b5   :  { %4492 = vset.pattern.permute.xlu1 %v4738_v11 }
0x14b6   :  { %2196 = vperm.xlu1 %4492, %v5731_v24  }
0x14ba   :  { %4493 = vset.pattern.permute.xlu1 %v4739_v12 }
0x14bb   :  { %2202 = vperm.xlu1 %4493, %v5731_v24  }
0x14bf   :  { %4495 = vset.pattern.permute.xlu1 %v6226_v57 }
0x151d   :  { %v2161_v0 = vpop.permute.xlu1 %2160  ;;  %v2173_v19 = vpop.permute.xlu0 %2172 }
0x151e   :  { %v2163_v21 = vmul.f32 %v2161_v0, %v4915_v30  ;;  %v2175_v20 = vmul.f32 %v2173_v19, %v4922_v36 }
0x1520   :  { %v2164_v55 = vadd.f32 %v2163_v21, %v2157_v13 }
0x1522   :  { %v2167_v52 = vpop.permute.xlu1 %2166  ;;  %v2191_v58 = vpop.permute.xlu0 %2190 }
0x1523   :  { %v2169_v28 = vmul.f32 %v2167_v52, %v4917_v31  ;;  %v2193_v0 = vmul.f32 %v2191_v58, %v4934_v51 }
0x1525   :  { %v2170_v32 = vadd.f32 %v2169_v28, %v2164_v55 }
0x1527   :  { %v2179_v53 = vpop.permute.xlu1 %2178  ;;  %v2176_v61 = vadd.f32 %v2175_v20, %v2170_v32 }
0x1528   :  { %v2181_v62 = vmul.f32 %v2179_v53, %v4929_v44 }
0x152a   :  { %v2182_v29 = vadd.f32 %v2181_v62, %v2176_v61 }
0x152c   :  { %v2185_v63 = vpop.permute.xlu1 %2184 }
0x152d   :  { %v2187_v2 = vmul.f32 %v2185_v63, %v4931_v46 }
0x152f   :  { %v2188_v59 = vadd.f32 %v2187_v2, %v2182_v29 }
0x1531   :  { %v2197_v25 = vpop.permute.xlu1 %2196  ;;  %v2194_v21 = vadd.f32 %v2193_v0, %v2188_v59 }
0x1532   :  { %v2199_v13 = vmul.f32 %v2197_v25, %v4937_v56 }
0x1534   :  { %v2200_v55 = vadd.f32 %v2199_v13, %v2194_v21 }
0x1536   :  { %v2203_v52 = vpop.permute.xlu1 %2202 }
0x1537   :  { %v2205_v28 = vmul.f32 %v2203_v52, %v4941_v60 }
0x1539   :  { %v2206_v19 = vadd.f32 %v2205_v28, %v2200_v55 }
0x153b   :  { %v2207_v32 = vmul.f32 1.442695, %v2206_v19  ;;  %v2210_v63 = vmul.f32 2.0, %v2206_v19 }
0x153d   :  { %4591 = vpow2.f32 %v2207_v32 }
0x154a   :  { %v4592_v20 = vpop.eup %4591 }
0x154b   :  { %v2209_v53 = vadd.f32 1.0, %v4592_v20 }
0x154d   :  { %v2211_v61 = vmul.f32 %v2209_v53, %v2209_v53 }
0x154f   :  { %v2212_v62 = vadd.f32 1.0, %v2211_v61 }
0x1551   :  { %4593 = vrcp.f32 %v2212_v62 }
0x155e   :  { %v4594_v29 = vpop.eup %4593 }
0x155f   :  { %v2214_v2 = vmul.f32 %v4594_v29, %v2210_v63 }
0x1561   :  { %v2215_v58 = vsub.f32 %v2206_v19, %v2214_v2 }
0x1563   :  { %4215 = vmatmul.mubr.msk.f32.vlgmr.msra.gmra.mxu1 %vm266_vm2, %v2215_v58  ;;  %v2465_v58 = vstv %s3537_s0 }
0x1564   :  { %4237 = vmatpush3.msra.mxu1 %v5520_v33  ;;  %4252 = vmatprep.mubr.msk.f32.mxu1 %vm4731_vm0, %v4730_v1 }
0x1565   :  { %4238 = vmatprep.subr.mxu1 %v4730_v1 }
0x1566   :  { %4239 = vmatpush3.msra.mxu1 %v5529_v34 }
0x1567   :  { %4240 = vmatprep.subr.mxu1 %v4730_v1 }
0x1568   :  { %4241 = vmatpush3.msra.mxu1 %v5536_v35 }
0x1569   :  { %4242 = vmatprep.subr.mxu1 %v4730_v1 }
0x156a   :  { %4243 = vmatpush3.msra.mxu1 %v5543_v38 }
0x156b   :  { %4244 = vmatprep.subr.mxu1 %v4730_v1 }
0x156c   :  { %4245 = vmatpush3.msra.mxu1 %v5550_v39 }
0x156d   :  { %4246 = vmatprep.subr.mxu1 %v4730_v1 }
0x156e   :  { %4247 = vmatpush3.msra.mxu1 %v5557_v40 }
0x156f   :  { %4248 = vmatprep.subr.mxu1 %v4730_v1 }
0x1570   :  { %4249 = vmatpush3.msra.mxu1 %v5564_v50 }
0x1571   :  { %4250 = vmatprep.subr.mxu1 %v4730_v1 }
0x1572   :  { %4251 = vmatpush3.msra.mxu1 %v5571_v54 }
0x1573   :  { %4274 = vmatprep.subr.mxu1 %v4730_v1 }
0x1623   :  { %v2285_v59 = vpop.f32.mrf.mxu1 }
0x1624   :  { %v2286_v0 = vadd.f32 %v5578_v3, %v2285_v59  ;;  %v2467_v59 = vstv %s3538_s14 }
0x1625   :  { %v4216_v25 = vpop.f32.mrf.mxu1 }
0x1626   :  { %v2289_v21 = vmul.f32 1.442695, %v2286_v0  ;;  %v2292_v19 = vmul.f32 2.0, %v2286_v0 }
0x1628   :  { %4595 = vpow2.f32 %v2289_v21 }
0x1635   :  { %v4596_v13 = vpop.eup %4595 }
0x1636   :  { %v2291_v52 = vadd.f32 1.0, %v4596_v13  ;;  %v2468_v13 = vmul.f32 %v2467_v59, %v5731_v24 }
0x1638   :  { %v2293_v55 = vmul.f32 %v2291_v52, %v2291_v52 }
0x163a   :  { %v2294_v28 = vadd.f32 1.0, %v2293_v55 }
0x163c   :  { %4597 = vrcp.f32 %v2294_v28 }
0x1649   :  { %v4598_v32 = vpop.eup %4597 }
0x164a   :  { %v2296_v20 = vmul.f32 %v4598_v32, %v2292_v19 }
0x164c   :  { %v2297_v53 = vsub.f32 %v2286_v0, %v2296_v20  ;;  %v2472_v0 = vstv %s3539_s15 }
0x164e   :  { %4234 = vmatmul.mubr.msk.f32.vlgmr.msra.gmra.mxu0 %vm266_vm2, %v2297_v53 }
0x164f   :  { %4256 = vmatpush3.msra.mxu0 %v5365_v22  ;;  %4271 = vmatprep.mubr.msk.f32.mxu0 %vm4731_vm0, %v4730_v1 }
0x1650   :  { %4257 = vmatprep.subr.mxu0 %v4730_v1 }
0x1651   :  { %4258 = vmatpush3.msra.mxu0 %v5374_v43 }
0x1652   :  { %4259 = vmatprep.subr.mxu0 %v4730_v1 }
0x1653   :  { %4260 = vmatpush3.msra.mxu0 %v5381_v14 }
0x1654   :  { %4261 = vmatprep.subr.mxu0 %v4730_v1 }
0x1655   :  { %4262 = vmatpush3.msra.mxu0 %v5388_v15 }
0x1656   :  { %4263 = vmatprep.subr.mxu0 %v4730_v1 }
0x1657   :  { %4264 = vmatpush3.msra.mxu0 %v5395_v16 }
0x1658   :  { %4265 = vmatprep.subr.mxu0 %v4730_v1 }
0x1659   :  { %4266 = vmatpush3.msra.mxu0 %v5402_v17 }
0x165a   :  { %4267 = vmatprep.subr.mxu0 %v4730_v1 }
0x165b   :  { %4268 = vmatpush3.msra.mxu0 %v5409_v26 }
0x165c   :  { %4269 = vmatprep.subr.mxu0 %v4730_v1 }
0x165d   :  { %4270 = vmatpush3.msra.mxu0 %v5416_v27 }
0x165e   :  { %4293 = vmatprep.subr.mxu0 %v4730_v1 }
0x170e   :  { %v2367_v22 = vpop.f32.mrf.mxu0 }
0x170f   :  { %v2368_v43 = vadd.f32 %v5603_v18, %v2367_v22 }
0x1710   :  { %v4235_v14 = vpop.f32.mrf.mxu0 }
0x1711   :  { %v2371_v15 = vmul.f32 1.442695, %v2368_v43  ;;  %v2374_v63 = vmul.f32 2.0, %v2368_v43 }
0x1713   :  { %4599 = vpow2.f32 %v2371_v15 }
0x1720   :  { %v4600_v16 = vpop.eup %4599 }
0x1721   :  { %v2373_v61 = vadd.f32 1.0, %v4600_v16 }
0x1723   :  { %v2375_v62 = vmul.f32 %v2373_v61, %v2373_v61 }
0x1725   :  { %v2376_v17 = vadd.f32 1.0, %v2375_v62 }
0x1727   :  { %4601 = vrcp.f32 %v2376_v17 }
0x1734   :  { %v4602_v29 = vpop.eup %4601 }
0x1735   :  { %v2378_v26 = vmul.f32 %v4602_v29, %v2374_v63 }
0x1737   :  { %v2379_v2 = vsub.f32 %v2368_v43, %v2378_v26 }
0x1739   :  { %4253 = vmatmul.mubr.msk.f32.vlgmr.msra.gmra.mxu1 %vm266_vm2, %v2379_v2 }
0x173a   :  { %4275 = vmatpush3.msra.mxu1 %v5425_v41  ;;  %4290 = vmatprep.mubr.msk.f32.mxu1 %vm4731_vm0, %v4730_v1  ;;  %v2458_v41 = vstv %s3535_s29  ;;  %s3550_s29 = sld [smem:[#allocation2 + $0x27]] }
0x173b   :  { %4276 = vmatprep.subr.mxu1 %v4730_v1 }
0x173c   :  { %4277 = vmatpush3.msra.mxu1 %v5434_v23  ;;  %v2460_v23 = vstv %s3536_s30  ;;  %s3561_s30 = sld [smem:[#allocation2 + $0x2c]] }
0x173d   :  { %4278 = vmatprep.subr.mxu1 %v4730_v1 }
0x173e   :  { %4279 = vmatpush3.msra.mxu1 %v5441_v45 }
0x173f   :  { %4280 = vmatprep.subr.mxu1 %v4730_v1 }
0x1740   :  { %4281 = vmatpush3.msra.mxu1 %v5448_v47 }
0x1741   :  { %4282 = vmatprep.subr.mxu1 %v4730_v1 }
0x1742   :  { %4283 = vmatpush3.msra.mxu1 %v5455_v42  ;;  %v2459_v42 = vmul.f32 %v2458_v41, %v5731_v24  ;;  %v3542_v24 = vld [vmem:[%s6211_s1 + $0x7] ss:$0 sm:$0xff] }
0x1743   :  { %4284 = vmatprep.subr.mxu1 %v4730_v1  ;;  %v2480_v20 = vadd.f32 %v3542_v24, %v4924_v37 }
0x1744   :  { %4285 = vmatpush3.msra.mxu1 %v5462_v8 }
0x1745   :  { %4286 = vmatprep.subr.mxu1 %v4730_v1 }
0x1746   :  { %4287 = vmatpush3.msra.mxu1 %v5469_v48 }
0x1747   :  { %4288 = vmatprep.subr.mxu1 %v4730_v1 }
0x1748   :  { %4289 = vmatpush3.msra.mxu1 %v5476_v49  ;;  %v3541_v49 = vld [vmem:[%s6212_s2 + $0x30] sm:$0xff] }
0x1749   :  { %4312 = vmatprep.subr.mxu1 %v4730_v1  ;;  %v2473_v52 = vmul.f32 %v3541_v49, %v2472_v0 }
0x17f9   :  { %v2449_v27 = vpop.f32.mrf.mxu1 }
0x17fa   :  { %v2450_v45 = vadd.f32 %v5628_v4, %v2449_v27 }
0x17fb   :  { %v4254_v47 = vpop.f32.mrf.mxu1 }
0x17fc   :  { %v2461_v8 = vmul.f32 %v2460_v23, %v2450_v45 }
0x17fe   :  { %v2462_v48 = vsub.f32 %v2459_v42, %v2461_v8 }
0x1800   :  { %v3540_v25 = vclamps-f32 %v2462_v48, 1.0 }
0x1802   :  { %v2466_v21 = vmul.f32 %v3540_v25, %v2465_v58 }
0x1804   :  { %v2469_v55 = vadd.f32 %v2468_v13, %v2466_v21 }
0x1806   :  { %v5826_v28 = vadd.f32 %v2473_v52, %v2469_v55 }
0x1808   :  { %2489 = vperm.xlu1 %4495, %v5826_v28   ;;  %2483 = vperm.xlu0 %4494, %v5826_v28  }
0x180c   :  { %4496 = vset.pattern.permute.xlu1 %v4732_v5  ;;  %4497 = vset.pattern.permute.xlu0 %v4734_v7 }
0x180d   :  { %2495 = vperm.xlu1 %4496, %v5826_v28   ;;  %2501 = vperm.xlu0 %4497, %v5826_v28  }
0x1811   :  { %4498 = vset.pattern.permute.xlu1 %v4736_v9  ;;  %4500 = vset.pattern.permute.xlu0 %v4738_v11 }
0x1812   :  { %2507 = vperm.xlu1 %4498, %v5826_v28   ;;  %2519 = vperm.xlu0 %4500, %v5826_v28  }
0x1816   :  { %4499 = vset.pattern.permute.xlu1 %v4737_v10  ;;  %4503 = vset.pattern.permute.xlu0 %v6226_v57 }
0x1817   :  { %2513 = vperm.xlu1 %4499, %v5826_v28  }
0x181b   :  { %4501 = vset.pattern.permute.xlu1 %v4739_v12 }
0x181c   :  { %2525 = vperm.xlu1 %4501, %v5826_v28  }
0x1820   :  { %4502 = vset.pattern.permute.xlu1 %v4733_v6 }
0x1883   :  { %v2490_v19 = vpop.permute.xlu1 %2489  ;;  %v2484_v32 = vpop.permute.xlu0 %2483 }
0x1884   :  { %v2486_v53 = vmul.f32 %v2484_v32, %v4915_v30  ;;  %v2492_v22 = vmul.f32 %v2490_v19, %v4917_v31 }
0x1886   :  { %v2487_v43 = vadd.f32 %v2486_v53, %v2480_v20 }
0x1888   :  { %v2496_v14 = vpop.permute.xlu1 %2495  ;;  %v2493_v15 = vadd.f32 %v2492_v22, %v2487_v43  ;;  %v2502_v61 = vpop.permute.xlu0 %2501  ;;  %v5896_v43 = vld [vmem:[%s6217_s7 + $0x28] sm:$0xff] }
0x1889   :  { %v2498_v16 = vmul.f32 %v2496_v14, %v4922_v36  ;;  %v2504_v17 = vmul.f32 %v2502_v61, %v4929_v44  ;;  %v5903_v14 = vld [vmem:[%s6217_s7 + $0x20] sm:$0xff]  ;;  %v5924_v61 = vld [vmem:[%s6217_s7 + $0x8] sm:$0xff] }
0x188b   :  { %v2499_v62 = vadd.f32 %v2498_v16, %v2493_v15  ;;  %v5910_v15 = vld [vmem:[%s6217_s7 + $0x18] sm:$0xff]  ;;  %v5917_v16 = vld [vmem:[%s6217_s7 + $0x10] sm:$0xff] }
0x188d   :  { %v2508_v63 = vpop.permute.xlu1 %2507  ;;  %v2505_v29 = vadd.f32 %v2504_v17, %v2499_v62  ;;  %v2520_v2 = vpop.permute.xlu0 %2519  ;;  %v5931_v62 = vld [vmem:[%s6217_s7] sm:$0xff] }
0x188e   :  { %v2510_v26 = vmul.f32 %v2508_v63, %v4931_v46  ;;  %v2522_v45 = vmul.f32 %v2520_v2, %v4937_v56 }
0x1890   :  { %v2511_v41 = vadd.f32 %v2510_v26, %v2505_v29 }
0x1892   :  { %v2514_v27 = vpop.permute.xlu1 %2513 }
0x1893   :  { %v2516_v23 = vmul.f32 %v2514_v27, %v4934_v51 }
0x1895   :  { %v2517_v47 = vadd.f32 %v2516_v23, %v2511_v41 }
0x1897   :  { %v2526_v42 = vpop.permute.xlu1 %2525  ;;  %v2523_v8 = vadd.f32 %v2522_v45, %v2517_v47 }
0x1898   :  { %v2528_v48 = vmul.f32 %v2526_v42, %v4941_v60 }
0x189a   :  { %v2529_v58 = vadd.f32 %v2528_v48, %v2523_v8  ;;  %v5940_v48 = vld [vmem:[%s6219_s9 + $0x38] sm:$0xff] }
0x189c   :  { %v2530_v59 = vmul.f32 1.442695, %v2529_v58  ;;  %v2533_v13 = vmul.f32 2.0, %v2529_v58 }
0x189e   :  { %4603 = vpow2.f32 %v2530_v59  ;;  %v5963_v59 = vld [vmem:[%s6219_s9 + $0x20] sm:$0xff] }
0x18ab   :  { %v4604_v49 = vpop.eup %4603 }
0x18ac   :  { %v2532_v0 = vadd.f32 1.0, %v4604_v49  ;;  %v5970_v49 = vld [vmem:[%s6219_s9 + $0x18] sm:$0xff] }
0x18ae   :  { %v2534_v25 = vmul.f32 %v2532_v0, %v2532_v0  ;;  %v5977_v0 = vld [vmem:[%s6219_s9 + $0x10] sm:$0xff] }
0x18b0   :  { %v2535_v21 = vadd.f32 1.0, %v2534_v25  ;;  %v5984_v25 = vld [vmem:[%s6219_s9 + $0x8] sm:$0xff] }
0x18b2   :  { %4605 = vrcp.f32 %v2535_v21  ;;  %v5991_v21 = vld [vmem:[%s6219_s9] sm:$0xff] }
0x18bf   :  { %v4606_v52 = vpop.eup %4605 }
0x18c0   :  { %v2537_v55 = vmul.f32 %v4606_v52, %v2533_v13  ;;  %v2781_v52 = vstv %s3546_s25 }
0x18c2   :  { %v2538_v24 = vsub.f32 %v2529_v58, %v2537_v55  ;;  %v5956_v58 = vld [vmem:[%s6219_s9 + $0x28] sm:$0xff]  ;;  %v2783_v55 = vstv %s3547_s26 }
0x18c4   :  { %4272 = vmatmul.mubr.msk.f32.vlgmr.msra.gmra.mxu0 %vm266_vm2, %v2538_v24 }
0x18c5   :  { %4294 = vmatpush3.msra.mxu0 %v5520_v33  ;;  %4309 = vmatprep.mubr.msk.f32.mxu0 %vm4731_vm0, %v4730_v1 }
0x18c6   :  { %4295 = vmatprep.subr.mxu0 %v4730_v1 }
0x18c7   :  { %4296 = vmatpush3.msra.mxu0 %v5529_v34 }
0x18c8   :  { %4297 = vmatprep.subr.mxu0 %v4730_v1 }
0x18c9   :  { %4298 = vmatpush3.msra.mxu0 %v5536_v35 }
0x18ca   :  { %4299 = vmatprep.subr.mxu0 %v4730_v1 }
0x18cb   :  { %4300 = vmatpush3.msra.mxu0 %v5543_v38 }
0x18cc   :  { %4301 = vmatprep.subr.mxu0 %v4730_v1 }
0x18cd   :  { %4302 = vmatpush3.msra.mxu0 %v5550_v39 }
0x18ce   :  { %4303 = vmatprep.subr.mxu0 %v4730_v1 }
0x18cf   :  { %4304 = vmatpush3.msra.mxu0 %v5557_v40 }
0x18d0   :  { %4305 = vmatprep.subr.mxu0 %v4730_v1 }
0x18d1   :  { %4306 = vmatpush3.msra.mxu0 %v5564_v50 }
0x18d2   :  { %4307 = vmatprep.subr.mxu0 %v4730_v1 }
0x18d3   :  { %4308 = vmatpush3.msra.mxu0 %v5571_v54  ;;  %v5880_v54 = vld [vmem:[%s6217_s7 + $0x38] sm:$0xff] }
0x18d4   :  { %4331 = vmatprep.subr.mxu0 %v4730_v1 }
0x1984   :  { %v2608_v33 = vpop.f32.mrf.mxu0 }
0x1985   :  { %v2609_v34 = vadd.f32 %v5578_v3, %v2608_v33  ;;  %v5889_v3 = vld [vmem:[%s6217_s7 + $0x30] sm:$0xff] }
0x1986   :  { %v4273_v35 = vpop.f32.mrf.mxu0 }
0x1987   :  { %v2612_v38 = vmul.f32 1.442695, %v2609_v34  ;;  %v2615_v20 = vmul.f32 2.0, %v2609_v34 }
0x1989   :  { %4607 = vpow2.f32 %v2612_v38 }
0x1996   :  { %v4608_v39 = vpop.eup %4607 }
0x1997   :  { %v2614_v19 = vadd.f32 1.0, %v4608_v39  ;;  %v2788_v39 = vstv %s3548_s28  ;;  %s3558_s28 = sld [smem:[#allocation2 + $0x29]] }
0x1999   :  { %v2616_v32 = vmul.f32 %v2614_v19, %v2614_v19  ;;  %v2790_v19 = vstv %s3549_s27 }
0x199b   :  { %v2617_v40 = vadd.f32 1.0, %v2616_v32  ;;  %v3552_v32 = vld [vmem:[%s6212_s2 + $0x38] sm:$0xff] }
0x199d   :  { %4609 = vrcp.f32 %v2617_v40  ;;  %v2795_v40 = vstv %s3550_s29  ;;  %s3560_s29 = sld [smem:[#allocation2 + $0x2b]] }
0x19aa   :  { %v4610_v53 = vpop.eup %4609 }
0x19ab   :  { %v2619_v50 = vmul.f32 %v4610_v53, %v2615_v20 }
0x19ad   :  { %v2620_v22 = vsub.f32 %v2609_v34, %v2619_v50  ;;  %v2782_v34 = vmul.f32 %v2781_v52, %v5826_v28  ;;  %v2791_v50 = vmul.f32 %v2790_v19, %v5826_v28 }
0x19af   :  { %4291 = vmatmul.mubr.msk.f32.vlgmr.msra.gmra.mxu1 %vm266_vm2, %v2620_v22  ;;  %v2796_v22 = vmul.f32 %v3552_v32, %v2795_v40 }
0x19b0   :  { %4313 = vmatpush3.msra.mxu1 %v5880_v54  ;;  %4328 = vmatprep.mubr.msk.f32.mxu1 %vm4731_vm0, %v4730_v1 }
0x19b1   :  { %4314 = vmatprep.subr.mxu1 %v4730_v1 }
0x19b2   :  { %4315 = vmatpush3.msra.mxu1 %v5889_v3 }
0x19b3   :  { %4316 = vmatprep.subr.mxu1 %v4730_v1 }
0x19b4   :  { %4317 = vmatpush3.msra.mxu1 %v5896_v43 }
0x19b5   :  { %4318 = vmatprep.subr.mxu1 %v4730_v1 }
0x19b6   :  { %4319 = vmatpush3.msra.mxu1 %v5903_v14 }
0x19b7   :  { %4320 = vmatprep.subr.mxu1 %v4730_v1 }
0x19b8   :  { %4321 = vmatpush3.msra.mxu1 %v5910_v15 }
0x19b9   :  { %4322 = vmatprep.subr.mxu1 %v4730_v1 }
0x19ba   :  { %4323 = vmatpush3.msra.mxu1 %v5917_v16 }
0x19bb   :  { %4324 = vmatprep.subr.mxu1 %v4730_v1 }
0x19bc   :  { %4325 = vmatpush3.msra.mxu1 %v5924_v61 }
0x19bd   :  { %4326 = vmatprep.subr.mxu1 %v4730_v1 }
0x19be   :  { %4327 = vmatpush3.msra.mxu1 %v5931_v62 }
0x19bf   :  { %4350 = vmatprep.subr.mxu1 %v4730_v1 }
0x1a6f   :  { %v2690_v17 = vpop.f32.mrf.mxu1 }
0x1a70   :  { %v2691_v63 = vadd.f32 %v5603_v18, %v2690_v17  ;;  %v5949_v18 = vld [vmem:[%s6219_s9 + $0x30] sm:$0xff]  ;;  %s3559_s9 = sld [smem:[#allocation2 + $0x2a]] }
0x1a71   :  { %v4292_v29 = vpop.f32.mrf.mxu1 }
0x1a72   :  { %v2694_v26 = vmul.f32 1.442695, %v2691_v63  ;;  %v2697_v45 = vmul.f32 2.0, %v2691_v63 }
0x1a74   :  { %4611 = vpow2.f32 %v2694_v26 }
0x1a81   :  { %v4612_v2 = vpop.eup %4611 }
0x1a82   :  { %v2696_v27 = vadd.f32 1.0, %v4612_v2 }
0x1a84   :  { %v2698_v41 = vmul.f32 %v2696_v27, %v2696_v27 }
0x1a86   :  { %v2699_v23 = vadd.f32 1.0, %v2698_v41 }
0x1a88   :  { %4613 = vrcp.f32 %v2699_v23 }
0x1a95   :  { %v4614_v47 = vpop.eup %4613 }
0x1a96   :  { %v2701_v42 = vmul.f32 %v4614_v47, %v2697_v45 }
0x1a98   :  { %v2702_v8 = vsub.f32 %v2691_v63, %v2701_v42 }
0x1a9a   :  { %4310 = vmatmul.mubr.msk.f32.vlgmr.msra.gmra.mxu0 %vm266_vm2, %v2702_v8 }
0x1a9b   :  { %4332 = vmatpush3.msra.mxu0 %v5940_v48  ;;  %4347 = vmatprep.mubr.msk.f32.mxu0 %vm4731_vm0, %v4730_v1 }
0x1a9c   :  { %4333 = vmatprep.subr.mxu0 %v4730_v1 }
0x1a9d   :  { %4334 = vmatpush3.msra.mxu0 %v5949_v18 }
0x1a9e   :  { %4335 = vmatprep.subr.mxu0 %v4730_v1 }
0x1a9f   :  { %4336 = vmatpush3.msra.mxu0 %v5956_v58 }
0x1aa0   :  { %4337 = vmatprep.subr.mxu0 %v4730_v1 }
0x1aa1   :  { %4338 = vmatpush3.msra.mxu0 %v5963_v59 }
0x1aa2   :  { %4339 = vmatprep.subr.mxu0 %v4730_v1 }
0x1aa3   :  { %4340 = vmatpush3.msra.mxu0 %v5970_v49 }
0x1aa4   :  { %4341 = vmatprep.subr.mxu0 %v4730_v1 }
0x1aa5   :  { %4342 = vmatpush3.msra.mxu0 %v5977_v0 }
0x1aa6   :  { %4343 = vmatprep.subr.mxu0 %v4730_v1 }
0x1aa7   :  { %4344 = vmatpush3.msra.mxu0 %v5984_v25 }
0x1aa8   :  { %4345 = vmatprep.subr.mxu0 %v4730_v1 }
0x1aa9   :  { %4346 = vmatpush3.msra.mxu0 %v5991_v21 }
0x1aaa   :  { %4369 = vmatprep.subr.mxu0 %v4730_v1 }
0x1b5a   :  { %v2772_v13 = vpop.f32.mrf.mxu0 }
0x1b5b   :  { %v2773_v24 = vadd.f32 %v5628_v4, %v2772_v13  ;;  %v3553_v4 = vld [vmem:[%s6211_s1 + $0x8] ss:$0 sm:$0xff] }
0x1b5c   :  { %v4311_v33 = vpop.f32.mrf.mxu0  ;;  %v2803_v29 = vadd.f32 %v3553_v4, %v4924_v37 }
0x1b5d   :  { %v2784_v35 = vmul.f32 %v2783_v55, %v2773_v24 }
0x1b5f   :  { %v2785_v38 = vsub.f32 %v2782_v34, %v2784_v35 }
0x1b61   :  { %v3551_v20 = vclamps-f32 %v2785_v38, 1.0 }
0x1b63   :  { %v2789_v53 = vmul.f32 %v3551_v20, %v2788_v39 }
0x1b65   :  { %v2792_v17 = vadd.f32 %v2791_v50, %v2789_v53 }
0x1b67   :  { %v6001_v63 = vadd.f32 %v2796_v22, %v2792_v17 }
0x1b69   :  { %2812 = vperm.xlu0 %4503, %v6001_v63   ;;  %2806 = vperm.xlu1 %4502, %v6001_v63  }
0x1b6d   :  { %4506 = vset.pattern.permute.xlu0 %v4736_v9  ;;  %4504 = vset.pattern.permute.xlu1 %v4732_v5 }
0x1b6e   :  { %2830 = vperm.xlu0 %4506, %v6001_v63   ;;  %2818 = vperm.xlu1 %4504, %v6001_v63  }
0x1b72   :  { %4509 = vset.pattern.permute.xlu0 %v4739_v12  ;;  %4505 = vset.pattern.permute.xlu1 %v4734_v7 }
0x1b73   :  { %2848 = vperm.xlu0 %4509, %v6001_v63   ;;  %2824 = vperm.xlu1 %4505, %v6001_v63  }
0x1b77   :  { %4507 = vset.pattern.permute.xlu1 %v4737_v10  ;;  %4512 = vset.pattern.permute.xlu0 %v4732_v5 }
0x1b78   :  { %2836 = vperm.xlu1 %4507, %v6001_v63  }
0x1b7c   :  { %4508 = vset.pattern.permute.xlu1 %v4738_v11 }
0x1b7d   :  { %2842 = vperm.xlu1 %4508, %v6001_v63  }
0x1b81   :  { %4510 = vset.pattern.permute.xlu1 %v4733_v6 }
0x1be4   :  { %v2807_v28 = vpop.permute.xlu1 %2806  ;;  %v2813_v2 = vpop.permute.xlu0 %2812 }
0x1be5   :  { %v2809_v26 = vmul.f32 %v2807_v28, %v4915_v30  ;;  %v2815_v5 = vmul.f32 %v2813_v2, %v4917_v31  ;;  %v6035_v2 = vld [vmem:[%s6221_s11 + $0x38] sm:$0xff] }
0x1be7   :  { %v2810_v27 = vadd.f32 %v2809_v26, %v2803_v29 }
0x1be9   :  { %v2819_v41 = vpop.permute.xlu1 %2818  ;;  %v2816_v23 = vadd.f32 %v2815_v5, %v2810_v27  ;;  %v2831_v8 = vpop.permute.xlu0 %2830  ;;  %v6044_v27 = vld [vmem:[%s6221_s11 + $0x30] sm:$0xff]  ;;  %v6051_v5 = vld [vmem:[%s6221_s11 + $0x28] sm:$0xff] }
0x1bea   :  { %v2821_v45 = vmul.f32 %v2819_v41, %v4922_v36  ;;  %v2833_v52 = vmul.f32 %v2831_v8, %v4931_v46  ;;  %v6058_v41 = vld [vmem:[%s6221_s11 + $0x20] sm:$0xff] }
0x1beb   :  { %v6093_v8 = vld [vmem:[%s6218_s8] ss:$0 sm:$0xff] }
0x1bec   :  { %v2822_v42 = vadd.f32 %v2821_v45, %v2816_v23  ;;  %v6065_v23 = vld [vmem:[%s6221_s11 + $0x18] sm:$0xff]  ;;  %v6072_v45 = vld [vmem:[%s6221_s11 + $0x10] sm:$0xff] }
0x1bee   :  { %v2825_v47 = vpop.permute.xlu1 %2824  ;;  %v2849_v34 = vpop.permute.xlu0 %2848 }
0x1bef   :  { %v2827_v6 = vmul.f32 %v2825_v47, %v4929_v44  ;;  %v2851_v19 = vmul.f32 %v2849_v34, %v4941_v60  ;;  %v6079_v47 = vld [vmem:[%s6221_s11 + $0x8] sm:$0xff] }
0x1bf1   :  { %v2828_v13 = vadd.f32 %v2827_v6, %v2822_v42  ;;  %v6086_v42 = vld [vmem:[%s6221_s11] sm:$0xff] }
0x1bf3   :  { %v2837_v55 = vpop.permute.xlu1 %2836  ;;  %v2834_v24 = vadd.f32 %v2833_v52, %v2828_v13 }
0x1bf4   :  { %v2839_v33 = vmul.f32 %v2837_v55, %v4934_v51 }
0x1bf6   :  { %v2840_v38 = vadd.f32 %v2839_v33, %v2834_v24 }
0x1bf8   :  { %v2843_v35 = vpop.permute.xlu1 %2842 }
0x1bf9   :  { %v2845_v39 = vmul.f32 %v2843_v35, %v4937_v56 }
0x1bfb   :  { %v2846_v32 = vadd.f32 %v2845_v39, %v2840_v38 }
0x1bfd   :  { %v2852_v40 = vadd.f32 %v2851_v19, %v2846_v32 }
0x1bff   :  { %v2853_v20 = vmul.f32 1.442695, %v2852_v40  ;;  %v2856_v4 = vmul.f32 2.0, %v2852_v40 }
0x1c01   :  { %4615 = vpow2.f32 %v2853_v20 }
0x1c0e   :  { %v4616_v53 = vpop.eup %4615 }
0x1c0f   :  { %v2855_v50 = vadd.f32 1.0, %v4616_v53 }
0x1c11   :  { %v2857_v22 = vmul.f32 %v2855_v50, %v2855_v50 }
0x1c13   :  { %v2858_v17 = vadd.f32 1.0, %v2857_v22 }
0x1c15   :  { %4617 = vrcp.f32 %v2858_v17 }
0x1c22   :  { %v4618_v28 = vpop.eup %4617 }
0x1c23   :  { %v2860_v29 = vmul.f32 %v4618_v28, %v2856_v4  ;;  %v3111_v4 = vstv %s3559_s9  ;;  %v3113_v28 = vstv %s3560_s29 }
0x1c25   :  { %v2861_v26 = vsub.f32 %v2852_v40, %v2860_v29  ;;  %v3563_v29 = vld [vmem:[%s6212_s2 + $0x40] sm:$0xff] }
0x1c27   :  { %4329 = vmatmul.mubr.msk.f32.vlgmr.msra.gmra.mxu1 %vm266_vm2, %v2861_v26  ;;  %v3118_v26 = vstv %s3561_s30 }
0x1c28   :  { %4351 = vmatpush3.msra.mxu1 %v6035_v2  ;;  %4366 = vmatprep.mubr.msk.f32.mxu1 %vm4731_vm0, %v4730_v1 }
0x1c29   :  { %4352 = vmatprep.subr.mxu1 %v4730_v1 }
0x1c2a   :  { %4353 = vmatpush3.msra.mxu1 %v6044_v27 }
0x1c2b   :  { %4354 = vmatprep.subr.mxu1 %v4730_v1 }
0x1c2c   :  { %4355 = vmatpush3.msra.mxu1 %v6051_v5 }
0x1c2d   :  { %4356 = vmatprep.subr.mxu1 %v4730_v1 }
0x1c2e   :  { %4357 = vmatpush3.msra.mxu1 %v6058_v41 }
0x1c2f   :  { %4358 = vmatprep.subr.mxu1 %v4730_v1 }
0x1c30   :  { %4359 = vmatpush3.msra.mxu1 %v6065_v23 }
0x1c31   :  { %4360 = vmatprep.subr.mxu1 %v4730_v1 }
0x1c32   :  { %4361 = vmatpush3.msra.mxu1 %v6072_v45 }
0x1c33   :  { %4362 = vmatprep.subr.mxu1 %v4730_v1 }
0x1c34   :  { %4363 = vmatpush3.msra.mxu1 %v6079_v47 }
0x1c35   :  { %4364 = vmatprep.subr.mxu1 %v4730_v1 }
0x1c36   :  { %4365 = vmatpush3.msra.mxu1 %v6086_v42 }
0x1c37   :  { %4388 = vmatprep.subr.mxu1 %v4730_v1 }
0x1ce7   :  { %v2931_v6 = vpop.f32.mrf.mxu1 }
0x1ce8   :  { %v2932_v13 = vadd.f32 %v6093_v8, %v2931_v6 }
0x1ce9   :  { %v4330_v52 = vpop.f32.mrf.mxu1 }
0x1cea   :  { %v2935_v55 = vmul.f32 1.442695, %v2932_v13  ;;  %v2938_v38 = vmul.f32 2.0, %v2932_v13  ;;  %v3114_v52 = vmul.f32 %v3113_v28, %v6001_v63 }
0x1cec   :  { %4619 = vpow2.f32 %v2935_v55  ;;  %v3119_v55 = vmul.f32 %v3563_v29, %v3118_v26 }
0x1cf9   :  { %v4620_v24 = vpop.eup %4619 }
0x1cfa   :  { %v2937_v33 = vadd.f32 1.0, %v4620_v24 }
0x1cfc   :  { %v2939_v34 = vmul.f32 %v2937_v33, %v2937_v33 }
0x1cfe   :  { %v2940_v35 = vadd.f32 1.0, %v2939_v34 }
0x1d00   :  { %4621 = vrcp.f32 %v2940_v35 }
0x1d0d   :  { %v4622_v39 = vpop.eup %4621 }
0x1d0e   :  { %v2942_v19 = vmul.f32 %v4622_v39, %v2938_v38 }
0x1d10   :  { %v2943_v32 = vsub.f32 %v2932_v13, %v2942_v19 }
0x1d12   :  { %4348 = vmatmul.mubr.msk.f32.vlgmr.msra.gmra.mxu0 %vm266_vm2, %v2943_v32 }
0x1d13   :  { %4370 = vmatpush3.msra.mxu0 %v5880_v54  ;;  %4385 = vmatprep.mubr.msk.f32.mxu0 %vm4731_vm0, %v4730_v1 }
0x1d14   :  { %4371 = vmatprep.subr.mxu0 %v4730_v1 }
0x1d15   :  { %4372 = vmatpush3.msra.mxu0 %v5889_v3  ;;  %v6118_v3 = vld [vmem:[%s6220_s10] ss:$0 sm:$0xff]  ;;  %s3557_s10 = sld [smem:[#allocation2 + $0x28]] }
0x1d16   :  { %4373 = vmatprep.subr.mxu0 %v4730_v1 }
0x1d17   :  { %4374 = vmatpush3.msra.mxu0 %v5896_v43 }
0x1d18   :  { %4375 = vmatprep.subr.mxu0 %v4730_v1 }
0x1d19   :  { %4376 = vmatpush3.msra.mxu0 %v5903_v14 }
0x1d1a   :  { %4377 = vmatprep.subr.mxu0 %v4730_v1 }
0x1d1b   :  { %4378 = vmatpush3.msra.mxu0 %v5910_v15 }
0x1d1c   :  { %4379 = vmatprep.subr.mxu0 %v4730_v1 }
0x1d1d   :  { %4380 = vmatpush3.msra.mxu0 %v5917_v16 }
0x1d1e   :  { %4381 = vmatprep.subr.mxu0 %v4730_v1 }
0x1d1f   :  { %4382 = vmatpush3.msra.mxu0 %v5924_v61 }
0x1d20   :  { %4383 = vmatprep.subr.mxu0 %v4730_v1 }
0x1d21   :  { %4384 = vmatpush3.msra.mxu0 %v5931_v62 }
0x1d22   :  { %4407 = vmatprep.subr.mxu0 %v4730_v1 }
0x1dd2   :  { %v3013_v54 = vpop.f32.mrf.mxu0 }
0x1dd3   :  { %v3014_v43 = vadd.f32 %v6118_v3, %v3013_v54 }
0x1dd4   :  { %v4349_v14 = vpop.f32.mrf.mxu0 }
0x1dd5   :  { %v3017_v15 = vmul.f32 1.442695, %v3014_v43  ;;  %v3020_v53 = vmul.f32 2.0, %v3014_v43 }
0x1dd7   :  { %4623 = vpow2.f32 %v3017_v15 }
0x1de4   :  { %v4624_v16 = vpop.eup %4623 }
0x1de5   :  { %v3019_v40 = vadd.f32 1.0, %v4624_v16 }
0x1de7   :  { %v3021_v61 = vmul.f32 %v3019_v40, %v3019_v40 }
0x1de9   :  { %v3022_v20 = vadd.f32 1.0, %v3021_v61 }
0x1deb   :  { %4625 = vrcp.f32 %v3022_v20 }
0x1df8   :  { %v4626_v62 = vpop.eup %4625 }
0x1df9   :  { %v3024_v50 = vmul.f32 %v4626_v62, %v3020_v53 }
0x1dfb   :  { %v3025_v22 = vsub.f32 %v3014_v43, %v3024_v50 }
0x1dfd   :  { %4367 = vmatmul.mubr.msk.f32.vlgmr.msra.gmra.mxu1 %vm266_vm2, %v3025_v22 }
0x1dfe   :  { %4389 = vmatpush3.msra.mxu1 %v5940_v48  ;;  %4404 = vmatprep.mubr.msk.f32.mxu1 %vm4731_vm0, %v4730_v1 }
0x1dff   :  { %4390 = vmatprep.subr.mxu1 %v4730_v1 }
0x1e00   :  { %4391 = vmatpush3.msra.mxu1 %v5949_v18  ;;  %v3104_v18 = vstv %s3557_s10 }
0x1e01   :  { %4392 = vmatprep.subr.mxu1 %v4730_v1 }
0x1e02   :  { %4393 = vmatpush3.msra.mxu1 %v5956_v58  ;;  %v3106_v58 = vstv %s3558_s28 }
0x1e03   :  { %4394 = vmatprep.subr.mxu1 %v4730_v1 }
0x1e04   :  { %4395 = vmatpush3.msra.mxu1 %v5963_v59  ;;  %v6142_v59 = vld [vmem:[%s6222_s12] ss:$0 sm:$0xff] }
0x1e05   :  { %4396 = vmatprep.subr.mxu1 %v4730_v1 }
0x1e06   :  { %4397 = vmatpush3.msra.mxu1 %v5970_v49 }
0x1e07   :  { %4398 = vmatprep.subr.mxu1 %v4730_v1 }
0x1e08   :  { %4399 = vmatpush3.msra.mxu1 %v5977_v0 }
0x1e09   :  { %4400 = vmatprep.subr.mxu1 %v4730_v1 }
0x1e0a   :  { %4401 = vmatpush3.msra.mxu1 %v5984_v25  ;;  %v3105_v25 = vmul.f32 %v3104_v18, %v6001_v63 }
0x1e0b   :  { %4402 = vmatprep.subr.mxu1 %v4730_v1 }
0x1e0c   :  { %4403 = vmatpush3.msra.mxu1 %v5991_v21 }
0x1ebd   :  { %v3095_v48 = vpop.f32.mrf.mxu1 }
0x1ebe   :  { %v3096_v49 = vadd.f32 %v6142_v59, %v3095_v48 }
0x1ebf   :  { %v4368_v0 = vpop.f32.mrf.mxu1 }
0x1ec0   :  { %v3107_v17 = vmul.f32 %v3106_v58, %v3096_v49 }
0x1ec2   :  { %v3108_v21 = vsub.f32 %v3105_v25, %v3107_v17 }
0x1ec4   :  { %v3562_v6 = vclamps-f32 %v3108_v21, 1.0 }
0x1ec6   :  { %v3112_v13 = vmul.f32 %v3562_v6, %v3111_v4 }
0x1ec8   :  { %v3115_v24 = vadd.f32 %v3114_v52, %v3112_v13 }
0x1eca   :  { %v6150_v33 = vadd.f32 %v3119_v55, %v3115_v24  ;;  %v3429_v24 = vstv %s3569_s17 }
0x1ecc   :  { %3141 = vperm.xlu0 %4512, %v6150_v33   ;;  %3129 = vperm.xlu1 %4510, %v6150_v33  }
0x1ed0   :  { %4515 = vset.pattern.permute.xlu0 %v4737_v10  ;;  %4511 = vset.pattern.permute.xlu1 %v6226_v57 }
0x1ed1   :  { %3159 = vperm.xlu0 %4515, %v6150_v33   ;;  %3135 = vperm.xlu1 %4511, %v6150_v33  }
0x1ed5   :  { %4513 = vset.pattern.permute.xlu1 %v4734_v7  ;;  %4518 = vset.pattern.permute.xlu0 %v4739_v12  ;;  %v3564_v7 = vld [vmem:[%s6211_s1 + $0x9] ss:$0 sm:$0xff]  ;;  %s3568_s1 = sld [smem:[#allocation2 + $0x2d]] }
0x1ed6   :  { %3147 = vperm.xlu1 %4513, %v6150_v33   ;;  %v3126_v63 = vadd.f32 %v3564_v7, %v4924_v37 }
0x1eda   :  { %4514 = vset.pattern.permute.xlu1 %v4736_v9 }
0x1edb   :  { %3153 = vperm.xlu1 %4514, %v6150_v33   ;;  %v3427_v55 = vstv %s3568_s1 }
0x1edf   :  { %4516 = vset.pattern.permute.xlu1 %v4738_v11 }
0x1ee0   :  { %3165 = vperm.xlu1 %4516, %v6150_v33  }
0x1ee4   :  { %4517 = vset.pattern.permute.xlu1 %v4739_v12 }
0x1ee5   :  { %3171 = vperm.xlu1 %4517, %v6150_v33  }
0x1f47   :  { %v3130_v10 = vpop.permute.xlu1 %3129  ;;  %v3142_v11 = vpop.permute.xlu0 %3141 }
0x1f48   :  { %v3132_v57 = vmul.f32 %v3130_v10, %v4915_v30  ;;  %v3144_v39 = vmul.f32 %v3142_v11, %v4922_v36  ;;  %v3574_v11 = vld [vmem:[%s6212_s2 + $0x48] sm:$0xff] }
0x1f4a   :  { %v3133_v34 = vadd.f32 %v3132_v57, %v3126_v63  ;;  %v3428_v57 = vmul.f32 %v3427_v55, %v6150_v33 }
0x1f4c   :  { %v3136_v9 = vpop.permute.xlu1 %3135  ;;  %v3160_v15 = vpop.permute.xlu0 %3159 }
0x1f4d   :  { %v3138_v35 = vmul.f32 %v3136_v9, %v4917_v31  ;;  %v3162_v37 = vmul.f32 %v3160_v15, %v4934_v51 }
0x1f4f   :  { %v3139_v38 = vadd.f32 %v3138_v35, %v3133_v34  ;;  %v3434_v34 = vstv %s3570_s5  ;;  %v3436_v35 = vstv %s3571_s18 }
0x1f51   :  { %v3148_v12 = vpop.permute.xlu1 %3147  ;;  %v3145_v19 = vadd.f32 %v3144_v39, %v3139_v38  ;;  %v3441_v38 = vstv %s3572_s19 }
0x1f52   :  { %v3150_v32 = vmul.f32 %v3148_v12, %v4929_v44 }
0x1f54   :  { %v3151_v43 = vadd.f32 %v3150_v32, %v3145_v19  ;;  %v3437_v19 = vmul.f32 %v3436_v35, %v6150_v33  ;;  %v3442_v32 = vmul.f32 %v3574_v11, %v3441_v38 }
0x1f56   :  { %v3154_v54 = vpop.permute.xlu1 %3153 }
0x1f57   :  { %v3156_v14 = vmul.f32 %v3154_v54, %v4931_v46 }
0x1f59   :  { %v3157_v30 = vadd.f32 %v3156_v14, %v3151_v43 }
0x1f5b   :  { %v3166_v16 = vpop.permute.xlu1 %3165  ;;  %v3163_v40 = vadd.f32 %v3162_v37, %v3157_v30 }
0x1f5c   :  { %v3168_v31 = vmul.f32 %v3166_v16, %v4937_v56 }
0x1f5e   :  { %v3169_v20 = vadd.f32 %v3168_v31, %v3163_v40 }
0x1f60   :  { %v3172_v61 = vpop.permute.xlu1 %3171 }
0x1f61   :  { %v3174_v36 = vmul.f32 %v3172_v61, %v4941_v60 }
0x1f63   :  { %v3175_v53 = vadd.f32 %v3174_v36, %v3169_v20 }
0x1f65   :  { %v3176_v62 = vmul.f32 1.442695, %v3175_v53  ;;  %v3179_v46 = vmul.f32 2.0, %v3175_v53 }
0x1f67   :  { %4627 = vpow2.f32 %v3176_v62 }
0x1f74   :  { %v4628_v44 = vpop.eup %4627 }
0x1f75   :  { %v3178_v50 = vadd.f32 1.0, %v4628_v44 }
0x1f77   :  { %v3180_v22 = vmul.f32 %v3178_v50, %v3178_v50 }
0x1f79   :  { %v3181_v48 = vadd.f32 1.0, %v3180_v22 }
0x1f7b   :  { %4629 = vrcp.f32 %v3181_v48 }
0x1f88   :  { %v4630_v18 = vpop.eup %4629 }
0x1f89   :  { %v3183_v58 = vmul.f32 %v4630_v18, %v3179_v46 }
0x1f8b   :  { %v3184_v51 = vsub.f32 %v3175_v53, %v3183_v58 }
0x1f8d   :  { %4386 = vmatmul.mubr.msk.f32.vlgmr.msra.gmra.mxu0 %vm266_vm2, %v3184_v51 }
0x1f8e   :  { %4408 = vmatpush3.msra.mxu0 %v6035_v2  ;;  %4423 = vmatprep.mubr.msk.f32.mxu0 %vm4731_vm0, %v4730_v1 }
0x1f8f   :  { %4409 = vmatprep.subr.mxu0 %v4730_v1 }
0x1f90   :  { %4410 = vmatpush3.msra.mxu0 %v6044_v27 }
0x1f91   :  { %4411 = vmatprep.subr.mxu0 %v4730_v1 }
0x1f92   :  { %4412 = vmatpush3.msra.mxu0 %v6051_v5 }
0x1f93   :  { %4413 = vmatprep.subr.mxu0 %v4730_v1 }
0x1f94   :  { %4414 = vmatpush3.msra.mxu0 %v6058_v41 }
0x1f95   :  { %4415 = vmatprep.subr.mxu0 %v4730_v1 }
0x1f96   :  { %4416 = vmatpush3.msra.mxu0 %v6065_v23 }
0x1f97   :  { %4417 = vmatprep.subr.mxu0 %v4730_v1 }
0x1f98   :  { %4418 = vmatpush3.msra.mxu0 %v6072_v45 }
0x1f99   :  { %4419 = vmatprep.subr.mxu0 %v4730_v1 }
0x1f9a   :  { %4420 = vmatpush3.msra.mxu0 %v6079_v47 }
0x1f9b   :  { %4421 = vmatprep.subr.mxu0 %v4730_v1 }
0x1f9c   :  { %4422 = vmatpush3.msra.mxu0 %v6086_v42 }
0x204d   :  { %v3254_v56 = vpop.f32.mrf.mxu0 }
0x204e   :  { %v3255_v60 = vadd.f32 %v6093_v8, %v3254_v56 }
0x204f   :  { %v4387_v2 = vpop.f32.mrf.mxu0 }
0x2050   :  { %v3258_v27 = vmul.f32 1.442695, %v3255_v60  ;;  %v3261_v45 = vmul.f32 2.0, %v3255_v60 }
0x2052   :  { %4631 = vpow2.f32 %v3258_v27 }
0x205f   :  { %v4632_v5 = vpop.eup %4631 }
0x2060   :  { %v3260_v41 = vadd.f32 1.0, %v4632_v5 }
0x2062   :  { %v3262_v23 = vmul.f32 %v3260_v41, %v3260_v41 }
0x2064   :  { %v3263_v49 = vadd.f32 1.0, %v3262_v23 }
0x2066   :  { %4633 = vrcp.f32 %v3263_v49 }
0x2073   :  { %v4634_v0 = vpop.eup %4633 }
0x2074   :  { %v3265_v25 = vmul.f32 %v4634_v0, %v3261_v45 }
0x2076   :  { %v3266_v17 = vsub.f32 %v3255_v60, %v3265_v25 }
0x2078   :  { %4405 = vmatmul.mubr.msk.f32.vlgmr.msra.gmra.mxu1 %vm266_vm2, %v3266_v17 }
0x2138   :  { %v3336_v1 = vpop.f32.mrf.mxu1 }
0x2139   :  { %v3337_v47 = vadd.f32 %v6118_v3, %v3336_v1 }
0x213a   :  { %v4406_v42 = vpop.f32.mrf.mxu1 }
0x213b   :  { %v3340_v21 = vmul.f32 1.442695, %v3337_v47  ;;  %v3343_v26 = vmul.f32 2.0, %v3337_v47 }
0x213d   :  { %4635 = vpow2.f32 %v3340_v21 }
0x214a   :  { %v4636_v8 = vpop.eup %4635 }
0x214b   :  { %v3342_v4 = vadd.f32 1.0, %v4636_v8 }
0x214d   :  { %v3344_v28 = vmul.f32 %v3342_v4, %v3342_v4 }
0x214f   :  { %v3345_v29 = vadd.f32 1.0, %v3344_v28 }
0x2151   :  { %4637 = vrcp.f32 %v3345_v29 }
0x215e   :  { %v4638_v6 = vpop.eup %4637 }
0x215f   :  { %v3347_v13 = vmul.f32 %v4638_v6, %v3343_v26 }
0x2161   :  { %v3348_v52 = vsub.f32 %v3337_v47, %v3347_v13 }
0x2163   :  { %4424 = vmatmul.mubr.msk.f32.vlgmr.msra.gmra.mxu0 %vm266_vm2, %v3348_v52 }
0x2223   :  { %v3418_v3 = vpop.f32.mrf.mxu0 }
0x2224   :  { %v3419_v10 = vadd.f32 %v6142_v59, %v3418_v3 }
0x2225   :  { %v4425_v7 = vpop.f32.mrf.mxu0 }
0x2226   :  { %v3430_v63 = vmul.f32 %v3429_v24, %v3419_v10 }
0x2228   :  { %v3431_v9 = vsub.f32 %v3428_v57, %v3430_v63 }
0x222a   :  { %v3573_v39 = vclamps-f32 %v3431_v9, 1.0 }
0x222c   :  { %v3435_v12 = vmul.f32 %v3573_v39, %v3434_v34 }
0x222e   :  { %v3438_v54 = vadd.f32 %v3437_v19, %v3435_v12 }
0x2230   :  { %v3443_v59 = vadd.f32 %v3442_v32, %v3438_v54 }
0x2232   :  { %v3575_v43 = vclamps-f32 %v3443_v59, 1.0 }
0x2234   :  { %3447 = vst.msk [vmem:[#allocation5] sm:$0xff] %vm3446_vm3, %v3575_v43 }
0x2235   :  { %4716 = shalt.err (!%p4713_p9)
}
0x2236   :  { %3457 = dma.vmem_to_hbm [thread:$0]  %s3455_s20, 128, %s6223_s13, [#allocation3]  }
0x2237   :  { %4727 = dma.done.wait [#allocation3], 128  }
0x2238   :  { %4728 = vsyncadd [#allocation3], 4294967168 }
0x2239   :  { %3461 = vsyncpa [#allocation3], 1 }
0x223a   :  { %3462 = vsyncpa [#allocation4], 1 }

</bundles_post_ra>
